<compile_context>
chip_gen: v6e
topology: v6e:2x2x1
jax: 0.10.0
libtpu: 0.0.40
codegen_flags: <defaults>
</compile_context>

<pallas_src>
import functools

import jax
import jax.numpy as jnp
from jax import lax
from jax.experimental import pallas as pl
from jax.experimental.pallas import tpu as pltpu

BN_EPS = 1e-5
LANE = 128                     # TPU lane width: LSTM hidden & policy output padded to this.
MXU_DTYPE = jnp.bfloat16       # MXU input dtype (f32 accumulation).  Set to jnp.float32
                               # for a bit-accuracy regression test of the weight repacking.


def _round_up(x, m):
    return (x + m - 1) // m * m


def _vmem():
    return pl.BlockSpec(memory_space=pltpu.MemorySpace.VMEM)


# ----------------------------------------------------------------------------
# Fused forward kernel
# ----------------------------------------------------------------------------
def _fused_forward_kernel(
    # inputs (whole arrays resident in VMEM -- fine at these toy sizes)
    x_ref, s_ref,                                  # (N, Cin) f32, (N, Ds) f32; N = T*B
    fw1_ref, fb1_ref, gamma_ref, beta_ref,         # feature head: linear1 + BatchNorm
    wz0_ref, ws0_ref, b0_ref,                      # L0 input proj (fh_w2 folded into wz0)
    whh0_ref,                                      # L0 recurrent weight (Hp, 4Hp)
    wih1_ref, whh1_ref, b1_ref,                    # L1 input / recurrent weights + bias
    pw_ref, pb_ref,                                # policy head (Hp, Ap), (1, Ap)
    # outputs
    acts_ref,                                      # (T*B, Ap) f32   (lane/sublane dense)
    hn_ref, cn_ref,                                # (2, B, Hp) f32
):
    f32 = jnp.float32
    NB, Ap = acts_ref.shape
    _, B, Hp = hn_ref.shape
    T = NB // B
    G = 4 * Hp
    G3 = 3 * Hp

    def mxu(a, w):
        # MXU matmul, f32 accumulation (inputs already in MXU_DTYPE where it matters).
        return jnp.dot(a, w, preferred_element_type=f32)

    # ---------------- Feature head: Linear -> BatchNorm1d (training stats) -> ReLU.
    x = x_ref[...].astype(MXU_DTYPE)                                # (N, Cin)
    h = mxu(x, fw1_ref[...]) + fb1_ref[...]
    mean = jnp.mean(h, axis=0, keepdims=True)
    var = jnp.mean(jnp.square(h - mean), axis=0, keepdims=True)     # biased var (BN training)
    h = (h - mean) * lax.rsqrt(var + BN_EPS) * gamma_ref[...] + beta_ref[...]
    h = jnp.maximum(h, 0.0)                                         # (N, Hfeat) f32

    # ---------------- LSTM layer-0 input projection, hoisted over all T*B rows.
    # fh_w2 is folded into wz0 (prep_params), so this consumes the ReLU output directly:
    #   rnn_input @ Wih0 == relu_h @ (fh_w2 @ Wih0[:latent]) + state @ Wih0[latent:] + b0'
    g0_all = (mxu(h.astype(MXU_DTYPE), wz0_ref[...])
              + mxu(s_ref[...].astype(MXU_DTYPE), ws0_ref[...])
              + b0_ref[...])                                        # (N, 4Hp) f32

    # Small loop-invariant bias broadcast hoisted once (JAX does not CSE broadcast_in_dim).
    b1 = jnp.broadcast_to(b1_ref[...], (B, G))

    def gate_act(gates, c_prev):
        # Gate order is repacked to (i, f, o, g): one sigmoid over a contiguous 3*Hp slice,
        # one tanh over the last Hp slice (2 EUP dispatches per cell).  Hp is a multiple of
        # 128 so every slice is vreg-aligned (no cross-lane extracts on the serial path).
        sig = jax.nn.sigmoid(gates[:, :G3])
        g = jnp.tanh(gates[:, G3:])
        i = sig[:, 0 * Hp:1 * Hp]
        f = sig[:, 1 * Hp:2 * Hp]
        o = sig[:, 2 * Hp:G3]
        c_new = f * c_prev + i * g
        return o * jnp.tanh(c_new), c_new

    zeros = jnp.zeros((B, Hp), f32)
    h0, c0, h1, c1 = zeros, zeros, zeros, zeros
    h0b = h0.astype(MXU_DTYPE)
    # Layer-1 recurrent half for step 0: h1_init == 0, so it is just the bias.
    pre1 = b1
    ctx = []                                                        # per-step h1 (B, Hp) f32

    # Fully-unrolled, statically-indexed recurrence (T small & static).  Weights are
    # re-read from VMEM at each use (NOT hoisted) so they are never live across steps.
    # TODO(synk): for large T switch to a rolled lax.fori_loop / grid axis with a VMEM
    #             h1-accumulator scratch to bound code size and live ranges.
    for t in range(T):
        gates0 = g0_all[t * B:(t + 1) * B, :] + mxu(h0b, whh0_ref[...])   # sum-of-dots (MRB)
        h0, c0 = gate_act(gates0, c0)
        h0b = h0.astype(MXU_DTYPE)                                  # cast once, reused below
        gates1 = mxu(h0b, wih1_ref[...]) + pre1                     # only 1 matmul on h0->h1
        h1, c1 = gate_act(gates1, c1)
        ctx.append(h1)
        if t + 1 < T:
            # Next step's layer-1 recurrent half: depends only on this step's h1, so it is
            # off the h0-chain critical path of step t+1.
            pre1 = mxu(h1.astype(MXU_DTYPE), whh1_ref[...]) + b1

    # ---------------- Policy head, hoisted out of the loop: one dense matmul over all
    # T*B context rows and one lane/sublane-dense store.
    ctx_all = jnp.concatenate(ctx, axis=0).astype(MXU_DTYPE)        # (T*B, Hp)
    acts_ref[...] = mxu(ctx_all, pw_ref[...]) + pb_ref[...]

    hn_ref[0] = h0
    hn_ref[1] = h1
    cn_ref[0] = c0
    cn_ref[1] = c1


# ----------------------------------------------------------------------------
# Parameter repacking (one-time, outside the per-step forward):
#   * pad LSTM hidden / gate / action dims to 128 lanes,
#   * repack gate order (i, f, g, o) -> (i, f, o, g),
#   * split the layer-0 input weight (no concat in the kernel),
#   * fold feature-head linear2 into the layer-0 input projection (in f32),
#   * cast matmul weights to MXU_DTYPE once.
# ----------------------------------------------------------------------------
def prep_params(p):
    H = p["lstm0_whh"].shape[0]
    latent = p["fh_w2"].shape[1]
    A = p["pi_w"].shape[1]
    Hp = _round_up(H, LANE)
    Ap = _round_up(A, LANE)

    def pad_gate_cols(w):
        # PyTorch gate order (i, f, g, o) -> kernel order (i, f, o, g), each gate's H real
        # columns land at [k*Hp, k*Hp + H), padded columns are zero.
        gi, gf, gg, go = (w[:, k * H:(k + 1) * H] for k in range(4))
        return jnp.concatenate(
            [jnp.pad(g, ((0, 0), (0, Hp - H))) for g in (gi, gf, go, gg)], axis=1)

    def pad_rows(w):
        return jnp.pad(w, ((0, Hp - H), (0, 0)))

    wih0 = pad_gate_cols(p["lstm0_wih"])                             # (latent+Ds, 4Hp)
    wz0 = wih0[:latent]                                              # (latent, 4Hp)
    ws0 = wih0[latent:]                                              # (Ds, 4Hp)

    # Fold fh_w2 / fh_b2 into the L0 input projection.  Products are formed in f32 and cast
    # to MXU_DTYPE once (better numerics than composing two bf16 matmuls).
    wz_fold = p["fh_w2"] @ wz0                                       # (Hfeat, 4Hp) f32
    b0_fold = pad_gate_cols(p["lstm0_b"]) + p["fh_b2"] @ wz0         # (1, 4Hp) f32

    whh0 = pad_rows(pad_gate_cols(p["lstm0_whh"]))                   # (Hp, 4Hp)
    wih1 = pad_rows(pad_gate_cols(p["lstm1_wih"]))                   # (Hp, 4Hp)
    whh1 = pad_rows(pad_gate_cols(p["lstm1_whh"]))                   # (Hp, 4Hp)

    pw = jnp.pad(p["pi_w"], ((0, Hp - H), (0, Ap - A)))              # (Hp, Ap)
    pb = jnp.pad(p["pi_b"], ((0, 0), (0, Ap - A)))                   # (1, Ap)

    mx = MXU_DTYPE
    return {
        "fw1": p["fh_w1"].astype(mx), "fb1": p["fh_b1"],
        "gamma": p["fh_gamma"], "beta": p["fh_beta"],
        "wz0": wz_fold.astype(mx), "ws0": ws0.astype(mx), "b0": b0_fold,
        "whh0": whh0.astype(mx),
        "wih1": wih1.astype(mx), "whh1": whh1.astype(mx), "b1": pad_gate_cols(p["lstm1_b"]),
        "pw": pw.astype(mx), "pb": pb,
    }


# ----------------------------------------------------------------------------
# Forward wrapper (single pallas_call; only reshapes / padding slices outside)
# ----------------------------------------------------------------------------
def lstm_policy_forward(kp, conv_features, state_embedding, *, hidden_size, action_dim):
    T, B, _ = state_embedding.shape
    Hp = kp["whh0"].shape[0]
    Ap = kp["pw"].shape[1]
    x2d = conv_features.reshape(T * B, -1).astype(jnp.float32)
    s2d = state_embedding.reshape(T * B, -1).astype(jnp.float32)

    # TODO(synk): for large T*B / B, add a ("parallel",) batch grid axis (v7x dual
    #             TensorCore), row-tiled BlockSpecs with a cross-tile BN reduction, and an
    #             explicit vmem_limit_bytes (v7x VMEM is 64 MiB).  At B=2 a grid is pure
    #             overhead, so everything stays resident.
    acts_p, hn_p, cn_p = pl.pallas_call(
        _fused_forward_kernel,
        out_shape=(
            jax.ShapeDtypeStruct((T * B, Ap), jnp.float32),          # padded actions (dense)
            jax.ShapeDtypeStruct((2, B, Hp), jnp.float32),           # padded hn
            jax.ShapeDtypeStruct((2, B, Hp), jnp.float32),           # padded cn
        ),
        in_specs=[_vmem()] * 15,
        out_specs=[_vmem()] * 3,
    )(x2d, s2d,
      kp["fw1"], kp["fb1"], kp["gamma"], kp["beta"],
      kp["wz0"], kp["ws0"], kp["b0"], kp["whh0"],
      kp["wih1"], kp["whh1"], kp["b1"],
      kp["pw"], kp["pb"])

    acts = acts_p.reshape(T, B, Ap)[:, :, :action_dim]
    hn = hn_p[:, :, :hidden_size]
    cn = cn_p[:, :, :hidden_size]
    return acts, (hn, cn)


# ----------------------------------------------------------------------------
# Deterministic "logical" parameter initialization (shapes from the module's __init__)
# ----------------------------------------------------------------------------
def init_params(key, conv_output_size, latent_size, state_latent_size,
                hidden_sizes, action_dim):
    ks = jax.random.split(key, 12)
    H = hidden_sizes
    in_dim = latent_size + state_latent_size

    def u(k, shape, fan_in):
        s = 1.0 / jnp.sqrt(jnp.float32(fan_in))
        return jax.random.uniform(k, shape, jnp.float32, -s, s)

    return {
        # ByolMlpModel feature head
        "fh_w1": u(ks[0], (conv_output_size, H), conv_output_size),
        "fh_b1": u(ks[1], (1, H), conv_output_size),
        "fh_gamma": jnp.ones((1, H), jnp.float32),
        "fh_beta": jnp.zeros((1, H), jnp.float32),
        "fh_w2": u(ks[2], (H, latent_size), H),
        "fh_b2": u(ks[3], (1, latent_size), H),
        # LSTM layer 0 (bias = b_ih + b_hh folded into one)
        "lstm0_wih": u(ks[4], (in_dim, 4 * H), H),
        "lstm0_whh": u(ks[5], (H, 4 * H), H),
        "lstm0_b": u(ks[6], (1, 4 * H), H),
        # LSTM layer 1
        "lstm1_wih": u(ks[7], (H, 4 * H), H),
        "lstm1_whh": u(ks[8], (H, 4 * H), H),
        "lstm1_b": u(ks[9], (1, 4 * H), H),
        # Policy head
        "pi_w": u(ks[10], (H, action_dim), H),
        "pi_b": u(ks[11], (1, action_dim), H),
    }


# ----------------------------------------------------------------------------
# Pure-JAX f32 reference (unpadded, PyTorch gate order) for correctness checking
# ----------------------------------------------------------------------------
def reference_forward(p, conv_features, state_embedding):
    T, B, _ = state_embedding.shape
    x = conv_features.reshape(T * B, -1)
    h = x @ p["fh_w1"] + p["fh_b1"]
    mean = h.mean(0, keepdims=True)
    var = jnp.square(h - mean).mean(0, keepdims=True)
    h = (h - mean) / jnp.sqrt(var + BN_EPS) * p["fh_gamma"] + p["fh_beta"]
    h = jnp.maximum(h, 0.0)
    z = (h @ p["fh_w2"] + p["fh_b2"]).reshape(T, B, -1)
    x_seq = jnp.concatenate([z, state_embedding], axis=2)
    H = p["lstm0_whh"].shape[0]

    def cell(x_in, hp, cp, wih, whh, b):
        g = x_in @ wih + hp @ whh + b
        i = jax.nn.sigmoid(g[:, :H])
        f = jax.nn.sigmoid(g[:, H:2 * H])
        gg = jnp.tanh(g[:, 2 * H:3 * H])
        o = jax.nn.sigmoid(g[:, 3 * H:])
        c = f * cp + i * gg
        return o * jnp.tanh(c), c

    h0 = c0 = h1 = c1 = jnp.zeros((B, H), jnp.float32)
    ctx = []
    for t in range(T):
        h0, c0 = cell(x_seq[t], h0, c0, p["lstm0_wih"], p["lstm0_whh"], p["lstm0_b"])
        h1, c1 = cell(h0, h1, c1, p["lstm1_wih"], p["lstm1_whh"], p["lstm1_b"])
        ctx.append(h1)
    ctx = jnp.stack(ctx)
    acts = ctx @ p["pi_w"] + p["pi_b"]
    return acts, (jnp.stack([h0, h1]), jnp.stack([c0, c1]))


if __name__ == "__main__":
    # Small shapes consistent with the module's forward.
    T, B = 8, 2
    conv_output_size = 64
    latent_size = 32
    state_latent_size = 16
    hidden_sizes = 32
    action_dim = 4

    key = jax.random.PRNGKey(0)
    k_params, kc, ks = jax.random.split(key, 3)
    params = init_params(k_params, conv_output_size, latent_size, state_latent_size,
                         hidden_sizes, action_dim)
    conv_features = jax.random.normal(kc, (T, B, conv_output_size), jnp.float32)
    state_embedding = jax.random.normal(ks, (T, B, state_latent_size), jnp.float32)

    kparams = prep_params(params)                 # one-time weight repack (fold + pad + cast)
    fwd = jax.jit(functools.partial(lstm_policy_forward,
                                    hidden_size=hidden_sizes, action_dim=action_dim))
    acts, (hn, cn) = fwd(kparams, conv_features, state_embedding)
    jax.block_until_ready((acts, hn, cn))

    acts_ref, (hn_ref, cn_ref) = reference_forward(params, conv_features, state_embedding)
    assert acts.shape == (T, B, action_dim)
    assert hn.shape == (2, B, hidden_sizes) and cn.shape == (2, B, hidden_sizes)
    if MXU_DTYPE == jnp.bfloat16:
        tol = dict(atol=3e-2, rtol=3e-2)          # bf16 MXU inputs, f32 accumulation
    else:
        tol = dict(atol=1e-4, rtol=1e-4)          # f32 path doubles as repack regression test
    assert jnp.allclose(acts, acts_ref, **tol)
    assert jnp.allclose(hn, hn_ref, **tol)
    assert jnp.allclose(cn, cn_ref, **tol)

    print("KERNEL_OK")
</pallas_src>

<mosaic_0001>
module attributes {stable_mosaic.version = 11 : i64} {
  func.func @_fused_forward_kernel(%arg0: memref<16x64xf32, #tpu.memory_space<vmem>>, %arg1: memref<16x16xf32, #tpu.memory_space<vmem>>, %arg2: memref<64x32xbf16, #tpu.memory_space<vmem>>, %arg3: memref<1x32xf32, #tpu.memory_space<vmem>>, %arg4: memref<1x32xf32, #tpu.memory_space<vmem>>, %arg5: memref<1x32xf32, #tpu.memory_space<vmem>>, %arg6: memref<32x512xbf16, #tpu.memory_space<vmem>>, %arg7: memref<16x512xbf16, #tpu.memory_space<vmem>>, %arg8: memref<1x512xf32, #tpu.memory_space<vmem>>, %arg9: memref<128x512xbf16, #tpu.memory_space<vmem>>, %arg10: memref<128x512xbf16, #tpu.memory_space<vmem>>, %arg11: memref<128x512xbf16, #tpu.memory_space<vmem>>, %arg12: memref<1x512xf32, #tpu.memory_space<vmem>>, %arg13: memref<128x128xbf16, #tpu.memory_space<vmem>>, %arg14: memref<1x128xf32, #tpu.memory_space<vmem>>, %arg15: memref<16x128xf32, #tpu.memory_space<vmem>>, %arg16: memref<2x2x128xf32, #tpu.memory_space<vmem>>, %arg17: memref<2x2x128xf32, #tpu.memory_space<vmem>>) attributes {dimension_semantics = [], scalar_prefetch = 0 : i64, scratch_operands = 0 : i64, tpu.core_type = #tpu.core_type<tc>} {
    %c0 = arith.constant 0 : index
    %c0_0 = arith.constant 0 : index
    %0 = vector.load %arg0[%c0, %c0_0] : memref<16x64xf32, #tpu.memory_space<vmem>>, vector<16x64xf32>
    %1 = arith.truncf %0 : vector<16x64xf32> to vector<16x64xbf16>
    %c0_1 = arith.constant 0 : index
    %c0_2 = arith.constant 0 : index
    %2 = vector.load %arg2[%c0_1, %c0_2] : memref<64x32xbf16, #tpu.memory_space<vmem>>, vector<64x32xbf16>
    %cst = arith.constant dense<0.000000e+00> : vector<16x32xf32>
    %3 = tpu.matmul %1, %2, %cst {dimension_numbers = #tpu.dot_dimension_numbers<[1], [0], [0], [1], [0, 0, 1, 1], [], []>} : vector<16x64xbf16>, vector<64x32xbf16>, vector<16x32xf32> -> vector<16x32xf32>
    %c0_3 = arith.constant 0 : index
    %c0_4 = arith.constant 0 : index
    %4 = vector.load %arg3[%c0_3, %c0_4] : memref<1x32xf32, #tpu.memory_space<vmem>>, vector<1x32xf32>
    %5 = vector.broadcast %4 : vector<1x32xf32> to vector<16x32xf32>
    %6 = arith.addf %3, %5 : vector<16x32xf32>
    %cst_5 = arith.constant dense<0.000000e+00> : vector<32xf32>
    %7 = vector.multi_reduction <add>, %6, %cst_5 [0] : vector<16x32xf32> to vector<32xf32>
    %8 = vector.shape_cast %7 : vector<32xf32> to vector<1x32xf32>
    %cst_6 = arith.constant 1.600000e+01 : f32
    %9 = vector.broadcast %cst_6 : f32 to vector<1x32xf32>
    %10 = arith.divf %8, %9 : vector<1x32xf32>
    %11 = vector.broadcast %10 : vector<1x32xf32> to vector<16x32xf32>
    %12 = arith.subf %6, %11 : vector<16x32xf32>
    %13 = arith.mulf %12, %12 : vector<16x32xf32>
    %cst_7 = arith.constant dense<0.000000e+00> : vector<32xf32>
    %14 = vector.multi_reduction <add>, %13, %cst_7 [0] : vector<16x32xf32> to vector<32xf32>
    %15 = vector.shape_cast %14 : vector<32xf32> to vector<1x32xf32>
    %cst_8 = arith.constant 1.600000e+01 : f32
    %16 = vector.broadcast %cst_8 : f32 to vector<1x32xf32>
    %17 = arith.divf %15, %16 : vector<1x32xf32>
    %18 = vector.broadcast %10 : vector<1x32xf32> to vector<16x32xf32>
    %19 = arith.subf %6, %18 : vector<16x32xf32>
    %cst_9 = arith.constant 9.99999974E-6 : f32
    %20 = vector.broadcast %cst_9 : f32 to vector<1x32xf32>
    %21 = arith.addf %17, %20 : vector<1x32xf32>
    %22 = math.rsqrt %21 : vector<1x32xf32>
    %23 = vector.broadcast %22 : vector<1x32xf32> to vector<16x32xf32>
    %24 = arith.mulf %19, %23 : vector<16x32xf32>
    %c0_10 = arith.constant 0 : index
    %c0_11 = arith.constant 0 : index
    %25 = vector.load %arg4[%c0_10, %c0_11] : memref<1x32xf32, #tpu.memory_space<vmem>>, vector<1x32xf32>
    %26 = vector.broadcast %25 : vector<1x32xf32> to vector<16x32xf32>
    %27 = arith.mulf %24, %26 : vector<16x32xf32>
    %c0_12 = arith.constant 0 : index
    %c0_13 = arith.constant 0 : index
    %28 = vector.load %arg5[%c0_12, %c0_13] : memref<1x32xf32, #tpu.memory_space<vmem>>, vector<1x32xf32>
    %29 = vector.broadcast %28 : vector<1x32xf32> to vector<16x32xf32>
    %30 = arith.addf %27, %29 : vector<16x32xf32>
    %cst_14 = arith.constant 0.000000e+00 : f32
    %31 = vector.broadcast %cst_14 : f32 to vector<16x32xf32>
    %32 = arith.maximumf %30, %31 : vector<16x32xf32>
    %33 = arith.truncf %32 : vector<16x32xf32> to vector<16x32xbf16>
    %c0_15 = arith.constant 0 : index
    %c0_16 = arith.constant 0 : index
    %34 = vector.load %arg6[%c0_15, %c0_16] : memref<32x512xbf16, #tpu.memory_space<vmem>>, vector<32x512xbf16>
    %cst_17 = arith.constant dense<0.000000e+00> : vector<16x512xf32>
    %35 = tpu.matmul %33, %34, %cst_17 {dimension_numbers = #tpu.dot_dimension_numbers<[1], [0], [0], [1], [0, 0, 1, 1], [], []>} : vector<16x32xbf16>, vector<32x512xbf16>, vector<16x512xf32> -> vector<16x512xf32>
    %c0_18 = arith.constant 0 : index
    %c0_19 = arith.constant 0 : index
    %36 = vector.load %arg1[%c0_18, %c0_19] : memref<16x16xf32, #tpu.memory_space<vmem>>, vector<16x16xf32>
    %37 = arith.truncf %36 : vector<16x16xf32> to vector<16x16xbf16>
    %c0_20 = arith.constant 0 : index
    %c0_21 = arith.constant 0 : index
    %38 = vector.load %arg7[%c0_20, %c0_21] : memref<16x512xbf16, #tpu.memory_space<vmem>>, vector<16x512xbf16>
    %cst_22 = arith.constant dense<0.000000e+00> : vector<16x512xf32>
    %39 = tpu.matmul %37, %38, %cst_22 {dimension_numbers = #tpu.dot_dimension_numbers<[1], [0], [0], [1], [0, 0, 1, 1], [], []>} : vector<16x16xbf16>, vector<16x512xbf16>, vector<16x512xf32> -> vector<16x512xf32>
    %40 = arith.addf %35, %39 : vector<16x512xf32>
    %c0_23 = arith.constant 0 : index
    %c0_24 = arith.constant 0 : index
    %41 = vector.load %arg8[%c0_23, %c0_24] : memref<1x512xf32, #tpu.memory_space<vmem>>, vector<1x512xf32>
    %42 = vector.broadcast %41 : vector<1x512xf32> to vector<16x512xf32>
    %43 = arith.addf %40, %42 : vector<16x512xf32>
    %c0_25 = arith.constant 0 : index
    %c0_26 = arith.constant 0 : index
    %44 = vector.load %arg12[%c0_25, %c0_26] : memref<1x512xf32, #tpu.memory_space<vmem>>, vector<1x512xf32>
    %45 = vector.shape_cast %44 : vector<1x512xf32> to vector<1x512xf32>
    %46 = vector.broadcast %45 : vector<1x512xf32> to vector<2x512xf32>
    %cst_27 = arith.constant 0.000000e+00 : f32
    %47 = vector.broadcast %cst_27 : f32 to vector<2x128xf32>
    %48 = arith.truncf %47 : vector<2x128xf32> to vector<2x128xbf16>
    %49 = vector.extract_strided_slice %43 {offsets = [0, 0], sizes = [2, 512], strides = [1, 1]} : vector<16x512xf32> to vector<2x512xf32>
    %c0_28 = arith.constant 0 : index
    %c0_29 = arith.constant 0 : index
    %50 = vector.load %arg9[%c0_28, %c0_29] : memref<128x512xbf16, #tpu.memory_space<vmem>>, vector<128x512xbf16>
    %cst_30 = arith.constant dense<0.000000e+00> : vector<2x512xf32>
    %51 = tpu.matmul %48, %50, %cst_30 {dimension_numbers = #tpu.dot_dimension_numbers<[1], [0], [0], [1], [0, 0, 1, 1], [], []>} : vector<2x128xbf16>, vector<128x512xbf16>, vector<2x512xf32> -> vector<2x512xf32>
    %52 = arith.addf %49, %51 : vector<2x512xf32>
    %53 = vector.extract_strided_slice %52 {offsets = [0, 0], sizes = [2, 384], strides = [1, 1]} : vector<2x512xf32> to vector<2x384xf32>
    %54 = arith.negf %53 : vector<2x384xf32>
    %55 = math.exp %54 : vector<2x384xf32>
    %cst_31 = arith.constant 1.000000e+00 : f32
    %56 = vector.broadcast %cst_31 : f32 to vector<2x384xf32>
    %57 = arith.addf %56, %55 : vector<2x384xf32>
    %58 = arith.divf %56, %57 : vector<2x384xf32>
    %59 = vector.extract_strided_slice %52 {offsets = [0, 384], sizes = [2, 128], strides = [1, 1]} : vector<2x512xf32> to vector<2x128xf32>
    %60 = math.tanh %59 : vector<2x128xf32>
    %61 = vector.extract_strided_slice %58 {offsets = [0, 0], sizes = [2, 128], strides = [1, 1]} : vector<2x384xf32> to vector<2x128xf32>
    %62 = vector.extract_strided_slice %58 {offsets = [0, 128], sizes = [2, 128], strides = [1, 1]} : vector<2x384xf32> to vector<2x128xf32>
    %63 = vector.extract_strided_slice %58 {offsets = [0, 256], sizes = [2, 128], strides = [1, 1]} : vector<2x384xf32> to vector<2x128xf32>
    %64 = arith.mulf %62, %47 : vector<2x128xf32>
    %65 = arith.mulf %61, %60 : vector<2x128xf32>
    %66 = arith.addf %64, %65 : vector<2x128xf32>
    %67 = math.tanh %66 : vector<2x128xf32>
    %68 = arith.mulf %63, %67 : vector<2x128xf32>
    %69 = arith.truncf %68 : vector<2x128xf32> to vector<2x128xbf16>
    %c0_32 = arith.constant 0 : index
    %c0_33 = arith.constant 0 : index
    %70 = vector.load %arg10[%c0_32, %c0_33] : memref<128x512xbf16, #tpu.memory_space<vmem>>, vector<128x512xbf16>
    %cst_34 = arith.constant dense<0.000000e+00> : vector<2x512xf32>
    %71 = tpu.matmul %69, %70, %cst_34 {dimension_numbers = #tpu.dot_dimension_numbers<[1], [0], [0], [1], [0, 0, 1, 1], [], []>} : vector<2x128xbf16>, vector<128x512xbf16>, vector<2x512xf32> -> vector<2x512xf32>
    %72 = arith.addf %71, %46 : vector<2x512xf32>
    %73 = vector.extract_strided_slice %72 {offsets = [0, 0], sizes = [2, 384], strides = [1, 1]} : vector<2x512xf32> to vector<2x384xf32>
    %74 = arith.negf %73 : vector<2x384xf32>
    %75 = math.exp %74 : vector<2x384xf32>
    %cst_35 = arith.constant 1.000000e+00 : f32
    %76 = vector.broadcast %cst_35 : f32 to vector<2x384xf32>
    %77 = arith.addf %76, %75 : vector<2x384xf32>
    %78 = arith.divf %76, %77 : vector<2x384xf32>
    %79 = vector.extract_strided_slice %72 {offsets = [0, 384], sizes = [2, 128], strides = [1, 1]} : vector<2x512xf32> to vector<2x128xf32>
    %80 = math.tanh %79 : vector<2x128xf32>
    %81 = vector.extract_strided_slice %78 {offsets = [0, 0], sizes = [2, 128], strides = [1, 1]} : vector<2x384xf32> to vector<2x128xf32>
    %82 = vector.extract_strided_slice %78 {offsets = [0, 128], sizes = [2, 128], strides = [1, 1]} : vector<2x384xf32> to vector<2x128xf32>
    %83 = vector.extract_strided_slice %78 {offsets = [0, 256], sizes = [2, 128], strides = [1, 1]} : vector<2x384xf32> to vector<2x128xf32>
    %84 = arith.mulf %82, %47 : vector<2x128xf32>
    %85 = arith.mulf %81, %80 : vector<2x128xf32>
    %86 = arith.addf %84, %85 : vector<2x128xf32>
    %87 = math.tanh %86 : vector<2x128xf32>
    %88 = arith.mulf %83, %87 : vector<2x128xf32>
    %89 = arith.truncf %88 : vector<2x128xf32> to vector<2x128xbf16>
    %c0_36 = arith.constant 0 : index
    %c0_37 = arith.constant 0 : index
    %90 = vector.load %arg11[%c0_36, %c0_37] : memref<128x512xbf16, #tpu.memory_space<vmem>>, vector<128x512xbf16>
    %cst_38 = arith.constant dense<0.000000e+00> : vector<2x512xf32>
    %91 = tpu.matmul %89, %90, %cst_38 {dimension_numbers = #tpu.dot_dimension_numbers<[1], [0], [0], [1], [0, 0, 1, 1], [], []>} : vector<2x128xbf16>, vector<128x512xbf16>, vector<2x512xf32> -> vector<2x512xf32>
    %92 = arith.addf %91, %46 : vector<2x512xf32>
    %93 = vector.extract_strided_slice %43 {offsets = [2, 0], sizes = [2, 512], strides = [1, 1]} : vector<16x512xf32> to vector<2x512xf32>
    %c0_39 = arith.constant 0 : index
    %c0_40 = arith.constant 0 : index
    %94 = vector.load %arg9[%c0_39, %c0_40] : memref<128x512xbf16, #tpu.memory_space<vmem>>, vector<128x512xbf16>
    %cst_41 = arith.constant dense<0.000000e+00> : vector<2x512xf32>
    %95 = tpu.matmul %69, %94, %cst_41 {dimension_numbers = #tpu.dot_dimension_numbers<[1], [0], [0], [1], [0, 0, 1, 1], [], []>} : vector<2x128xbf16>, vector<128x512xbf16>, vector<2x512xf32> -> vector<2x512xf32>
    %96 = arith.addf %93, %95 : vector<2x512xf32>
    %97 = vector.extract_strided_slice %96 {offsets = [0, 0], sizes = [2, 384], strides = [1, 1]} : vector<2x512xf32> to vector<2x384xf32>
    %98 = arith.negf %97 : vector<2x384xf32>
    %99 = math.exp %98 : vector<2x384xf32>
    %cst_42 = arith.constant 1.000000e+00 : f32
    %100 = vector.broadcast %cst_42 : f32 to vector<2x384xf32>
    %101 = arith.addf %100, %99 : vector<2x384xf32>
    %102 = arith.divf %100, %101 : vector<2x384xf32>
    %103 = vector.extract_strided_slice %96 {offsets = [0, 384], sizes = [2, 128], strides = [1, 1]} : vector<2x512xf32> to vector<2x128xf32>
    %104 = math.tanh %103 : vector<2x128xf32>
    %105 = vector.extract_strided_slice %102 {offsets = [0, 0], sizes = [2, 128], strides = [1, 1]} : vector<2x384xf32> to vector<2x128xf32>
    %106 = vector.extract_strided_slice %102 {offsets = [0, 128], sizes = [2, 128], strides = [1, 1]} : vector<2x384xf32> to vector<2x128xf32>
    %107 = vector.extract_strided_slice %102 {offsets = [0, 256], sizes = [2, 128], strides = [1, 1]} : vector<2x384xf32> to vector<2x128xf32>
    %108 = arith.mulf %106, %66 : vector<2x128xf32>
    %109 = arith.mulf %105, %104 : vector<2x128xf32>
    %110 = arith.addf %108, %109 : vector<2x128xf32>
    %111 = math.tanh %110 : vector<2x128xf32>
    %112 = arith.mulf %107, %111 : vector<2x128xf32>
    %113 = arith.truncf %112 : vector<2x128xf32> to vector<2x128xbf16>
    %c0_43 = arith.constant 0 : index
    %c0_44 = arith.constant 0 : index
    %114 = vector.load %arg10[%c0_43, %c0_44] : memref<128x512xbf16, #tpu.memory_space<vmem>>, vector<128x512xbf16>
    %cst_45 = arith.constant dense<0.000000e+00> : vector<2x512xf32>
    %115 = tpu.matmul %113, %114, %cst_45 {dimension_numbers = #tpu.dot_dimension_numbers<[1], [0], [0], [1], [0, 0, 1, 1], [], []>} : vector<2x128xbf16>, vector<128x512xbf16>, vector<2x512xf32> -> vector<2x512xf32>
    %116 = arith.addf %115, %92 : vector<2x512xf32>
    %117 = vector.extract_strided_slice %116 {offsets = [0, 0], sizes = [2, 384], strides = [1, 1]} : vector<2x512xf32> to vector<2x384xf32>
    %118 = arith.negf %117 : vector<2x384xf32>
    %119 = math.exp %118 : vector<2x384xf32>
    %cst_46 = arith.constant 1.000000e+00 : f32
    %120 = vector.broadcast %cst_46 : f32 to vector<2x384xf32>
    %121 = arith.addf %120, %119 : vector<2x384xf32>
    %122 = arith.divf %120, %121 : vector<2x384xf32>
    %123 = vector.extract_strided_slice %116 {offsets = [0, 384], sizes = [2, 128], strides = [1, 1]} : vector<2x512xf32> to vector<2x128xf32>
    %124 = math.tanh %123 : vector<2x128xf32>
    %125 = vector.extract_strided_slice %122 {offsets = [0, 0], sizes = [2, 128], strides = [1, 1]} : vector<2x384xf32> to vector<2x128xf32>
    %126 = vector.extract_strided_slice %122 {offsets = [0, 128], sizes = [2, 128], strides = [1, 1]} : vector<2x384xf32> to vector<2x128xf32>
    %127 = vector.extract_strided_slice %122 {offsets = [0, 256], sizes = [2, 128], strides = [1, 1]} : vector<2x384xf32> to vector<2x128xf32>
    %128 = arith.mulf %126, %86 : vector<2x128xf32>
    %129 = arith.mulf %125, %124 : vector<2x128xf32>
    %130 = arith.addf %128, %129 : vector<2x128xf32>
    %131 = math.tanh %130 : vector<2x128xf32>
    %132 = arith.mulf %127, %131 : vector<2x128xf32>
    %133 = arith.truncf %132 : vector<2x128xf32> to vector<2x128xbf16>
    %c0_47 = arith.constant 0 : index
    %c0_48 = arith.constant 0 : index
    %134 = vector.load %arg11[%c0_47, %c0_48] : memref<128x512xbf16, #tpu.memory_space<vmem>>, vector<128x512xbf16>
    %cst_49 = arith.constant dense<0.000000e+00> : vector<2x512xf32>
    %135 = tpu.matmul %133, %134, %cst_49 {dimension_numbers = #tpu.dot_dimension_numbers<[1], [0], [0], [1], [0, 0, 1, 1], [], []>} : vector<2x128xbf16>, vector<128x512xbf16>, vector<2x512xf32> -> vector<2x512xf32>
    %136 = arith.addf %135, %46 : vector<2x512xf32>
    %137 = vector.extract_strided_slice %43 {offsets = [4, 0], sizes = [2, 512], strides = [1, 1]} : vector<16x512xf32> to vector<2x512xf32>
    %c0_50 = arith.constant 0 : index
    %c0_51 = arith.constant 0 : index
    %138 = vector.load %arg9[%c0_50, %c0_51] : memref<128x512xbf16, #tpu.memory_space<vmem>>, vector<128x512xbf16>
    %cst_52 = arith.constant dense<0.000000e+00> : vector<2x512xf32>
    %139 = tpu.matmul %113, %138, %cst_52 {dimension_numbers = #tpu.dot_dimension_numbers<[1], [0], [0], [1], [0, 0, 1, 1], [], []>} : vector<2x128xbf16>, vector<128x512xbf16>, vector<2x512xf32> -> vector<2x512xf32>
    %140 = arith.addf %137, %139 : vector<2x512xf32>
    %141 = vector.extract_strided_slice %140 {offsets = [0, 0], sizes = [2, 384], strides = [1, 1]} : vector<2x512xf32> to vector<2x384xf32>
    %142 = arith.negf %141 : vector<2x384xf32>
    %143 = math.exp %142 : vector<2x384xf32>
    %cst_53 = arith.constant 1.000000e+00 : f32
    %144 = vector.broadcast %cst_53 : f32 to vector<2x384xf32>
    %145 = arith.addf %144, %143 : vector<2x384xf32>
    %146 = arith.divf %144, %145 : vector<2x384xf32>
    %147 = vector.extract_strided_slice %140 {offsets = [0, 384], sizes = [2, 128], strides = [1, 1]} : vector<2x512xf32> to vector<2x128xf32>
    %148 = math.tanh %147 : vector<2x128xf32>
    %149 = vector.extract_strided_slice %146 {offsets = [0, 0], sizes = [2, 128], strides = [1, 1]} : vector<2x384xf32> to vector<2x128xf32>
    %150 = vector.extract_strided_slice %146 {offsets = [0, 128], sizes = [2, 128], strides = [1, 1]} : vector<2x384xf32> to vector<2x128xf32>
    %151 = vector.extract_strided_slice %146 {offsets = [0, 256], sizes = [2, 128], strides = [1, 1]} : vector<2x384xf32> to vector<2x128xf32>
    %152 = arith.mulf %150, %110 : vector<2x128xf32>
    %153 = arith.mulf %149, %148 : vector<2x128xf32>
    %154 = arith.addf %152, %153 : vector<2x128xf32>
    %155 = math.tanh %154 : vector<2x128xf32>
    %156 = arith.mulf %151, %155 : vector<2x128xf32>
    %157 = arith.truncf %156 : vector<2x128xf32> to vector<2x128xbf16>
    %c0_54 = arith.constant 0 : index
    %c0_55 = arith.constant 0 : index
    %158 = vector.load %arg10[%c0_54, %c0_55] : memref<128x512xbf16, #tpu.memory_space<vmem>>, vector<128x512xbf16>
    %cst_56 = arith.constant dense<0.000000e+00> : vector<2x512xf32>
    %159 = tpu.matmul %157, %158, %cst_56 {dimension_numbers = #tpu.dot_dimension_numbers<[1], [0], [0], [1], [0, 0, 1, 1], [], []>} : vector<2x128xbf16>, vector<128x512xbf16>, vector<2x512xf32> -> vector<2x512xf32>
    %160 = arith.addf %159, %136 : vector<2x512xf32>
    %161 = vector.extract_strided_slice %160 {offsets = [0, 0], sizes = [2, 384], strides = [1, 1]} : vector<2x512xf32> to vector<2x384xf32>
    %162 = arith.negf %161 : vector<2x384xf32>
    %163 = math.exp %162 : vector<2x384xf32>
    %cst_57 = arith.constant 1.000000e+00 : f32
    %164 = vector.broadcast %cst_57 : f32 to vector<2x384xf32>
    %165 = arith.addf %164, %163 : vector<2x384xf32>
    %166 = arith.divf %164, %165 : vector<2x384xf32>
    %167 = vector.extract_strided_slice %160 {offsets = [0, 384], sizes = [2, 128], strides = [1, 1]} : vector<2x512xf32> to vector<2x128xf32>
    %168 = math.tanh %167 : vector<2x128xf32>
    %169 = vector.extract_strided_slice %166 {offsets = [0, 0], sizes = [2, 128], strides = [1, 1]} : vector<2x384xf32> to vector<2x128xf32>
    %170 = vector.extract_strided_slice %166 {offsets = [0, 128], sizes = [2, 128], strides = [1, 1]} : vector<2x384xf32> to vector<2x128xf32>
    %171 = vector.extract_strided_slice %166 {offsets = [0, 256], sizes = [2, 128], strides = [1, 1]} : vector<2x384xf32> to vector<2x128xf32>
    %172 = arith.mulf %170, %130 : vector<2x128xf32>
    %173 = arith.mulf %169, %168 : vector<2x128xf32>
    %174 = arith.addf %172, %173 : vector<2x128xf32>
    %175 = math.tanh %174 : vector<2x128xf32>
    %176 = arith.mulf %171, %175 : vector<2x128xf32>
    %177 = arith.truncf %176 : vector<2x128xf32> to vector<2x128xbf16>
    %c0_58 = arith.constant 0 : index
    %c0_59 = arith.constant 0 : index
    %178 = vector.load %arg11[%c0_58, %c0_59] : memref<128x512xbf16, #tpu.memory_space<vmem>>, vector<128x512xbf16>
    %cst_60 = arith.constant dense<0.000000e+00> : vector<2x512xf32>
    %179 = tpu.matmul %177, %178, %cst_60 {dimension_numbers = #tpu.dot_dimension_numbers<[1], [0], [0], [1], [0, 0, 1, 1], [], []>} : vector<2x128xbf16>, vector<128x512xbf16>, vector<2x512xf32> -> vector<2x512xf32>
    %180 = arith.addf %179, %46 : vector<2x512xf32>
    %181 = vector.extract_strided_slice %43 {offsets = [6, 0], sizes = [2, 512], strides = [1, 1]} : vector<16x512xf32> to vector<2x512xf32>
    %c0_61 = arith.constant 0 : index
    %c0_62 = arith.constant 0 : index
    %182 = vector.load %arg9[%c0_61, %c0_62] : memref<128x512xbf16, #tpu.memory_space<vmem>>, vector<128x512xbf16>
    %cst_63 = arith.constant dense<0.000000e+00> : vector<2x512xf32>
    %183 = tpu.matmul %157, %182, %cst_63 {dimension_numbers = #tpu.dot_dimension_numbers<[1], [0], [0], [1], [0, 0, 1, 1], [], []>} : vector<2x128xbf16>, vector<128x512xbf16>, vector<2x512xf32> -> vector<2x512xf32>
    %184 = arith.addf %181, %183 : vector<2x512xf32>
    %185 = vector.extract_strided_slice %184 {offsets = [0, 0], sizes = [2, 384], strides = [1, 1]} : vector<2x512xf32> to vector<2x384xf32>
    %186 = arith.negf %185 : vector<2x384xf32>
    %187 = math.exp %186 : vector<2x384xf32>
    %cst_64 = arith.constant 1.000000e+00 : f32
    %188 = vector.broadcast %cst_64 : f32 to vector<2x384xf32>
    %189 = arith.addf %188, %187 : vector<2x384xf32>
    %190 = arith.divf %188, %189 : vector<2x384xf32>
    %191 = vector.extract_strided_slice %184 {offsets = [0, 384], sizes = [2, 128], strides = [1, 1]} : vector<2x512xf32> to vector<2x128xf32>
    %192 = math.tanh %191 : vector<2x128xf32>
    %193 = vector.extract_strided_slice %190 {offsets = [0, 0], sizes = [2, 128], strides = [1, 1]} : vector<2x384xf32> to vector<2x128xf32>
    %194 = vector.extract_strided_slice %190 {offsets = [0, 128], sizes = [2, 128], strides = [1, 1]} : vector<2x384xf32> to vector<2x128xf32>
    %195 = vector.extract_strided_slice %190 {offsets = [0, 256], sizes = [2, 128], strides = [1, 1]} : vector<2x384xf32> to vector<2x128xf32>
    %196 = arith.mulf %194, %154 : vector<2x128xf32>
    %197 = arith.mulf %193, %192 : vector<2x128xf32>
    %198 = arith.addf %196, %197 : vector<2x128xf32>
    %199 = math.tanh %198 : vector<2x128xf32>
    %200 = arith.mulf %195, %199 : vector<2x128xf32>
    %201 = arith.truncf %200 : vector<2x128xf32> to vector<2x128xbf16>
    %c0_65 = arith.constant 0 : index
    %c0_66 = arith.constant 0 : index
    %202 = vector.load %arg10[%c0_65, %c0_66] : memref<128x512xbf16, #tpu.memory_space<vmem>>, vector<128x512xbf16>
    %cst_67 = arith.constant dense<0.000000e+00> : vector<2x512xf32>
    %203 = tpu.matmul %201, %202, %cst_67 {dimension_numbers = #tpu.dot_dimension_numbers<[1], [0], [0], [1], [0, 0, 1, 1], [], []>} : vector<2x128xbf16>, vector<128x512xbf16>, vector<2x512xf32> -> vector<2x512xf32>
    %204 = arith.addf %203, %180 : vector<2x512xf32>
    %205 = vector.extract_strided_slice %204 {offsets = [0, 0], sizes = [2, 384], strides = [1, 1]} : vector<2x512xf32> to vector<2x384xf32>
    %206 = arith.negf %205 : vector<2x384xf32>
    %207 = math.exp %206 : vector<2x384xf32>
    %cst_68 = arith.constant 1.000000e+00 : f32
    %208 = vector.broadcast %cst_68 : f32 to vector<2x384xf32>
    %209 = arith.addf %208, %207 : vector<2x384xf32>
    %210 = arith.divf %208, %209 : vector<2x384xf32>
    %211 = vector.extract_strided_slice %204 {offsets = [0, 384], sizes = [2, 128], strides = [1, 1]} : vector<2x512xf32> to vector<2x128xf32>
    %212 = math.tanh %211 : vector<2x128xf32>
    %213 = vector.extract_strided_slice %210 {offsets = [0, 0], sizes = [2, 128], strides = [1, 1]} : vector<2x384xf32> to vector<2x128xf32>
    %214 = vector.extract_strided_slice %210 {offsets = [0, 128], sizes = [2, 128], strides = [1, 1]} : vector<2x384xf32> to vector<2x128xf32>
    %215 = vector.extract_strided_slice %210 {offsets = [0, 256], sizes = [2, 128], strides = [1, 1]} : vector<2x384xf32> to vector<2x128xf32>
    %216 = arith.mulf %214, %174 : vector<2x128xf32>
    %217 = arith.mulf %213, %212 : vector<2x128xf32>
    %218 = arith.addf %216, %217 : vector<2x128xf32>
    %219 = math.tanh %218 : vector<2x128xf32>
    %220 = arith.mulf %215, %219 : vector<2x128xf32>
    %221 = arith.truncf %220 : vector<2x128xf32> to vector<2x128xbf16>
    %c0_69 = arith.constant 0 : index
    %c0_70 = arith.constant 0 : index
    %222 = vector.load %arg11[%c0_69, %c0_70] : memref<128x512xbf16, #tpu.memory_space<vmem>>, vector<128x512xbf16>
    %cst_71 = arith.constant dense<0.000000e+00> : vector<2x512xf32>
    %223 = tpu.matmul %221, %222, %cst_71 {dimension_numbers = #tpu.dot_dimension_numbers<[1], [0], [0], [1], [0, 0, 1, 1], [], []>} : vector<2x128xbf16>, vector<128x512xbf16>, vector<2x512xf32> -> vector<2x512xf32>
    %224 = arith.addf %223, %46 : vector<2x512xf32>
    %225 = vector.extract_strided_slice %43 {offsets = [8, 0], sizes = [2, 512], strides = [1, 1]} : vector<16x512xf32> to vector<2x512xf32>
    %c0_72 = arith.constant 0 : index
    %c0_73 = arith.constant 0 : index
    %226 = vector.load %arg9[%c0_72, %c0_73] : memref<128x512xbf16, #tpu.memory_space<vmem>>, vector<128x512xbf16>
    %cst_74 = arith.constant dense<0.000000e+00> : vector<2x512xf32>
    %227 = tpu.matmul %201, %226, %cst_74 {dimension_numbers = #tpu.dot_dimension_numbers<[1], [0], [0], [1], [0, 0, 1, 1], [], []>} : vector<2x128xbf16>, vector<128x512xbf16>, vector<2x512xf32> -> vector<2x512xf32>
    %228 = arith.addf %225, %227 : vector<2x512xf32>
    %229 = vector.extract_strided_slice %228 {offsets = [0, 0], sizes = [2, 384], strides = [1, 1]} : vector<2x512xf32> to vector<2x384xf32>
    %230 = arith.negf %229 : vector<2x384xf32>
    %231 = math.exp %230 : vector<2x384xf32>
    %cst_75 = arith.constant 1.000000e+00 : f32
    %232 = vector.broadcast %cst_75 : f32 to vector<2x384xf32>
    %233 = arith.addf %232, %231 : vector<2x384xf32>
    %234 = arith.divf %232, %233 : vector<2x384xf32>
    %235 = vector.extract_strided_slice %228 {offsets = [0, 384], sizes = [2, 128], strides = [1, 1]} : vector<2x512xf32> to vector<2x128xf32>
    %236 = math.tanh %235 : vector<2x128xf32>
    %237 = vector.extract_strided_slice %234 {offsets = [0, 0], sizes = [2, 128], strides = [1, 1]} : vector<2x384xf32> to vector<2x128xf32>
    %238 = vector.extract_strided_slice %234 {offsets = [0, 128], sizes = [2, 128], strides = [1, 1]} : vector<2x384xf32> to vector<2x128xf32>
    %239 = vector.extract_strided_slice %234 {offsets = [0, 256], sizes = [2, 128], strides = [1, 1]} : vector<2x384xf32> to vector<2x128xf32>
    %240 = arith.mulf %238, %198 : vector<2x128xf32>
    %241 = arith.mulf %237, %236 : vector<2x128xf32>
    %242 = arith.addf %240, %241 : vector<2x128xf32>
    %243 = math.tanh %242 : vector<2x128xf32>
    %244 = arith.mulf %239, %243 : vector<2x128xf32>
    %245 = arith.truncf %244 : vector<2x128xf32> to vector<2x128xbf16>
    %c0_76 = arith.constant 0 : index
    %c0_77 = arith.constant 0 : index
    %246 = vector.load %arg10[%c0_76, %c0_77] : memref<128x512xbf16, #tpu.memory_space<vmem>>, vector<128x512xbf16>
    %cst_78 = arith.constant dense<0.000000e+00> : vector<2x512xf32>
    %247 = tpu.matmul %245, %246, %cst_78 {dimension_numbers = #tpu.dot_dimension_numbers<[1], [0], [0], [1], [0, 0, 1, 1], [], []>} : vector<2x128xbf16>, vector<128x512xbf16>, vector<2x512xf32> -> vector<2x512xf32>
    %248 = arith.addf %247, %224 : vector<2x512xf32>
    %249 = vector.extract_strided_slice %248 {offsets = [0, 0], sizes = [2, 384], strides = [1, 1]} : vector<2x512xf32> to vector<2x384xf32>
    %250 = arith.negf %249 : vector<2x384xf32>
    %251 = math.exp %250 : vector<2x384xf32>
    %cst_79 = arith.constant 1.000000e+00 : f32
    %252 = vector.broadcast %cst_79 : f32 to vector<2x384xf32>
    %253 = arith.addf %252, %251 : vector<2x384xf32>
    %254 = arith.divf %252, %253 : vector<2x384xf32>
    %255 = vector.extract_strided_slice %248 {offsets = [0, 384], sizes = [2, 128], strides = [1, 1]} : vector<2x512xf32> to vector<2x128xf32>
    %256 = math.tanh %255 : vector<2x128xf32>
    %257 = vector.extract_strided_slice %254 {offsets = [0, 0], sizes = [2, 128], strides = [1, 1]} : vector<2x384xf32> to vector<2x128xf32>
    %258 = vector.extract_strided_slice %254 {offsets = [0, 128], sizes = [2, 128], strides = [1, 1]} : vector<2x384xf32> to vector<2x128xf32>
    %259 = vector.extract_strided_slice %254 {offsets = [0, 256], sizes = [2, 128], strides = [1, 1]} : vector<2x384xf32> to vector<2x128xf32>
    %260 = arith.mulf %258, %218 : vector<2x128xf32>
    %261 = arith.mulf %257, %256 : vector<2x128xf32>
    %262 = arith.addf %260, %261 : vector<2x128xf32>
    %263 = math.tanh %262 : vector<2x128xf32>
    %264 = arith.mulf %259, %263 : vector<2x128xf32>
    %265 = arith.truncf %264 : vector<2x128xf32> to vector<2x128xbf16>
    %c0_80 = arith.constant 0 : index
    %c0_81 = arith.constant 0 : index
    %266 = vector.load %arg11[%c0_80, %c0_81] : memref<128x512xbf16, #tpu.memory_space<vmem>>, vector<128x512xbf16>
    %cst_82 = arith.constant dense<0.000000e+00> : vector<2x512xf32>
    %267 = tpu.matmul %265, %266, %cst_82 {dimension_numbers = #tpu.dot_dimension_numbers<[1], [0], [0], [1], [0, 0, 1, 1], [], []>} : vector<2x128xbf16>, vector<128x512xbf16>, vector<2x512xf32> -> vector<2x512xf32>
    %268 = arith.addf %267, %46 : vector<2x512xf32>
    %269 = vector.extract_strided_slice %43 {offsets = [10, 0], sizes = [2, 512], strides = [1, 1]} : vector<16x512xf32> to vector<2x512xf32>
    %c0_83 = arith.constant 0 : index
    %c0_84 = arith.constant 0 : index
    %270 = vector.load %arg9[%c0_83, %c0_84] : memref<128x512xbf16, #tpu.memory_space<vmem>>, vector<128x512xbf16>
    %cst_85 = arith.constant dense<0.000000e+00> : vector<2x512xf32>
    %271 = tpu.matmul %245, %270, %cst_85 {dimension_numbers = #tpu.dot_dimension_numbers<[1], [0], [0], [1], [0, 0, 1, 1], [], []>} : vector<2x128xbf16>, vector<128x512xbf16>, vector<2x512xf32> -> vector<2x512xf32>
    %272 = arith.addf %269, %271 : vector<2x512xf32>
    %273 = vector.extract_strided_slice %272 {offsets = [0, 0], sizes = [2, 384], strides = [1, 1]} : vector<2x512xf32> to vector<2x384xf32>
    %274 = arith.negf %273 : vector<2x384xf32>
    %275 = math.exp %274 : vector<2x384xf32>
    %cst_86 = arith.constant 1.000000e+00 : f32
    %276 = vector.broadcast %cst_86 : f32 to vector<2x384xf32>
    %277 = arith.addf %276, %275 : vector<2x384xf32>
    %278 = arith.divf %276, %277 : vector<2x384xf32>
    %279 = vector.extract_strided_slice %272 {offsets = [0, 384], sizes = [2, 128], strides = [1, 1]} : vector<2x512xf32> to vector<2x128xf32>
    %280 = math.tanh %279 : vector<2x128xf32>
    %281 = vector.extract_strided_slice %278 {offsets = [0, 0], sizes = [2, 128], strides = [1, 1]} : vector<2x384xf32> to vector<2x128xf32>
    %282 = vector.extract_strided_slice %278 {offsets = [0, 128], sizes = [2, 128], strides = [1, 1]} : vector<2x384xf32> to vector<2x128xf32>
    %283 = vector.extract_strided_slice %278 {offsets = [0, 256], sizes = [2, 128], strides = [1, 1]} : vector<2x384xf32> to vector<2x128xf32>
    %284 = arith.mulf %282, %242 : vector<2x128xf32>
    %285 = arith.mulf %281, %280 : vector<2x128xf32>
    %286 = arith.addf %284, %285 : vector<2x128xf32>
    %287 = math.tanh %286 : vector<2x128xf32>
    %288 = arith.mulf %283, %287 : vector<2x128xf32>
    %289 = arith.truncf %288 : vector<2x128xf32> to vector<2x128xbf16>
    %c0_87 = arith.constant 0 : index
    %c0_88 = arith.constant 0 : index
    %290 = vector.load %arg10[%c0_87, %c0_88] : memref<128x512xbf16, #tpu.memory_space<vmem>>, vector<128x512xbf16>
    %cst_89 = arith.constant dense<0.000000e+00> : vector<2x512xf32>
    %291 = tpu.matmul %289, %290, %cst_89 {dimension_numbers = #tpu.dot_dimension_numbers<[1], [0], [0], [1], [0, 0, 1, 1], [], []>} : vector<2x128xbf16>, vector<128x512xbf16>, vector<2x512xf32> -> vector<2x512xf32>
    %292 = arith.addf %291, %268 : vector<2x512xf32>
    %293 = vector.extract_strided_slice %292 {offsets = [0, 0], sizes = [2, 384], strides = [1, 1]} : vector<2x512xf32> to vector<2x384xf32>
    %294 = arith.negf %293 : vector<2x384xf32>
    %295 = math.exp %294 : vector<2x384xf32>
    %cst_90 = arith.constant 1.000000e+00 : f32
    %296 = vector.broadcast %cst_90 : f32 to vector<2x384xf32>
    %297 = arith.addf %296, %295 : vector<2x384xf32>
    %298 = arith.divf %296, %297 : vector<2x384xf32>
    %299 = vector.extract_strided_slice %292 {offsets = [0, 384], sizes = [2, 128], strides = [1, 1]} : vector<2x512xf32> to vector<2x128xf32>
    %300 = math.tanh %299 : vector<2x128xf32>
    %301 = vector.extract_strided_slice %298 {offsets = [0, 0], sizes = [2, 128], strides = [1, 1]} : vector<2x384xf32> to vector<2x128xf32>
    %302 = vector.extract_strided_slice %298 {offsets = [0, 128], sizes = [2, 128], strides = [1, 1]} : vector<2x384xf32> to vector<2x128xf32>
    %303 = vector.extract_strided_slice %298 {offsets = [0, 256], sizes = [2, 128], strides = [1, 1]} : vector<2x384xf32> to vector<2x128xf32>
    %304 = arith.mulf %302, %262 : vector<2x128xf32>
    %305 = arith.mulf %301, %300 : vector<2x128xf32>
    %306 = arith.addf %304, %305 : vector<2x128xf32>
    %307 = math.tanh %306 : vector<2x128xf32>
    %308 = arith.mulf %303, %307 : vector<2x128xf32>
    %309 = arith.truncf %308 : vector<2x128xf32> to vector<2x128xbf16>
    %c0_91 = arith.constant 0 : index
    %c0_92 = arith.constant 0 : index
    %310 = vector.load %arg11[%c0_91, %c0_92] : memref<128x512xbf16, #tpu.memory_space<vmem>>, vector<128x512xbf16>
    %cst_93 = arith.constant dense<0.000000e+00> : vector<2x512xf32>
    %311 = tpu.matmul %309, %310, %cst_93 {dimension_numbers = #tpu.dot_dimension_numbers<[1], [0], [0], [1], [0, 0, 1, 1], [], []>} : vector<2x128xbf16>, vector<128x512xbf16>, vector<2x512xf32> -> vector<2x512xf32>
    %312 = arith.addf %311, %46 : vector<2x512xf32>
    %313 = vector.extract_strided_slice %43 {offsets = [12, 0], sizes = [2, 512], strides = [1, 1]} : vector<16x512xf32> to vector<2x512xf32>
    %c0_94 = arith.constant 0 : index
    %c0_95 = arith.constant 0 : index
    %314 = vector.load %arg9[%c0_94, %c0_95] : memref<128x512xbf16, #tpu.memory_space<vmem>>, vector<128x512xbf16>
    %cst_96 = arith.constant dense<0.000000e+00> : vector<2x512xf32>
    %315 = tpu.matmul %289, %314, %cst_96 {dimension_numbers = #tpu.dot_dimension_numbers<[1], [0], [0], [1], [0, 0, 1, 1], [], []>} : vector<2x128xbf16>, vector<128x512xbf16>, vector<2x512xf32> -> vector<2x512xf32>
    %316 = arith.addf %313, %315 : vector<2x512xf32>
    %317 = vector.extract_strided_slice %316 {offsets = [0, 0], sizes = [2, 384], strides = [1, 1]} : vector<2x512xf32> to vector<2x384xf32>
    %318 = arith.negf %317 : vector<2x384xf32>
    %319 = math.exp %318 : vector<2x384xf32>
    %cst_97 = arith.constant 1.000000e+00 : f32
    %320 = vector.broadcast %cst_97 : f32 to vector<2x384xf32>
    %321 = arith.addf %320, %319 : vector<2x384xf32>
    %322 = arith.divf %320, %321 : vector<2x384xf32>
    %323 = vector.extract_strided_slice %316 {offsets = [0, 384], sizes = [2, 128], strides = [1, 1]} : vector<2x512xf32> to vector<2x128xf32>
    %324 = math.tanh %323 : vector<2x128xf32>
    %325 = vector.extract_strided_slice %322 {offsets = [0, 0], sizes = [2, 128], strides = [1, 1]} : vector<2x384xf32> to vector<2x128xf32>
    %326 = vector.extract_strided_slice %322 {offsets = [0, 128], sizes = [2, 128], strides = [1, 1]} : vector<2x384xf32> to vector<2x128xf32>
    %327 = vector.extract_strided_slice %322 {offsets = [0, 256], sizes = [2, 128], strides = [1, 1]} : vector<2x384xf32> to vector<2x128xf32>
    %328 = arith.mulf %326, %286 : vector<2x128xf32>
    %329 = arith.mulf %325, %324 : vector<2x128xf32>
    %330 = arith.addf %328, %329 : vector<2x128xf32>
    %331 = math.tanh %330 : vector<2x128xf32>
    %332 = arith.mulf %327, %331 : vector<2x128xf32>
    %333 = arith.truncf %332 : vector<2x128xf32> to vector<2x128xbf16>
    %c0_98 = arith.constant 0 : index
    %c0_99 = arith.constant 0 : index
    %334 = vector.load %arg10[%c0_98, %c0_99] : memref<128x512xbf16, #tpu.memory_space<vmem>>, vector<128x512xbf16>
    %cst_100 = arith.constant dense<0.000000e+00> : vector<2x512xf32>
    %335 = tpu.matmul %333, %334, %cst_100 {dimension_numbers = #tpu.dot_dimension_numbers<[1], [0], [0], [1], [0, 0, 1, 1], [], []>} : vector<2x128xbf16>, vector<128x512xbf16>, vector<2x512xf32> -> vector<2x512xf32>
    %336 = arith.addf %335, %312 : vector<2x512xf32>
    %337 = vector.extract_strided_slice %336 {offsets = [0, 0], sizes = [2, 384], strides = [1, 1]} : vector<2x512xf32> to vector<2x384xf32>
    %338 = arith.negf %337 : vector<2x384xf32>
    %339 = math.exp %338 : vector<2x384xf32>
    %cst_101 = arith.constant 1.000000e+00 : f32
    %340 = vector.broadcast %cst_101 : f32 to vector<2x384xf32>
    %341 = arith.addf %340, %339 : vector<2x384xf32>
    %342 = arith.divf %340, %341 : vector<2x384xf32>
    %343 = vector.extract_strided_slice %336 {offsets = [0, 384], sizes = [2, 128], strides = [1, 1]} : vector<2x512xf32> to vector<2x128xf32>
    %344 = math.tanh %343 : vector<2x128xf32>
    %345 = vector.extract_strided_slice %342 {offsets = [0, 0], sizes = [2, 128], strides = [1, 1]} : vector<2x384xf32> to vector<2x128xf32>
    %346 = vector.extract_strided_slice %342 {offsets = [0, 128], sizes = [2, 128], strides = [1, 1]} : vector<2x384xf32> to vector<2x128xf32>
    %347 = vector.extract_strided_slice %342 {offsets = [0, 256], sizes = [2, 128], strides = [1, 1]} : vector<2x384xf32> to vector<2x128xf32>
    %348 = arith.mulf %346, %306 : vector<2x128xf32>
    %349 = arith.mulf %345, %344 : vector<2x128xf32>
    %350 = arith.addf %348, %349 : vector<2x128xf32>
    %351 = math.tanh %350 : vector<2x128xf32>
    %352 = arith.mulf %347, %351 : vector<2x128xf32>
    %353 = arith.truncf %352 : vector<2x128xf32> to vector<2x128xbf16>
    %c0_102 = arith.constant 0 : index
    %c0_103 = arith.constant 0 : index
    %354 = vector.load %arg11[%c0_102, %c0_103] : memref<128x512xbf16, #tpu.memory_space<vmem>>, vector<128x512xbf16>
    %cst_104 = arith.constant dense<0.000000e+00> : vector<2x512xf32>
    %355 = tpu.matmul %353, %354, %cst_104 {dimension_numbers = #tpu.dot_dimension_numbers<[1], [0], [0], [1], [0, 0, 1, 1], [], []>} : vector<2x128xbf16>, vector<128x512xbf16>, vector<2x512xf32> -> vector<2x512xf32>
    %356 = arith.addf %355, %46 : vector<2x512xf32>
    %357 = vector.extract_strided_slice %43 {offsets = [14, 0], sizes = [2, 512], strides = [1, 1]} : vector<16x512xf32> to vector<2x512xf32>
    %c0_105 = arith.constant 0 : index
    %c0_106 = arith.constant 0 : index
    %358 = vector.load %arg9[%c0_105, %c0_106] : memref<128x512xbf16, #tpu.memory_space<vmem>>, vector<128x512xbf16>
    %cst_107 = arith.constant dense<0.000000e+00> : vector<2x512xf32>
    %359 = tpu.matmul %333, %358, %cst_107 {dimension_numbers = #tpu.dot_dimension_numbers<[1], [0], [0], [1], [0, 0, 1, 1], [], []>} : vector<2x128xbf16>, vector<128x512xbf16>, vector<2x512xf32> -> vector<2x512xf32>
    %360 = arith.addf %357, %359 : vector<2x512xf32>
    %361 = vector.extract_strided_slice %360 {offsets = [0, 0], sizes = [2, 384], strides = [1, 1]} : vector<2x512xf32> to vector<2x384xf32>
    %362 = arith.negf %361 : vector<2x384xf32>
    %363 = math.exp %362 : vector<2x384xf32>
    %cst_108 = arith.constant 1.000000e+00 : f32
    %364 = vector.broadcast %cst_108 : f32 to vector<2x384xf32>
    %365 = arith.addf %364, %363 : vector<2x384xf32>
    %366 = arith.divf %364, %365 : vector<2x384xf32>
    %367 = vector.extract_strided_slice %360 {offsets = [0, 384], sizes = [2, 128], strides = [1, 1]} : vector<2x512xf32> to vector<2x128xf32>
    %368 = math.tanh %367 : vector<2x128xf32>
    %369 = vector.extract_strided_slice %366 {offsets = [0, 0], sizes = [2, 128], strides = [1, 1]} : vector<2x384xf32> to vector<2x128xf32>
    %370 = vector.extract_strided_slice %366 {offsets = [0, 128], sizes = [2, 128], strides = [1, 1]} : vector<2x384xf32> to vector<2x128xf32>
    %371 = vector.extract_strided_slice %366 {offsets = [0, 256], sizes = [2, 128], strides = [1, 1]} : vector<2x384xf32> to vector<2x128xf32>
    %372 = arith.mulf %370, %330 : vector<2x128xf32>
    %373 = arith.mulf %369, %368 : vector<2x128xf32>
    %374 = arith.addf %372, %373 : vector<2x128xf32>
    %375 = math.tanh %374 : vector<2x128xf32>
    %376 = arith.mulf %371, %375 : vector<2x128xf32>
    %377 = arith.truncf %376 : vector<2x128xf32> to vector<2x128xbf16>
    %c0_109 = arith.constant 0 : index
    %c0_110 = arith.constant 0 : index
    %378 = vector.load %arg10[%c0_109, %c0_110] : memref<128x512xbf16, #tpu.memory_space<vmem>>, vector<128x512xbf16>
    %cst_111 = arith.constant dense<0.000000e+00> : vector<2x512xf32>
    %379 = tpu.matmul %377, %378, %cst_111 {dimension_numbers = #tpu.dot_dimension_numbers<[1], [0], [0], [1], [0, 0, 1, 1], [], []>} : vector<2x128xbf16>, vector<128x512xbf16>, vector<2x512xf32> -> vector<2x512xf32>
    %380 = arith.addf %379, %356 : vector<2x512xf32>
    %381 = vector.extract_strided_slice %380 {offsets = [0, 0], sizes = [2, 384], strides = [1, 1]} : vector<2x512xf32> to vector<2x384xf32>
    %382 = arith.negf %381 : vector<2x384xf32>
    %383 = math.exp %382 : vector<2x384xf32>
    %cst_112 = arith.constant 1.000000e+00 : f32
    %384 = vector.broadcast %cst_112 : f32 to vector<2x384xf32>
    %385 = arith.addf %384, %383 : vector<2x384xf32>
    %386 = arith.divf %384, %385 : vector<2x384xf32>
    %387 = vector.extract_strided_slice %380 {offsets = [0, 384], sizes = [2, 128], strides = [1, 1]} : vector<2x512xf32> to vector<2x128xf32>
    %388 = math.tanh %387 : vector<2x128xf32>
    %389 = vector.extract_strided_slice %386 {offsets = [0, 0], sizes = [2, 128], strides = [1, 1]} : vector<2x384xf32> to vector<2x128xf32>
    %390 = vector.extract_strided_slice %386 {offsets = [0, 128], sizes = [2, 128], strides = [1, 1]} : vector<2x384xf32> to vector<2x128xf32>
    %391 = vector.extract_strided_slice %386 {offsets = [0, 256], sizes = [2, 128], strides = [1, 1]} : vector<2x384xf32> to vector<2x128xf32>
    %392 = arith.mulf %390, %350 : vector<2x128xf32>
    %393 = arith.mulf %389, %388 : vector<2x128xf32>
    %394 = arith.addf %392, %393 : vector<2x128xf32>
    %395 = math.tanh %394 : vector<2x128xf32>
    %396 = arith.mulf %391, %395 : vector<2x128xf32>
    %397 = tpu.concatenate %88, %132, %176, %220, %264, %308, %352, %396 in 0 : vector<2x128xf32>, vector<2x128xf32>, vector<2x128xf32>, vector<2x128xf32>, vector<2x128xf32>, vector<2x128xf32>, vector<2x128xf32>, vector<2x128xf32> -> vector<16x128xf32>
    %398 = arith.truncf %397 : vector<16x128xf32> to vector<16x128xbf16>
    %c0_113 = arith.constant 0 : index
    %c0_114 = arith.constant 0 : index
    %399 = vector.load %arg13[%c0_113, %c0_114] : memref<128x128xbf16, #tpu.memory_space<vmem>>, vector<128x128xbf16>
    %cst_115 = arith.constant dense<0.000000e+00> : vector<16x128xf32>
    %400 = tpu.matmul %398, %399, %cst_115 {dimension_numbers = #tpu.dot_dimension_numbers<[1], [0], [0], [1], [0, 0, 1, 1], [], []>} : vector<16x128xbf16>, vector<128x128xbf16>, vector<16x128xf32> -> vector<16x128xf32>
    %c0_116 = arith.constant 0 : index
    %c0_117 = arith.constant 0 : index
    %401 = vector.load %arg14[%c0_116, %c0_117] : memref<1x128xf32, #tpu.memory_space<vmem>>, vector<1x128xf32>
    %402 = vector.broadcast %401 : vector<1x128xf32> to vector<16x128xf32>
    %403 = arith.addf %400, %402 : vector<16x128xf32>
    %c0_118 = arith.constant 0 : index
    %c0_119 = arith.constant 0 : index
    %404 = vector.load %arg15[%c0_118, %c0_119] : memref<16x128xf32, #tpu.memory_space<vmem>>, vector<16x128xf32>
    tpu.vector_store %arg15[%c0_118, %c0_119], %403 {strides = array<i32>} : memref<16x128xf32, #tpu.memory_space<vmem>>, vector<16x128xf32>,
    %c0_120 = arith.constant 0 : index
    %c0_121 = arith.constant 0 : index
    %c0_122 = arith.constant 0 : index
    %405 = vector.load %arg16[%c0_120, %c0_121, %c0_122] : memref<2x2x128xf32, #tpu.memory_space<vmem>>, vector<1x2x128xf32>
    %406 = vector.shape_cast %405 : vector<1x2x128xf32> to vector<2x128xf32>
    %407 = vector.shape_cast %376 : vector<2x128xf32> to vector<1x2x128xf32>
    tpu.vector_store %arg16[%c0_120, %c0_121, %c0_122], %407 {strides = array<i32>} : memref<2x2x128xf32, #tpu.memory_space<vmem>>, vector<1x2x128xf32>,
    %c1 = arith.constant 1 : index
    %c0_123 = arith.constant 0 : index
    %c0_124 = arith.constant 0 : index
    %408 = vector.load %arg16[%c1, %c0_123, %c0_124] : memref<2x2x128xf32, #tpu.memory_space<vmem>>, vector<1x2x128xf32>
    %409 = vector.shape_cast %408 : vector<1x2x128xf32> to vector<2x128xf32>
    %410 = vector.shape_cast %396 : vector<2x128xf32> to vector<1x2x128xf32>
    tpu.vector_store %arg16[%c1, %c0_123, %c0_124], %410 {strides = array<i32>} : memref<2x2x128xf32, #tpu.memory_space<vmem>>, vector<1x2x128xf32>,
    %c0_125 = arith.constant 0 : index
    %c0_126 = arith.constant 0 : index
    %c0_127 = arith.constant 0 : index
    %411 = vector.load %arg17[%c0_125, %c0_126, %c0_127] : memref<2x2x128xf32, #tpu.memory_space<vmem>>, vector<1x2x128xf32>
    %412 = vector.shape_cast %411 : vector<1x2x128xf32> to vector<2x128xf32>
    %413 = vector.shape_cast %374 : vector<2x128xf32> to vector<1x2x128xf32>
    tpu.vector_store %arg17[%c0_125, %c0_126, %c0_127], %413 {strides = array<i32>} : memref<2x2x128xf32, #tpu.memory_space<vmem>>, vector<1x2x128xf32>,
    %c1_128 = arith.constant 1 : index
    %c0_129 = arith.constant 0 : index
    %c0_130 = arith.constant 0 : index
    %414 = vector.load %arg17[%c1_128, %c0_129, %c0_130] : memref<2x2x128xf32, #tpu.memory_space<vmem>>, vector<1x2x128xf32>
    %415 = vector.shape_cast %414 : vector<1x2x128xf32> to vector<2x128xf32>
    %416 = vector.shape_cast %394 : vector<2x128xf32> to vector<1x2x128xf32>
    tpu.vector_store %arg17[%c1_128, %c0_129, %c0_130], %416 {strides = array<i32>} : memref<2x2x128xf32, #tpu.memory_space<vmem>>, vector<1x2x128xf32>,
    return
  }
}

</mosaic_0001>

<bundles_post_ra>
// kernel: lstm_policy_forward.1
= control target key start
LH: loop header
LB: loop body
LE: loop exit
PB: predicated region body
PF: predicated region fallthrough
CT: control target
= control target key end

     0   :  { %s6785_s0 = inlined_call_operand.hbm [shape: f32[16,64], index: 0, kind: input, shape index: {}]   ;;  %s6786_s1 = inlined_call_operand.hbm [shape: f32[16,16], index: 1, kind: input, shape index: {}]   ;;  %s6787_s2 = inlined_call_operand.vmem [shape: bf16[64,32], index: 2, kind: input, shape index: {}]   ;;  %s6788_s3 = inlined_call_operand.vmem [shape: f32[1,32], index: 3, kind: input, shape index: {}]   ;;  %s6789_s4 = inlined_call_operand.hbm [shape: f32[1,32], index: 4, kind: input, shape index: {}]   ;;  %s6790_s5 = inlined_call_operand.hbm [shape: f32[1,32], index: 5, kind: input, shape index: {}]   ;;  %s6791_s6 = inlined_call_operand.vmem [shape: bf16[32,512], index: 6, kind: input, shape index: {}]   ;;  %s6792_s7 = inlined_call_operand.hbm [shape: bf16[16,512], index: 7, kind: input, shape index: {}]   ;;  %s6793_s8 = inlined_call_operand.vmem [shape: f32[1,512], index: 8, kind: input, shape index: {}]   ;;  %s6794_s9 = inlined_call_operand.hbm [shape: bf16[128,512], index: 9, kind: input, shape index: {}]   ;;  %s6795_s10 = inlined_call_operand.hbm [shape: bf16[128,512], index: 10, kind: input, shape index: {}]   ;;  %s6796_s11 = inlined_call_operand.hbm [shape: bf16[128,512], index: 11, kind: input, shape index: {}]   ;;  %s6797_s12 = inlined_call_operand.vmem [shape: f32[1,512], index: 12, kind: input, shape index: {}]   ;;  %s6798_s13 = inlined_call_operand.hbm [shape: bf16[128,128], index: 13, kind: input, shape index: {}]   ;;  %s6799_s14 = inlined_call_operand.hbm [shape: f32[1,128], index: 14, kind: input, shape index: {}]   ;;  %s6800_s15 = inlined_call_operand.vmem [shape: f32[16,128], index: 15, kind: output, shape index: {0}]   ;;  %s6801_s16 = inlined_call_operand.hbm [shape: f32[2,2,128], index: 16, kind: output, shape index: {1}]   ;;  %s6802_s17 = inlined_call_operand.hbm [shape: f32[2,2,128], index: 17, kind: output, shape index: {2}]  }
   0x1   :  { %7113 = sst [smem:[#allocation96_spill]] %s6785_s0 }
   0x2   :  { %7114 = sst [smem:[#allocation97_spill]] %s6786_s1 }
   0x3   :  { %23 = vsyncpa [#allocation3], 0 }
   0x4   :  { %24 = vsyncpa [#allocation6], 0 }
   0x5   :  { %25 = vsyncpa [#allocation9], 0 }
   0x6   :  { %26 = vsyncpa [#allocation12], 0 }
   0x7   :  { %27 = vsyncpa [#allocation15], 0 }
   0x8   :  { %28 = vsyncpa [#allocation18], 0 }
   0x9   :  { %29 = vsyncpa [#allocation4], 0 }
   0xa   :  { %30 = vsyncpa [#allocation21], 0  ;;  %s4950_s24 = smov [#allocation5]   ;;  %s4951_s26 = smov [#allocation8]  }
   0xb   :  { %s48_s25 = sshll.u32 %s4950_s24, 4  ;;  %s75_s27 = sshll.u32 %s4951_s26, 4  ;;  %s49_s25 = int_to_ptr.vmem [resolvable:$true] %s48_s25  ;;  %s76_s27 = int_to_ptr.vmem [resolvable:$true] %s75_s27 }
   0xc   :  { %s4702_s28 = scalar_lea.vmem %s49_s25, 256  ;;  %p4707_p1 = scmp.lt.s32.totalorder %s49_s25, %s49_s25 }
   0xd   :  { %p4703_p0 = scmp.ne.s32.totalorder %s49_s25, %s4702_s28  ;;  %p4708_p2 = scmp.lt.s32.totalorder %s4702_s28, %s4702_s28 }
   0xf   :  { %p4709_p3 = por %p4708_p2, %p4707_p1 }
  0x11   :  { %p4710_p4 = pnand %p4709_p3, %p4703_p0 }
  0x13   :  { %4713 = shalt.err (!%p4710_p4)
}
  0x14   :  { %s4952_s29 = smov 128   ;;  %s4953_s0 = smov 8  }
  0x15   :  { %s7115_s19 = sld [smem:[#allocation97_spill]]  ;;  %s4722_s1 = scalar_lea.vmem %s76_s27, 16 }
  0x16   :  { %p4723_p5 = scmp.ne.s32.totalorder %s76_s27, %s4722_s1  ;;  %s4726_s20 = scalar_lea.vmem %s76_s27, 32 }
  0x17   :  { %p4727_p6 = scmp.lt.s32.totalorder %s76_s27, %s76_s27  ;;  %p4728_p7 = scmp.lt.s32.totalorder %s4726_s20, %s4722_s1 }
  0x19   :  { %p4729_p8 = por %p4728_p7, %p4727_p6 }
  0x1b   :  { %54 = dma.hbm_to_vmem [thread:$0]  %s7115_s19, 256, %s49_s25, [#allocation6], %s4952_s29, %s4952_s29, %s4953_s0  }
  0x1c   :  { %p4730_p9 = pnand %p4729_p8, %p4723_p5 }
  0x1e   :  { %4733 = shalt.err (!%p4730_p9)
}
  0x1f   :  { %78 = dma.hbm_to_vmem [thread:$0]  %s6790_s5, 16, %s76_s27, [#allocation9]  }
  0x20   :  { %s4954_s23 = smov [#allocation11]   ;;  %s4955_s26 = smov [#allocation14]  }
  0x21   :  { %s100_s24 = sshll.u32 %s4954_s23, 4  ;;  %s124_s28 = sshll.u32 %s4955_s26, 4  ;;  %s101_s24 = int_to_ptr.vmem [resolvable:$true] %s100_s24  ;;  %s125_s28 = int_to_ptr.vmem [resolvable:$true] %s124_s28 }
  0x22   :  { %s4742_s30 = scalar_lea.vmem %s101_s24, 4096  ;;  %p4747_p11 = scmp.lt.s32.totalorder %s101_s24, %s101_s24 }
  0x23   :  { %p4743_p10 = scmp.ne.s32.totalorder %s101_s24, %s4742_s30  ;;  %p4748_p12 = scmp.lt.s32.totalorder %s4742_s30, %s4742_s30 }
  0x25   :  { %p4749_p13 = por %p4748_p12, %p4747_p11 }
  0x27   :  { %p4750_p0 = pnand %p4749_p13, %p4743_p10 }
  0x29   :  { %4753 = shalt.err (!%p4750_p0)
}
  0x2a   :  { %s4956_s25 = smov 256   ;;  %s4957_s18 = smov 16  }
  0x2b   :  { %106 = dma.hbm_to_vmem [thread:$0]  %s6794_s9, 4096, %s101_s24, [#allocation12], %s4956_s25, %s4956_s25, %s4957_s18  }
  0x2c   :  { %s4762_s27 = scalar_lea.vmem %s125_s28, 4096  ;;  %p4767_p2 = scmp.lt.s32.totalorder %s125_s28, %s125_s28 }
  0x2d   :  { %p4763_p1 = scmp.ne.s32.totalorder %s125_s28, %s4762_s27  ;;  %p4768_p3 = scmp.lt.s32.totalorder %s4762_s27, %s4762_s27 }
  0x2f   :  { %p4769_p4 = por %p4768_p3, %p4767_p2 }
  0x31   :  { %p4770_p5 = pnand %p4769_p4, %p4763_p1 }
  0x33   :  { %4773 = shalt.err (!%p4770_p5)
}
  0x34   :  { %130 = dma.hbm_to_vmem [thread:$0]  %s6796_s11, 4096, %s125_s28, [#allocation15], %s4956_s25, %s4956_s25, %s4957_s18  }
  0x35   :  { %s4958_s21 = smov [#allocation2]   ;;  %s4959_s23 = smov [#allocation7]  }
  0x36   :  { %s36_s22 = sshll.u32 %s4958_s21, 4  ;;  %s65_s26 = sshll.u32 %s4959_s23, 4  ;;  %s37_s22 = int_to_ptr.vmem [resolvable:$true] %s36_s22  ;;  %s66_s26 = int_to_ptr.vmem [resolvable:$true] %s65_s26 }
  0x37   :  { %s4782_s9 = scalar_lea.vmem %s37_s22, 256  ;;  %p4787_p7 = scmp.lt.s32.totalorder %s37_s22, %s37_s22 }
  0x38   :  { %p4783_p6 = scmp.ne.s32.totalorder %s37_s22, %s4782_s9  ;;  %p4788_p8 = scmp.lt.s32.totalorder %s4782_s9, %s4782_s9 }
  0x3a   :  { %p4789_p9 = por %p4788_p8, %p4787_p7 }
  0x3c   :  { %p4790_p10 = pnand %p4789_p9, %p4783_p6 }
  0x3e   :  { %4793 = shalt.err (!%p4790_p10)
}
  0x3f   :  { %s7116_s19 = sld [smem:[#allocation96_spill]]  ;;  %s4802_s11 = scalar_lea.vmem %s66_s26, 16 }
  0x40   :  { %p4803_p11 = scmp.ne.s32.totalorder %s66_s26, %s4802_s11  ;;  %s4806_s28 = scalar_lea.vmem %s66_s26, 32 }
  0x41   :  { %p4807_p12 = scmp.lt.s32.totalorder %s66_s26, %s66_s26  ;;  %p4808_p13 = scmp.lt.s32.totalorder %s4806_s28, %s4802_s11 }
  0x43   :  { %p4809_p0 = por %p4808_p13, %p4807_p12 }
  0x45   :  { %42 = dma.hbm_to_vmem [thread:$0]  %s7116_s19, 256, %s37_s22, [#allocation3], %s4952_s29, %s4952_s29, %s4953_s0  }
  0x46   :  { %p4810_p1 = pnand %p4809_p0, %p4803_p11 }
  0x48   :  { %4813 = shalt.err (!%p4810_p1)
}
  0x49   :  { %68 = dma.hbm_to_vmem [thread:$0]  %s6789_s4, 16, %s66_s26, [#allocation6]  }
  0x4a   :  { %s4960_s1 = smov [#allocation10]   ;;  %s4961_s21 = smov [#allocation13]  }
  0x4b   :  { %s86_s20 = sshll.u32 %s4960_s1, 4  ;;  %s112_s23 = sshll.u32 %s4961_s21, 4  ;;  %s87_s20 = int_to_ptr.vmem [resolvable:$true] %s86_s20  ;;  %s113_s23 = int_to_ptr.vmem [resolvable:$true] %s112_s23 }
  0x4c   :  { %s4822_s9 = scalar_lea.vmem %s87_s20, 512  ;;  %p4827_p3 = scmp.lt.s32.totalorder %s87_s20, %s87_s20 }
  0x4d   :  { %p4823_p2 = scmp.ne.s32.totalorder %s87_s20, %s4822_s9  ;;  %p4828_p4 = scmp.lt.s32.totalorder %s4822_s9, %s4822_s9 }
  0x4f   :  { %p4829_p5 = por %p4828_p4, %p4827_p3 }
  0x51   :  { %p4830_p6 = pnand %p4829_p5, %p4823_p2 }
  0x53   :  { %4833 = shalt.err (!%p4830_p6)
}
  0x54   :  { %92 = dma.hbm_to_vmem [thread:$0]  %s6792_s7, 512, %s87_s20, [#allocation9], %s4956_s25, %s4956_s25, %s4957_s18  }
  0x55   :  { %s4842_s4 = scalar_lea.vmem %s113_s23, 4096  ;;  %p4847_p8 = scmp.lt.s32.totalorder %s113_s23, %s113_s23 }
  0x56   :  { %p4843_p7 = scmp.ne.s32.totalorder %s113_s23, %s4842_s4  ;;  %p4848_p9 = scmp.lt.s32.totalorder %s4842_s4, %s4842_s4 }
  0x58   :  { %p4849_p10 = por %p4848_p9, %p4847_p8 }
  0x5a   :  { %p4850_p11 = pnand %p4849_p10, %p4843_p7 }
  0x5c   :  { %4853 = shalt.err (!%p4850_p11)
}
  0x5d   :  { %118 = dma.hbm_to_vmem [thread:$0]  %s6795_s10, 4096, %s113_s23, [#allocation12], %s4956_s25, %s4956_s25, %s4957_s18  }
  0x5e   :  { %s4962_s24 = smov [#allocation16]  }
  0x5f   :  { %s138_s30 = sshll.u32 %s4962_s24, 4  ;;  %s139_s30 = int_to_ptr.vmem [resolvable:$true] %s138_s30 }
  0x60   :  { %s4862_s19 = scalar_lea.vmem %s139_s30, 1024  ;;  %p4867_p13 = scmp.lt.s32.totalorder %s139_s30, %s139_s30 }
  0x61   :  { %p4863_p12 = scmp.ne.s32.totalorder %s139_s30, %s4862_s19  ;;  %p4868_p0 = scmp.lt.s32.totalorder %s4862_s19, %s4862_s19 }
  0x63   :  { %p4869_p1 = por %p4868_p0, %p4867_p13 }
  0x65   :  { %p4870_p2 = pnand %p4869_p1, %p4863_p12 }
  0x67   :  { %4873 = shalt.err (!%p4870_p2)
}
  0x68   :  { %s4963_s7 = smov 64   ;;  %s4964_s11 = smov 4  }
  0x69   :  { %144 = dma.hbm_to_vmem [thread:$0]  %s6798_s13, 1024, %s139_s30, [#allocation15], %s4963_s7, %s4963_s7, %s4964_s11  }
  0x6a   :  { %s4965_s27 = smov [#allocation17]  }
  0x6b   :  { %s151_s1 = sshll.u32 %s4965_s27, 4  ;;  %s152_s1 = int_to_ptr.vmem [resolvable:$true] %s151_s1 }
  0x6c   :  { %s4882_s10 = scalar_lea.vmem %s152_s1, 16  ;;  %s4886_s25 = scalar_lea.vmem %s152_s1, 32 }
  0x6d   :  { %p4883_p3 = scmp.ne.s32.totalorder %s152_s1, %s4882_s10  ;;  %p4887_p4 = scmp.lt.s32.totalorder %s152_s1, %s152_s1 }
  0x6e   :  { %p4888_p5 = scmp.lt.s32.totalorder %s4886_s25, %s4882_s10 }
  0x70   :  { %p4889_p6 = por %p4888_p5, %p4887_p4 }
  0x72   :  { %p4890_p7 = pnand %p4889_p6, %p4883_p3 }
  0x74   :  { %4893 = shalt.err (!%p4890_p7)
}
  0x75   :  { %154 = dma.hbm_to_vmem [thread:$0]  %s6799_s14, 16, %s152_s1, [#allocation18]  }
  0x76   :  { %4934 = dma.done.wait [#allocation3], 256  }
  0x77   :  { %4935 = vsyncadd [#allocation3], 4294967040 }
  0x78   :  { %4936 = dma.done.wait [#allocation6], 272  }
  0x79   :  { %4937 = vsyncadd [#allocation6], 4294967024 }
  0x7a   :  { %4938 = dma.done.wait [#allocation9], 528  }
  0x7b   :  { %4939 = vsyncadd [#allocation9], 4294966768 }
  0x7c   :  { %4940 = dma.done.wait [#allocation12], 8192  }
  0x7d   :  { %4941 = vsyncadd [#allocation12], 4294959104 }
  0x7e   :  { %4942 = dma.done.wait [#allocation15], 5120  }
  0x7f   :  { %4943 = vsyncadd [#allocation15], 4294962176 }
  0x80   :  { %4944 = dma.done.wait [#allocation18], 16  }
  0x81   :  { %4945 = vsyncadd [#allocation18], 4294967280  ;;  %v6803_v0 = vmov 0.0   ;;  %vm4967_vm0 = vmmov 0   ;;  %v4070_v1 = vld [vmem:[%s6787_s2 + $0x18] sm:$0xff]   ;;  %v4071_v2 = vld [vmem:[%s6787_s2 + $0x10] sm:$0xff]  }
  0x82   :  { %4015 = vmatprep.subr.bf16.mxu0 %v6803_v0  ;;  %4023 = vmatprep.mubr.msk.bf16.mxu0 %vm4967_vm0, %v6803_v0  ;;  %v4072_v3 = vld [vmem:[%s6787_s2 + $0x8] sm:$0xff]   ;;  %v4073_v4 = vld [vmem:[%s6787_s2] sm:$0xff]   ;;  %vm228_vm1 = vcmask 523264   ;;  %v332_v10 = vld [vmem:[#allocation5] sm:$0xff]  ;;  %v6805_v13 = vmov 0   ;;  %vm359_vm2 = vcmask 130048  }
  0x83   :  { %4016 = vmatpush3.bf16.msra.mxu0 %v4070_v1  ;;  %v186_v5 = vld [vmem:[#allocation2] sm:$0xff]  ;;  %v187_v6 = vld [vmem:[#allocation2 + $0x8] sm:$0xff]  ;;  %v333_v11 = vld [vmem:[#allocation5 + $0x8] sm:$0xff]  ;;  %524 = vmatprep.mubr.bf16.mxu1 %v6805_v13  ;;  %vm273_vm3 = vcmask 261120   ;;  %vm3652_vm4 = vcmask 1041408   ;;  %vm3654_vm5 = vcmask 1043456  }
  0x84   :  { %4017 = vmatprep.subr.bf16.mxu0 %v6803_v0  ;;  %v188_v7 = vpack.c.bf16 %v187_v6, %v186_v5  ;;  %v4076_v8 = vld [vmem:[#allocation10 + $0x4] ss:$16 sps:$4 sm:$0xff]   ;;  %v4074_v9 = vld [vmem:[#allocation10] ss:$16 sps:$4 sm:$0xff]   ;;  %v334_v12 = vpack.c.bf16 %v333_v11, %v332_v10  ;;  %v4079_v14 = vld [vmem:[#allocation10 + $0xc] ss:$16 sps:$4 sm:$0xff]  }
  0x85   :  { %v4077_v15 = vld [vmem:[#allocation10 + $0x8] ss:$16 sps:$4 sm:$0xff]   ;;  %v4080_v16 = vld [vmem:[%s6791_s6 + $0x24] ss:$16 sps:$4 sm:$0xff]   ;;  %v4082_v18 = vld [vmem:[%s6791_s6 + $0x28] ss:$16 sps:$4 sm:$0xff]  }
  0x86   :  { %v4084_v17 = vld [vmem:[%s6791_s6 + $0x2c] ss:$16 sps:$4 sm:$0xff]   ;;  %v4085_v19 = vld [vmem:[%s6791_s6 + $0x20] ss:$16 sps:$4 sm:$0xff]   ;;  %504 = vmatprep.subr.bf16.mxu1 %v4080_v16  ;;  %v4086_v20 = vld [vmem:[%s6791_s6 + $0x4] ss:$16 sps:$4 sm:$0xff]  }
  0x87   :  { %4018 = vmatpush3.bf16.msra.mxu0 %v4071_v2  ;;  %505 = vmatpush1.bf16.msra.mxu1 %v4085_v19  ;;  %v4090_v21 = vld [vmem:[%s6791_s6 + $0xc] ss:$16 sps:$4 sm:$0xff]   ;;  %v4088_v22 = vld [vmem:[%s6791_s6 + $0x8] ss:$16 sps:$4 sm:$0xff]   ;;  %v4091_v23 = vld [vmem:[%s6791_s6] ss:$16 sps:$4 sm:$0xff]  }
  0x88   :  { %4019 = vmatprep.subr.bf16.mxu0 %v6803_v0  ;;  %506 = vmatprep.subr.bf16.mxu1 %v4086_v20  ;;  %v5157_v24 = vld [vmem:[#allocation11 + $0xe4] ss:$16 sps:$4 sm:$0xff]   ;;  %v5159_v25 = vld [vmem:[#allocation11 + $0xec] ss:$16 sps:$4 sm:$0xff]   ;;  %v5170_v6 = vld [vmem:[#allocation11 + $0xe0] ss:$16 sps:$4 sm:$0xff]  }
  0x89   :  { %v3824_v26 = vld [vmem:[%s6788_s3] ss:$0 sm:$0xff]  ;;  %v3831_v62 = vld [vmem:[#allocation8] ss:$0 sm:$0xff]  ;;  %v5182_v11 = vld [vmem:[#allocation11 + $0xc0] ss:$16 sps:$4 sm:$0xff]  }
  0x8a   :  { %v3830_v59 = vld [vmem:[#allocation7] ss:$0 sm:$0xff]  ;;  %v5196_v16 = vld [vmem:[#allocation11 + $0xa0] ss:$16 sps:$4 sm:$0xff]   ;;  %vm3656_vm6 = vcmask 1045504  }
  0x8b   :  { %4020 = vmatpush3.bf16.msra.mxu0 %v4072_v3  ;;  %507 = vmatpush1.bf16.msra.mxu1 %v4091_v23  ;;  %v5176_v10 = vld [vmem:[#allocation11 + $0xcc] ss:$16 sps:$4 sm:$0xff]   ;;  %v5208_v20 = vld [vmem:[#allocation11 + $0x80] ss:$16 sps:$4 sm:$0xff]  }
  0x8c   :  { %4021 = vmatprep.subr.bf16.mxu0 %v6803_v0  ;;  %822 = vmatprep.subr.bf16.mxu1 %v5157_v24  ;;  %v5204_v19 = vld [vmem:[#allocation11 + $0x8c] ss:$16 sps:$4 sm:$0xff]   ;;  %v5356_v0 = vld [vmem:[#allocation13] ss:$16 sps:$4 sm:$0xff]  }
  0x8d   :  { %v5216_v23 = vld [vmem:[#allocation11 + $0x6c] ss:$16 sps:$4 sm:$0xff]   ;;  %7148 = vst [vmem:[#allocation61_spill] sm:$0xff] %v5356_v0 }
  0x8f   :  { %4022 = vmatpush3.bf16.msra.mxu0 %v4073_v4 }
  0x90   :  { %377 = vmatprep.subr.bf16.mxu0 %v4076_v8 }
  0x92   :  { %4024 = vmatmul.mubr.msk.bf16.vlgmr.msra.gmra.mxu0 %vm228_vm1, %v188_v7  ;;  %v5172_v7 = vld [vmem:[#allocation11 + $0xe8] ss:$16 sps:$4 sm:$0xff]  }
  0x93   :  { %378 = vmatpush1.bf16.msra.mxu0 %v4074_v9  ;;  %395 = vmatprep.mubr.bf16.mxu0 %v6805_v13  ;;  %v5174_v9 = vld [vmem:[#allocation11 + $0xc4] ss:$16 sps:$4 sm:$0xff]  }
  0x94   :  { %420 = vmatprep.subr.bf16.mxu0 %v4079_v14  ;;  %v5188_v14 = vld [vmem:[#allocation11 + $0xa4] ss:$16 sps:$4 sm:$0xff]  }
  0x9a   :  { %3836 = vmatmul.mubr.msk.bf16.vlgmr.msra.gmra.mxu0 %vm359_vm2, %v334_v12 }
  0x9b   :  { %438 = vmatprep.mubr.bf16.mxu0 %v6805_v13  ;;  %421 = vmatpush1.bf16.msra.mxu0 %v4077_v15  ;;  %v5190_v15 = vld [vmem:[#allocation11 + $0xac] ss:$16 sps:$4 sm:$0xff]  }
  0x9c   :  { %547 = vmatprep.subr.bf16.mxu0 %v4084_v17  ;;  %v5198_v17 = vld [vmem:[#allocation11 + $0xa8] ss:$16 sps:$4 sm:$0xff]  }
  0xa2   :  { %3837 = vmatmul.mubr.msk.bf16.vlgmr.msra.gmra.mxu0 %vm359_vm2, %v334_v12  ;;  %v5184_v12 = vld [vmem:[#allocation11 + $0xc8] ss:$16 sps:$4 sm:$0xff]  }
  0xa3   :  { %548 = vmatpush1.bf16.msra.mxu0 %v4082_v18  ;;  %567 = vmatprep.mubr.bf16.mxu0 %v6805_v13  ;;  %v5202_v18 = vld [vmem:[#allocation11 + $0x84] ss:$16 sps:$4 sm:$0xff]  }
  0xa4   :  { %549 = vmatprep.subr.bf16.mxu0 %v4090_v21  ;;  %v5210_v21 = vld [vmem:[#allocation11 + $0x88] ss:$16 sps:$4 sm:$0xff]  }
  0xa7   :  { %550 = vmatpush1.bf16.msra.mxu0 %v4088_v22  ;;  %v5214_v22 = vld [vmem:[#allocation11 + $0x64] ss:$16 sps:$4 sm:$0xff]  }
  0xa8   :  { %863 = vmatprep.subr.bf16.mxu0 %v5159_v25 }
 0x152   :  { %v266_v27 = vpop.f32.mrf.mxu0 }
 0x153   :  { %v267_v29 = vadd.f32 %v3824_v26, %v266_v27  ;;  %v5222_v27 = vld [vmem:[#allocation11 + $0x68] ss:$16 sps:$4 sm:$0xff]  }
 0x154   :  { %v4025_v28 = vpop.f32.mrf.mxu0 }
 0x155   :  { %v274_v33 = vsel %vm273_vm3, %v267_v29, 0.0  ;;  %v5226_v28 = vld [vmem:[#allocation11 + $0x44] ss:$16 sps:$4 sm:$0xff]  }
 0x156   :  { %v269_v30 = vpop.f32.mrf.mxu0 }
 0x157   :  { %v270_v31 = vadd.f32 %v3824_v26, %v269_v30  ;;  %v5220_v26 = vld [vmem:[#allocation11 + $0x60] ss:$16 sps:$4 sm:$0xff]  }
 0x158   :  { %v4026_v32 = vpop.f32.mrf.mxu0  ;;  %v5232_v30 = vld [vmem:[#allocation11 + $0x40] ss:$16 sps:$4 sm:$0xff]  }
 0x159   :  { %v275_v34 = vsel %vm273_vm3, %v270_v31, 0.0  ;;  %v5238_v32 = vld [vmem:[#allocation11 + $0x24] ss:$16 sps:$4 sm:$0xff]  }
 0x15a   :  { %v276_v35 = vadd.f32 %v275_v34, %v274_v33  ;;  %v5240_v33 = vld [vmem:[#allocation11 + $0x2c] ss:$16 sps:$4 sm:$0xff]   ;;  %v5244_v34 = vld [vmem:[#allocation11 + $0x20] ss:$16 sps:$4 sm:$0xff]  }
 0x15c   :  { %v277_v36 = vrot.slane %v276_v35, 4 }
 0x15e   :  { %v278_v37 = vadd.f32 %v277_v36, %v276_v35  ;;  %v5246_v35 = vld [vmem:[#allocation11 + $0x28] ss:$16 sps:$4 sm:$0xff]   ;;  %v5250_v36 = vld [vmem:[#allocation11 + $0x4] ss:$16 sps:$4 sm:$0xff]  }
 0x160   :  { %v279_v38 = vrot.slane %v278_v37, 2 }
 0x162   :  { %v280_v39 = vadd.f32 %v279_v38, %v278_v37  ;;  %v5252_v37 = vld [vmem:[#allocation11 + $0xc] ss:$16 sps:$4 sm:$0xff]   ;;  %v5256_v38 = vld [vmem:[#allocation11] ss:$16 sps:$4 sm:$0xff]  }
 0x164   :  { %v281_v40 = vrot.slane %v280_v39, 1 }
 0x166   :  { %v282_v41 = vadd.f32 %v281_v40, %v280_v39  ;;  %v5258_v39 = vld [vmem:[#allocation11 + $0x8] ss:$16 sps:$4 sm:$0xff]   ;;  %v5268_v40 = vld [vmem:[#allocation13 + $0xe4] ss:$16 sps:$4 sm:$0xff]  }
 0x167   :  { %7117 = vst [vmem:[#allocation30_spill] sm:$0xff] %v5258_v39  ;;  %7118 = vst [vmem:[#allocation31_spill] sm:$0xff] %v5268_v40 }
 0x168   :  { %v284_v42 = vmul.f32 0.0625, %v282_v41  ;;  %v5270_v41 = vld [vmem:[#allocation13 + $0xec] ss:$16 sps:$4 sm:$0xff]  }
 0x169   :  { %7119 = vst [vmem:[#allocation32_spill] sm:$0xff] %v5270_v41 }
 0x16a   :  { %v285_v43 = vsub.f32 %v267_v29, %v284_v42  ;;  %v286_v44 = vsub.f32 %v270_v31, %v284_v42  ;;  %v5228_v29 = vld [vmem:[#allocation11 + $0x4c] ss:$16 sps:$4 sm:$0xff]   ;;  %v5234_v31 = vld [vmem:[#allocation11 + $0x48] ss:$16 sps:$4 sm:$0xff]   ;;  %v5272_v42 = vld [vmem:[#allocation13 + $0xe0] ss:$16 sps:$4 sm:$0xff]  }
 0x16b   :  { %7120 = vst [vmem:[#allocation33_spill] sm:$0xff] %v5272_v42 }
 0x16c   :  { %v287_v45 = vmul.f32 %v285_v43, %v285_v43  ;;  %v288_v46 = vmul.f32 %v286_v44, %v286_v44 }
 0x16e   :  { %v289_v47 = vsel %vm273_vm3, %v287_v45, 0.0  ;;  %v290_v48 = vsel %vm273_vm3, %v288_v46, 0.0  ;;  %v5282_v45 = vld [vmem:[#allocation13 + $0xcc] ss:$16 sps:$4 sm:$0xff]   ;;  %v5284_v46 = vld [vmem:[#allocation13 + $0xc0] ss:$16 sps:$4 sm:$0xff]  }
 0x16f   :  { %v291_v49 = vadd.f32 %v290_v48, %v289_v47  ;;  %7123 = vst [vmem:[#allocation36_spill] sm:$0xff] %v5282_v45  ;;  %7124 = vst [vmem:[#allocation37_spill] sm:$0xff] %v5284_v46  ;;  %v5286_v47 = vld [vmem:[#allocation13 + $0xc8] ss:$16 sps:$4 sm:$0xff]   ;;  %v5292_v48 = vld [vmem:[#allocation13 + $0xa4] ss:$16 sps:$4 sm:$0xff]  }
 0x170   :  { %7125 = vst [vmem:[#allocation38_spill] sm:$0xff] %v5286_v47  ;;  %7126 = vst [vmem:[#allocation39_spill] sm:$0xff] %v5292_v48 }
 0x171   :  { %v292_v50 = vrot.slane %v291_v49, 4 }
 0x173   :  { %v293_v51 = vadd.f32 %v292_v50, %v291_v49  ;;  %v5294_v49 = vld [vmem:[#allocation13 + $0xac] ss:$16 sps:$4 sm:$0xff]   ;;  %v5296_v50 = vld [vmem:[#allocation13 + $0xa0] ss:$16 sps:$4 sm:$0xff]  }
 0x174   :  { %7127 = vst [vmem:[#allocation40_spill] sm:$0xff] %v5294_v49  ;;  %7128 = vst [vmem:[#allocation41_spill] sm:$0xff] %v5296_v50 }
 0x175   :  { %v294_v52 = vrot.slane %v293_v51, 2 }
 0x177   :  { %v295_v53 = vadd.f32 %v294_v52, %v293_v51  ;;  %v5298_v51 = vld [vmem:[#allocation13 + $0xa8] ss:$16 sps:$4 sm:$0xff]   ;;  %v5304_v52 = vld [vmem:[#allocation13 + $0x84] ss:$16 sps:$4 sm:$0xff]  }
 0x178   :  { %7129 = vst [vmem:[#allocation42_spill] sm:$0xff] %v5298_v51  ;;  %7130 = vst [vmem:[#allocation43_spill] sm:$0xff] %v5304_v52 }
 0x179   :  { %v296_v54 = vrot.slane %v295_v53, 1 }
 0x17b   :  { %v297_v55 = vadd.f32 %v296_v54, %v295_v53  ;;  %v5306_v53 = vld [vmem:[#allocation13 + $0x8c] ss:$16 sps:$4 sm:$0xff]   ;;  %v5308_v54 = vld [vmem:[#allocation13 + $0x80] ss:$16 sps:$4 sm:$0xff]  }
 0x17c   :  { %7131 = vst [vmem:[#allocation44_spill] sm:$0xff] %v5306_v53  ;;  %7132 = vst [vmem:[#allocation45_spill] sm:$0xff] %v5308_v54 }
 0x17d   :  { %v298_v56 = vmul.f32 0.0625, %v297_v55  ;;  %v5310_v55 = vld [vmem:[#allocation13 + $0x88] ss:$16 sps:$4 sm:$0xff]  }
 0x17e   :  { %7133 = vst [vmem:[#allocation46_spill] sm:$0xff] %v5310_v55 }
 0x17f   :  { %v299_v57 = vadd.f32 1e-05, %v298_v56  ;;  %v5312_v56 = vld [vmem:[#allocation13 + $0x64] ss:$16 sps:$4 sm:$0xff]  }
 0x180   :  { %7134 = vst [vmem:[#allocation47_spill] sm:$0xff] %v5312_v56 }
 0x181   :  { %4244 = vrsqrt.f32 %v299_v57  ;;  %v5316_v57 = vld [vmem:[#allocation13 + $0x6c] ss:$16 sps:$4 sm:$0xff]  }
 0x182   :  { %7135 = vst [vmem:[#allocation48_spill] sm:$0xff] %v5316_v57 }
 0x18e   :  { %v4245_v58 = vpop.eup %4244 }
 0x18f   :  { %v301_v60 = vmul.f32 %v4245_v58, %v285_v43  ;;  %v302_v61 = vmul.f32 %v4245_v58, %v286_v44  ;;  %v5274_v43 = vld [vmem:[#allocation13 + $0xe8] ss:$16 sps:$4 sm:$0xff]   ;;  %v5280_v44 = vld [vmem:[#allocation13 + $0xc4] ss:$16 sps:$4 sm:$0xff]   ;;  %v5320_v58 = vld [vmem:[#allocation13 + $0x60] ss:$16 sps:$4 sm:$0xff]  }
 0x190   :  { %7121 = vst [vmem:[#allocation34_spill] sm:$0xff] %v5274_v43  ;;  %7122 = vst [vmem:[#allocation35_spill] sm:$0xff] %v5280_v44 }
 0x191   :  { %v310_v63 = vmul.f32 %v3830_v59, %v301_v60  ;;  %v311_v1 = vmul.f32 %v3830_v59, %v302_v61  ;;  %7136 = vst [vmem:[#allocation49_spill] sm:$0xff] %v5320_v58  ;;  %v5322_v59 = vld [vmem:[#allocation13 + $0x68] ss:$16 sps:$4 sm:$0xff]   ;;  %v5326_v60 = vld [vmem:[#allocation13 + $0x44] ss:$16 sps:$4 sm:$0xff]  }
 0x192   :  { %7137 = vst [vmem:[#allocation50_spill] sm:$0xff] %v5322_v59  ;;  %7138 = vst [vmem:[#allocation51_spill] sm:$0xff] %v5326_v60  ;;  %v5328_v61 = vld [vmem:[#allocation13 + $0x4c] ss:$16 sps:$4 sm:$0xff]  }
 0x193   :  { %v320_v2 = vadd.f32 %v3831_v62, %v311_v1  ;;  %v319_v3 = vadd.f32 %v3831_v62, %v310_v63  ;;  %7139 = vst [vmem:[#allocation52_spill] sm:$0xff] %v5328_v61  ;;  %v5332_v62 = vld [vmem:[#allocation13 + $0x40] ss:$16 sps:$4 sm:$0xff]   ;;  %v5334_v63 = vld [vmem:[#allocation13 + $0x48] ss:$16 sps:$4 sm:$0xff]  }
 0x194   :  { %7140 = vst [vmem:[#allocation53_spill] sm:$0xff] %v5332_v62  ;;  %7141 = vst [vmem:[#allocation54_spill] sm:$0xff] %v5334_v63  ;;  %v5338_v1 = vld [vmem:[#allocation13 + $0x24] ss:$16 sps:$4 sm:$0xff]  }
 0x195   :  { %v322_v4 = vmax.f32 %v320_v2, 0.0  ;;  %v321_v5 = vmax.f32 %v319_v3, 0.0  ;;  %7142 = vst [vmem:[#allocation55_spill] sm:$0xff] %v5338_v1  ;;  %v5340_v2 = vld [vmem:[#allocation13 + $0x2c] ss:$16 sps:$4 sm:$0xff]  }
 0x196   :  { %7143 = vst [vmem:[#allocation56_spill] sm:$0xff] %v5340_v2  ;;  %v5344_v3 = vld [vmem:[#allocation13 + $0x20] ss:$16 sps:$4 sm:$0xff]  }
 0x197   :  { %v323_v8 = vpack.c.bf16 %v322_v4, %v321_v5  ;;  %7144 = vst [vmem:[#allocation57_spill] sm:$0xff] %v5344_v3  ;;  %v5346_v4 = vld [vmem:[#allocation13 + $0x28] ss:$16 sps:$4 sm:$0xff]   ;;  %v5350_v5 = vld [vmem:[#allocation13 + $0x4] ss:$16 sps:$4 sm:$0xff]  }
 0x198   :  { %7145 = vst [vmem:[#allocation58_spill] sm:$0xff] %v5346_v4  ;;  %7146 = vst [vmem:[#allocation59_spill] sm:$0xff] %v5350_v5 }
 0x199   :  { %3846 = vmatmul.mubr.msk.bf16.vlgmr.msra.gmra.mxu1 %vm273_vm3, %v323_v8  ;;  %3847 = vmatmul.mubr.msk.bf16.vlgmr.msra.gmra.mxu0 %vm273_vm3, %v323_v8  ;;  %v5352_v8 = vld [vmem:[#allocation13 + $0xc] ss:$16 sps:$4 sm:$0xff]  }
 0x19a   :  { %823 = vmatpush1.bf16.msra.mxu1 %v5170_v6  ;;  %864 = vmatpush1.bf16.msra.mxu0 %v5172_v7  ;;  %7147 = vst [vmem:[#allocation60_spill] sm:$0xff] %v5352_v8 }
 0x19b   :  { %824 = vmatprep.subr.bf16.mxu1 %v5174_v9  ;;  %865 = vmatprep.subr.bf16.mxu0 %v5176_v10 }
 0x19c   :  { %854 = vmatprep.mubr.bf16.mxu1 %v6805_v13  ;;  %895 = vmatprep.mubr.bf16.mxu0 %v6805_v13 }
 0x19e   :  { %825 = vmatpush1.bf16.msra.mxu1 %v5182_v11  ;;  %866 = vmatpush1.bf16.msra.mxu0 %v5184_v12 }
 0x19f   :  { %826 = vmatprep.subr.bf16.mxu1 %v5188_v14  ;;  %867 = vmatprep.subr.bf16.mxu0 %v5190_v15 }
 0x1a2   :  { %827 = vmatpush1.bf16.msra.mxu1 %v5196_v16  ;;  %868 = vmatpush1.bf16.msra.mxu0 %v5198_v17 }
 0x1a3   :  { %828 = vmatprep.subr.bf16.mxu1 %v5202_v18  ;;  %869 = vmatprep.subr.bf16.mxu0 %v5204_v19 }
 0x1a6   :  { %829 = vmatpush1.bf16.msra.mxu1 %v5208_v20  ;;  %870 = vmatpush1.bf16.msra.mxu0 %v5210_v21 }
 0x1a7   :  { %830 = vmatprep.subr.bf16.mxu1 %v5214_v22  ;;  %871 = vmatprep.subr.bf16.mxu0 %v5216_v23 }
 0x1aa   :  { %831 = vmatpush1.bf16.msra.mxu1 %v5220_v26  ;;  %872 = vmatpush1.bf16.msra.mxu0 %v5222_v27 }
 0x1ab   :  { %832 = vmatprep.subr.bf16.mxu1 %v5226_v28  ;;  %873 = vmatprep.subr.bf16.mxu0 %v5228_v29 }
 0x1ae   :  { %833 = vmatpush1.bf16.msra.mxu1 %v5232_v30  ;;  %874 = vmatpush1.bf16.msra.mxu0 %v5234_v31 }
 0x1af   :  { %834 = vmatprep.subr.bf16.mxu1 %v5238_v32  ;;  %875 = vmatprep.subr.bf16.mxu0 %v5240_v33 }
 0x1b2   :  { %835 = vmatpush1.bf16.msra.mxu1 %v5244_v34  ;;  %876 = vmatpush1.bf16.msra.mxu0 %v5246_v35 }
 0x1b3   :  { %836 = vmatprep.subr.bf16.mxu1 %v5250_v36  ;;  %877 = vmatprep.subr.bf16.mxu0 %v5252_v37 }
 0x1b6   :  { %837 = vmatpush1.bf16.msra.mxu1 %v5256_v38  ;;  %878 = vmatpush1.bf16.msra.mxu0 %v5258_v39 }
 0x1b7   :  { %1125 = vmatprep.subr.bf16.mxu1 %v5268_v40  ;;  %1166 = vmatprep.subr.bf16.mxu0 %v5270_v41 }
 0x1b9   :  { %855 = vmatmul.mubr.bf16.vlgmr.msra.gmra.mxu1 %v6805_v13  ;;  %896 = vmatmul.mubr.bf16.vlgmr.msra.gmra.mxu0 %v6805_v13 }
 0x1ba   :  { %1157 = vmatprep.mubr.bf16.mxu1 %v6805_v13  ;;  %1198 = vmatprep.mubr.bf16.mxu0 %v6805_v13  ;;  %v5358_v13 = vld [vmem:[#allocation13 + $0x8] ss:$16 sps:$4 sm:$0xff]  }
 0x1bb   :  { %1126 = vmatpush1.bf16.msra.mxu1 %v5272_v42  ;;  %1167 = vmatpush1.bf16.msra.mxu0 %v5274_v43  ;;  %7149 = vst [vmem:[#allocation62_spill] sm:$0xff] %v5358_v13 }
 0x1bc   :  { %1127 = vmatprep.subr.bf16.mxu1 %v5280_v44  ;;  %1168 = vmatprep.subr.bf16.mxu0 %v5282_v45 }
 0x1bf   :  { %1128 = vmatpush1.bf16.msra.mxu1 %v5284_v46  ;;  %1169 = vmatpush1.bf16.msra.mxu0 %v5286_v47 }
 0x1c0   :  { %1129 = vmatprep.subr.bf16.mxu1 %v5292_v48  ;;  %1170 = vmatprep.subr.bf16.mxu0 %v5294_v49 }
 0x1c3   :  { %1130 = vmatpush1.bf16.msra.mxu1 %v5296_v50  ;;  %1171 = vmatpush1.bf16.msra.mxu0 %v5298_v51 }
 0x1c4   :  { %1131 = vmatprep.subr.bf16.mxu1 %v5304_v52  ;;  %1172 = vmatprep.subr.bf16.mxu0 %v5306_v53 }
 0x1c7   :  { %1132 = vmatpush1.bf16.msra.mxu1 %v5308_v54  ;;  %1173 = vmatpush1.bf16.msra.mxu0 %v5310_v55 }
 0x1c8   :  { %1133 = vmatprep.subr.bf16.mxu1 %v5312_v56  ;;  %1174 = vmatprep.subr.bf16.mxu0 %v5316_v57 }
 0x1cb   :  { %1134 = vmatpush1.bf16.msra.mxu1 %v5320_v58  ;;  %1175 = vmatpush1.bf16.msra.mxu0 %v5322_v59 }
 0x1cc   :  { %1135 = vmatprep.subr.bf16.mxu1 %v5326_v60  ;;  %1176 = vmatprep.subr.bf16.mxu0 %v5328_v61 }
 0x1cf   :  { %1136 = vmatpush1.bf16.msra.mxu1 %v5332_v62  ;;  %1177 = vmatpush1.bf16.msra.mxu0 %v5334_v63 }
 0x1d0   :  { %1137 = vmatprep.subr.bf16.mxu1 %v5338_v1  ;;  %1178 = vmatprep.subr.bf16.mxu0 %v5340_v2  ;;  %v397_v2 = vpop.f32.mrf.mxu0 }
 0x1d2   :  { %v399_v1 = vpop.f32.mrf.mxu0 }
 0x1d3   :  { %1138 = vmatpush1.bf16.msra.mxu1 %v5344_v3  ;;  %1179 = vmatpush1.bf16.msra.mxu0 %v5346_v4  ;;  %v580_v4 = vlaneseq }
 0x1d4   :  { %1139 = vmatprep.subr.bf16.mxu1 %v5350_v5  ;;  %1180 = vmatprep.subr.bf16.mxu0 %v5352_v8  ;;  %v401_v63 = vpop.f32.mrf.mxu0 }
 0x1d5   :  { %v5364_v58 = vshrl.u32 %v580_v4, 7 }
 0x1d6   :  { %v403_v62 = vpop.f32.mrf.mxu0 }
 0x1d7   :  { %1140 = vmatpush1.bf16.msra.mxu1 %v5356_v0  ;;  %1181 = vmatpush1.bf16.msra.mxu0 %v5358_v13  ;;  %v6871_v5 = vsub.s32 0, %v5364_v58  ;;  %v6874_v8 = vsub.s32 2, %v5364_v58  ;;  %v578_v13 = vld [vmem:[%s6793_s8] sm:$0xf]  ;;  %v6875_v55 = vsub.s32 1, %v5364_v58  ;;  %v6876_v53 = vsub.s32 3, %v5364_v58 }
 0x1d8   :  { %v440_v61 = vpop.f32.mrf.mxu0 }
 0x1d9   :  { %v583_v4 = vrot.slane %v578_v13, %v6871_v5  ;;  %v591_v50 = vrot.slane %v578_v13, %v6874_v8  ;;  %v587_v47 = vrot.slane %v578_v13, %v6875_v55  ;;  %v595_v46 = vrot.slane %v578_v13, %v6876_v53 }
 0x1da   :  { %v442_v3 = vpop.f32.mrf.mxu0 }
 0x1dc   :  { %v444_v60 = vpop.f32.mrf.mxu0 }
 0x1de   :  { %v446_v59 = vpop.f32.mrf.mxu0 }
 0x259   :  { %v526_v57 = vpop.f32.mrf.mxu1  ;;  %v569_v56 = vpop.f32.mrf.mxu0 }
 0x25b   :  { %v528_v0 = vpop.f32.mrf.mxu1  ;;  %v571_v54 = vpop.f32.mrf.mxu0 }
 0x25d   :  { %v530_v52 = vpop.f32.mrf.mxu1  ;;  %v573_v51 = vpop.f32.mrf.mxu0 }
 0x25e   :  { %v531_v49 = vadd.f32 %v530_v52, %v401_v63  ;;  %v574_v48 = vadd.f32 %v573_v51, %v444_v60  ;;  %v527_v52 = vadd.f32 %v526_v57, %v397_v2  ;;  %v529_v51 = vadd.f32 %v528_v0, %v399_v1 }
 0x25f   :  { %v532_v45 = vpop.f32.mrf.mxu1  ;;  %v575_v44 = vpop.f32.mrf.mxu0  ;;  %v572_v1 = vadd.f32 %v571_v54, %v442_v3 }
 0x260   :  { %v5381_v43 = vadd.f32 %v583_v4, %v531_v49  ;;  %v5383_v42 = vadd.f32 %v591_v50, %v574_v48  ;;  %v533_v41 = vadd.f32 %v532_v45, %v403_v62  ;;  %v576_v40 = vadd.f32 %v575_v44, %v446_v59 }
 0x261   :  { %v5389_v60 = vadd.f32 %v583_v4, %v527_v52  ;;  %v5391_v55 = vadd.f32 %v587_v47, %v529_v51  ;;  %v570_v59 = vadd.f32 %v569_v56, %v440_v61  ;;  %v5398_v2 = vadd.f32 %v595_v46, %v572_v1  ;;  %v5416_v1 = vld [vmem:[#allocation14 + $0xe8] ss:$16 sps:$4 sm:$0xff]  }
 0x262   :  { %7150 = vst [vmem:[#allocation63_spill] sm:$0xff] %v5381_v43  ;;  %7151 = vst [vmem:[#allocation64_spill] sm:$0xff] %v5383_v42  ;;  %v5385_v5 = vadd.f32 %v587_v47, %v533_v41  ;;  %v5387_v39 = vadd.f32 %v595_v46, %v576_v40  ;;  %v5474_v42 = vld [vmem:[#allocation14 + $0x40] ss:$16 sps:$4 sm:$0xff]   ;;  %v5480_v43 = vld [vmem:[#allocation14 + $0x24] ss:$16 sps:$4 sm:$0xff]  }
 0x263   :  { %v5395_v62 = vadd.f32 %v591_v50, %v570_v59  ;;  %v5410_v59 = vld [vmem:[#allocation14 + $0xe4] ss:$16 sps:$4 sm:$0xff]   ;;  %7171 = vst [vmem:[#allocation83_spill] sm:$0xff] %v5474_v42  ;;  %7173 = vst [vmem:[#allocation85_spill] sm:$0xff] %v5480_v43 }
 0x264   :  { %7152 = vst [vmem:[#allocation65_spill] sm:$0xff] %v5385_v5  ;;  %7153 = vst [vmem:[#allocation66_spill] sm:$0xff] %v5387_v39  ;;  %1424 = vmatprep.subr.bf16.mxu1 %v5410_v59  ;;  %v5470_v39 = vld [vmem:[#allocation14 + $0x4c] ss:$16 sps:$4 sm:$0xff]   ;;  %v5476_v5 = vld [vmem:[#allocation14 + $0x48] ss:$16 sps:$4 sm:$0xff]  }
 0x265   :  { %7155 = vst [vmem:[#allocation67_spill] sm:$0xff] %v5410_v59  ;;  %7170 = vst [vmem:[#allocation82_spill] sm:$0xff] %v5470_v39 }
 0x266   :  { %7172 = vst [vmem:[#allocation84_spill] sm:$0xff] %v5476_v5 }
 0x279   :  { %v856_v63 = vpop.f32.mrf.mxu1  ;;  %v897_v8 = vpop.f32.mrf.mxu0 }
 0x27a   :  { %v904_v13 = vadd.f32 %v856_v63, %v5389_v60  ;;  %v906_v47 = vadd.f32 %v897_v8, %v5395_v62 }
 0x27b   :  { %v858_v49 = vpop.f32.mrf.mxu1  ;;  %v899_v53 = vpop.f32.mrf.mxu0 }
 0x27c   :  { %v3880_v48 = vmul.f32 -1.442695, %v904_v13  ;;  %v905_v45 = vadd.f32 %v858_v49, %v5391_v55  ;;  %v3882_v4 = vmul.f32 -1.442695, %v906_v47  ;;  %v907_v51 = vadd.f32 %v899_v53, %v5398_v2  ;;  %v5422_v47 = vld [vmem:[#allocation14 + $0xc4] ss:$16 sps:$4 sm:$0xff]  }
 0x27d   :  { %v860_v44 = vpop.f32.mrf.mxu1  ;;  %v901_v41 = vpop.f32.mrf.mxu0 }
 0x27e   :  { %4246 = vpow2.f32 %v3880_v48  ;;  %v3881_v40 = vmul.f32 -1.442695, %v905_v45 }
 0x27f   :  { %v861_v57 = vpop.f32.mrf.mxu1  ;;  %v902_v0 = vpop.f32.mrf.mxu0 }
 0x280   :  { %4248 = vpow2.f32 %v3881_v40  ;;  %v7154_v40 = vmov 0   ;;  %v5412_v57 = vld [vmem:[#allocation14 + $0xec] ss:$16 sps:$4 sm:$0xff]   ;;  %v5414_v0 = vld [vmem:[#allocation14 + $0xe0] ss:$16 sps:$4 sm:$0xff]  }
 0x281   :  { %4250 = vpow2.f32 %v3882_v4  ;;  %7156 = vst [vmem:[#allocation68_spill] sm:$0xff] %v5412_v57  ;;  %1465 = vmatprep.subr.bf16.mxu0 %v5412_v57  ;;  %v5424_v4 = vld [vmem:[#allocation14 + $0xcc] ss:$16 sps:$4 sm:$0xff]  }
 0x28b   :  { %v4247_v52 = vpop.eup %4246 }
 0x28c   :  { %v917_v63 = vadd.f32 1.0, %v4247_v52  ;;  %v5426_v52 = vld [vmem:[#allocation14 + $0xc0] ss:$16 sps:$4 sm:$0xff]  }
 0x28d   :  { %v4249_v13 = vpop.eup %4248 }
 0x28e   :  { %4252 = vrcp.f32 %v917_v63  ;;  %v918_v49 = vadd.f32 1.0, %v4249_v13  ;;  %v4251_v56 = vpop.eup %4250  ;;  %v5434_v63 = vld [vmem:[#allocation14 + $0xa4] ss:$16 sps:$4 sm:$0xff]   ;;  %v5436_v13 = vld [vmem:[#allocation14 + $0xac] ss:$16 sps:$4 sm:$0xff]  }
 0x28f   :  { %4254 = vtanh.f32 %v907_v51  ;;  %v919_v54 = vadd.f32 1.0, %v4251_v56  ;;  %v5428_v51 = vld [vmem:[#allocation14 + $0xc8] ss:$16 sps:$4 sm:$0xff]   ;;  %7157 = vst [vmem:[#allocation69_spill] sm:$0xff] %v5434_v63  ;;  %7158 = vst [vmem:[#allocation70_spill] sm:$0xff] %v5436_v13 }
 0x290   :  { %4256 = vrcp.f32 %v918_v49  ;;  %v5438_v49 = vld [vmem:[#allocation14 + $0xa0] ss:$16 sps:$4 sm:$0xff]   ;;  %v5440_v56 = vld [vmem:[#allocation14 + $0xa8] ss:$16 sps:$4 sm:$0xff]  }
 0x291   :  { %4258 = vrcp.f32 %v919_v54  ;;  %7159 = vst [vmem:[#allocation71_spill] sm:$0xff] %v5438_v49  ;;  %7160 = vst [vmem:[#allocation72_spill] sm:$0xff] %v5440_v56  ;;  %v5452_v54 = vld [vmem:[#allocation14 + $0x88] ss:$16 sps:$4 sm:$0xff]  }
 0x292   :  { %7164 = vst [vmem:[#allocation76_spill] sm:$0xff] %v5452_v54 }
 0x29b   :  { %v4253_v61 = vpop.eup %4252 }
 0x29c   :  { %v4255_v50 = vpop.eup %4254 }
 0x29d   :  { %v4257_v48 = vpop.eup %4256  ;;  %v928_v8 = vmul.f32 %v4255_v50, %v4253_v61  ;;  %v5446_v61 = vld [vmem:[#allocation14 + $0x84] ss:$16 sps:$4 sm:$0xff]   ;;  %v5448_v50 = vld [vmem:[#allocation14 + $0x8c] ss:$16 sps:$4 sm:$0xff]  }
 0x29e   :  { %v927_v3 = vmul.f32 0.0, %v4257_v48  ;;  %v4259_v53 = vpop.eup %4258  ;;  %7161 = vst [vmem:[#allocation73_spill] sm:$0xff] %v5446_v61  ;;  %7162 = vst [vmem:[#allocation74_spill] sm:$0xff] %v5448_v50  ;;  %v5450_v48 = vld [vmem:[#allocation14 + $0x80] ss:$16 sps:$4 sm:$0xff]  }
 0x29f   :  { %7163 = vst [vmem:[#allocation75_spill] sm:$0xff] %v5450_v48 }
 0x2a0   :  { %v5401_v46 = vadd.f32 %v928_v8, %v927_v3  ;;  %v5456_v3 = vld [vmem:[#allocation14 + $0x64] ss:$16 sps:$4 sm:$0xff]   ;;  %v5458_v8 = vld [vmem:[#allocation14 + $0x6c] ss:$16 sps:$4 sm:$0xff]  }
 0x2a1   :  { %7165 = vst [vmem:[#allocation77_spill] sm:$0xff] %v5456_v3  ;;  %7166 = vst [vmem:[#allocation78_spill] sm:$0xff] %v5458_v8 }
 0x2a2   :  { %4260 = vtanh.f32 %v5401_v46 }
 0x2af   :  { %v4261_v45 = vpop.eup %4260 }
 0x2b0   :  { %v931_v44 = vmul.f32 %v4261_v45, %v4259_v53  ;;  %v5462_v53 = vld [vmem:[#allocation14 + $0x60] ss:$16 sps:$4 sm:$0xff]   ;;  %v5464_v45 = vld [vmem:[#allocation14 + $0x68] ss:$16 sps:$4 sm:$0xff]  }
 0x2b1   :  { %7167 = vst [vmem:[#allocation79_spill] sm:$0xff] %v5462_v53  ;;  %7168 = vst [vmem:[#allocation80_spill] sm:$0xff] %v5464_v45 }
 0x2b2   :  { %v5404_v41 = vpack.c.bf16 %v931_v44, %v931_v44  ;;  %v5468_v44 = vld [vmem:[#allocation14 + $0x44] ss:$16 sps:$4 sm:$0xff]  }
 0x2b3   :  { %7169 = vst [vmem:[#allocation81_spill] sm:$0xff] %v5468_v44 }
 0x2b4   :  { %1158 = vmatmul.mubr.bf16.vlgmr.msra.gmra.mxu1 %v5404_v41  ;;  %1199 = vmatmul.mubr.bf16.vlgmr.msra.gmra.mxu0 %v5404_v41 }
 0x2b5   :  { %1456 = vmatprep.mubr.bf16.mxu1 %v7154_v40  ;;  %1497 = vmatprep.mubr.bf16.mxu0 %v7154_v40 }
 0x2b6   :  { %1425 = vmatpush1.bf16.msra.mxu1 %v5414_v0  ;;  %1466 = vmatpush1.bf16.msra.mxu0 %v5416_v1 }
 0x2b7   :  { %1426 = vmatprep.subr.bf16.mxu1 %v5422_v47  ;;  %1467 = vmatprep.subr.bf16.mxu0 %v5424_v4 }
 0x2ba   :  { %1427 = vmatpush1.bf16.msra.mxu1 %v5426_v52  ;;  %1468 = vmatpush1.bf16.msra.mxu0 %v5428_v51 }
 0x2bb   :  { %1428 = vmatprep.subr.bf16.mxu1 %v5434_v63  ;;  %1469 = vmatprep.subr.bf16.mxu0 %v5436_v13 }
 0x2be   :  { %1429 = vmatpush1.bf16.msra.mxu1 %v5438_v49  ;;  %1470 = vmatpush1.bf16.msra.mxu0 %v5440_v56  ;;  %v7185_v49 = vsub.s32 2, %v5364_v58 }
 0x2bf   :  { %1430 = vmatprep.subr.bf16.mxu1 %v5446_v61  ;;  %1471 = vmatprep.subr.bf16.mxu0 %v5448_v50 }
 0x2c2   :  { %1431 = vmatpush1.bf16.msra.mxu1 %v5450_v48  ;;  %1472 = vmatpush1.bf16.msra.mxu0 %v5452_v54 }
 0x2c3   :  { %1432 = vmatprep.subr.bf16.mxu1 %v5456_v3  ;;  %1473 = vmatprep.subr.bf16.mxu0 %v5458_v8  ;;  %v5482_v3 = vld [vmem:[#allocation14 + $0x2c] ss:$16 sps:$4 sm:$0xff]   ;;  %v5486_v8 = vld [vmem:[#allocation14 + $0x20] ss:$16 sps:$4 sm:$0xff]  }
 0x2c4   :  { %7174 = vst [vmem:[#allocation86_spill] sm:$0xff] %v5482_v3  ;;  %7175 = vst [vmem:[#allocation87_spill] sm:$0xff] %v5486_v8 }
 0x2c6   :  { %1433 = vmatpush1.bf16.msra.mxu1 %v5462_v53  ;;  %1474 = vmatpush1.bf16.msra.mxu0 %v5464_v45  ;;  %v5488_v53 = vld [vmem:[#allocation14 + $0x28] ss:$16 sps:$4 sm:$0xff]   ;;  %v5492_v45 = vld [vmem:[#allocation14 + $0x4] ss:$16 sps:$4 sm:$0xff]  }
 0x2c7   :  { %1434 = vmatprep.subr.bf16.mxu1 %v5468_v44  ;;  %1475 = vmatprep.subr.bf16.mxu0 %v5470_v39  ;;  %7176 = vst [vmem:[#allocation88_spill] sm:$0xff] %v5488_v53  ;;  %7177 = vst [vmem:[#allocation89_spill] sm:$0xff] %v5492_v45  ;;  %v5494_v44 = vld [vmem:[#allocation14 + $0xc] ss:$16 sps:$4 sm:$0xff]   ;;  %v5498_v39 = vld [vmem:[#allocation14] ss:$16 sps:$4 sm:$0xff]  }
 0x2c8   :  { %7178 = vst [vmem:[#allocation90_spill] sm:$0xff] %v5494_v44  ;;  %7179 = vst [vmem:[#allocation91_spill] sm:$0xff] %v5498_v39 }
 0x2ca   :  { %1435 = vmatpush1.bf16.msra.mxu1 %v5474_v42  ;;  %1476 = vmatpush1.bf16.msra.mxu0 %v5476_v5  ;;  %v5500_v42 = vld [vmem:[#allocation14 + $0x8] ss:$16 sps:$4 sm:$0xff]  }
 0x2cb   :  { %1436 = vmatprep.subr.bf16.mxu1 %v5480_v43  ;;  %1477 = vmatprep.subr.bf16.mxu0 %v5482_v3  ;;  %7180 = vst [vmem:[#allocation92_spill] sm:$0xff] %v5500_v42 }
 0x2ce   :  { %1437 = vmatpush1.bf16.msra.mxu1 %v5486_v8  ;;  %1478 = vmatpush1.bf16.msra.mxu0 %v5488_v53  ;;  %v608_v53 = vld [vmem:[%s6797_s12] sm:$0xf]  ;;  %v7181_v8 = vsub.s32 0, %v5364_v58  ;;  %s4969_s12 = smov [#allocation19]  }
 0x2cf   :  { %1438 = vmatprep.subr.bf16.mxu1 %v5492_v45  ;;  %1479 = vmatprep.subr.bf16.mxu0 %v5494_v44  ;;  %v7183_v45 = vsub.s32 1, %v5364_v58  ;;  %s3789_s23 = sshll.u32 %s4969_s12, 4  ;;  %s3790_s23 = int_to_ptr.vmem [resolvable:$true] %s3789_s23 }
 0x2d0   :  { %v5513_v3 = vrot.slane %v608_v53, %v7181_v8  ;;  %s4894_s9 = scalar_lea.vmem %s3790_s23, 64  ;;  %p4899_p9 = scmp.lt.s32.totalorder %s3790_s23, %s3790_s23 }
 0x2d1   :  { %v5517_v43 = vrot.slane %v608_v53, %v7183_v45  ;;  %v5523_v45 = vrot.slane %v608_v53, %v7185_v49  ;;  %p4895_p8 = scmp.ne.s32.totalorder %s3790_s23, %s4894_s9  ;;  %p4900_p10 = scmp.lt.s32.totalorder %s4894_s9, %s4894_s9 }
 0x2d2   :  { %1439 = vmatpush1.bf16.msra.mxu1 %v5498_v39  ;;  %1480 = vmatpush1.bf16.msra.mxu0 %v5500_v42  ;;  %7182 = vst [vmem:[#allocation93_spill] sm:$0xff] %v5513_v3 }
 0x2d3   :  { %1506 = vmatprep.subr.bf16.mxu1 %v5157_v24  ;;  %1547 = vmatprep.subr.bf16.mxu0 %v5159_v25  ;;  %7184 = vst [vmem:[#allocation94_spill] sm:$0xff] %v5517_v43  ;;  %p4901_p11 = por %p4900_p10, %p4899_p9 }
 0x2d5   :  { %p4902_p12 = pnand %p4901_p11, %p4895_p8 }
 0x374   :  { %v1159_v44 = vpop.f32.mrf.mxu1  ;;  %v1200_v39 = vpop.f32.mrf.mxu0 }
 0x375   :  { %v1160_v42 = vadd.f32 %v1159_v44, %v5513_v3  ;;  %v1201_v13 = vadd.f32 %v1200_v39, %v5523_v45  ;;  %v7186_v44 = vsub.s32 3, %v5364_v58 }
 0x376   :  { %v1161_v5 = vpop.f32.mrf.mxu1  ;;  %v1202_v24 = vpop.f32.mrf.mxu0 }
 0x377   :  { %v3915_v54 = vmul.f32 -1.442695, %v1160_v42  ;;  %v1162_v25 = vadd.f32 %v1161_v5, %v5517_v43  ;;  %v5528_v3 = vrot.slane %v608_v53, %v7186_v44  ;;  %v3917_v42 = vmul.f32 -1.442695, %v1201_v13 }
 0x378   :  { %v1163_v48 = vpop.f32.mrf.mxu1  ;;  %v1204_v50 = vpop.f32.mrf.mxu0 }
 0x379   :  { %4262 = vpow2.f32 %v3915_v54  ;;  %v3916_v61 = vmul.f32 -1.442695, %v1162_v25  ;;  %v1203_v5 = vadd.f32 %v1202_v24, %v5528_v3 }
 0x37a   :  { %v1164_v56 = vpop.f32.mrf.mxu1  ;;  %v1205_v8 = vpop.f32.mrf.mxu0 }
 0x37b   :  { %4264 = vpow2.f32 %v3916_v61 }
 0x37c   :  { %4266 = vpow2.f32 %v3917_v42  ;;  %v7213_v42 = vld [vmem:[#allocation55_spill] sm:$0xff] }
 0x386   :  { %v4263_v63 = vpop.eup %4262 }
 0x387   :  { %v1216_v50 = vadd.f32 1.0, %v4263_v63 }
 0x388   :  { %v4265_v48 = vpop.eup %4264 }
 0x389   :  { %4268 = vrcp.f32 %v1216_v50  ;;  %v1217_v56 = vadd.f32 1.0, %v4265_v48  ;;  %v4267_v61 = vpop.eup %4266  ;;  %v7215_v50 = vld [vmem:[#allocation57_spill] sm:$0xff]  ;;  %v7216_v48 = vld [vmem:[#allocation58_spill] sm:$0xff] }
 0x38a   :  { %4270 = vtanh.f32 %v1203_v5  ;;  %v1218_v39 = vadd.f32 1.0, %v4267_v61  ;;  %v7214_v5 = vld [vmem:[#allocation56_spill] sm:$0xff] }
 0x38b   :  { %4272 = vrcp.f32 %v1217_v56  ;;  %v7217_v56 = vld [vmem:[#allocation59_spill] sm:$0xff]  ;;  %v7218_v61 = vld [vmem:[#allocation60_spill] sm:$0xff] }
 0x38c   :  { %4274 = vrcp.f32 %v1218_v39 }
 0x396   :  { %v4269_v49 = vpop.eup %4268 }
 0x397   :  { %v4271_v54 = vpop.eup %4270 }
 0x398   :  { %v4273_v25 = vpop.eup %4272  ;;  %v1227_v58 = vmul.f32 %v4271_v54, %v4269_v49  ;;  %v7219_v49 = vld [vmem:[#allocation61_spill] sm:$0xff]  ;;  %v7220_v54 = vld [vmem:[#allocation62_spill] sm:$0xff] }
 0x399   :  { %v1226_v8 = vmul.f32 0.0, %v4273_v25  ;;  %v4275_v13 = vpop.eup %4274 }
 0x39b   :  { %v5531_v53 = vadd.f32 %v1227_v58, %v1226_v8 }
 0x39d   :  { %4276 = vtanh.f32 %v5531_v53 }
 0x3aa   :  { %v4277_v63 = vpop.eup %4276 }
 0x3ab   :  { %v5534_v24 = vmul.f32 %v4277_v63, %v4275_v13 }
 0x3ad   :  { %7187 = vst [vmem:[#allocation95_spill] sm:$0xff] %v5534_v24  ;;  %v1231_v44 = vpack.c.bf16 %v5534_v24, %v5534_v24 }
 0x3af   :  { %1457 = vmatmul.mubr.bf16.vlgmr.msra.gmra.mxu1 %v1231_v44  ;;  %1498 = vmatmul.mubr.bf16.vlgmr.msra.gmra.mxu0 %v1231_v44 }
 0x3b0   :  { %1507 = vmatpush1.bf16.msra.mxu1 %v5170_v6  ;;  %1548 = vmatpush1.bf16.msra.mxu0 %v5172_v7  ;;  %v7188_v6 = vld [vmem:[#allocation30_spill] sm:$0xff]  ;;  %v7189_v7 = vld [vmem:[#allocation31_spill] sm:$0xff] }
 0x3b1   :  { %1508 = vmatprep.subr.bf16.mxu1 %v5174_v9  ;;  %1549 = vmatprep.subr.bf16.mxu0 %v5176_v10  ;;  %v7190_v9 = vld [vmem:[#allocation32_spill] sm:$0xff]  ;;  %v7191_v10 = vld [vmem:[#allocation33_spill] sm:$0xff] }
 0x3b2   :  { %1538 = vmatprep.mubr.bf16.mxu1 %v7154_v40  ;;  %1579 = vmatprep.mubr.bf16.mxu0 %v7154_v40 }
 0x3b4   :  { %1509 = vmatpush1.bf16.msra.mxu1 %v5182_v11  ;;  %1550 = vmatpush1.bf16.msra.mxu0 %v5184_v12  ;;  %v7192_v11 = vld [vmem:[#allocation34_spill] sm:$0xff]  ;;  %v7193_v12 = vld [vmem:[#allocation35_spill] sm:$0xff] }
 0x3b5   :  { %1510 = vmatprep.subr.bf16.mxu1 %v5188_v14  ;;  %1551 = vmatprep.subr.bf16.mxu0 %v5190_v15  ;;  %v7194_v14 = vld [vmem:[#allocation36_spill] sm:$0xff]  ;;  %v7195_v15 = vld [vmem:[#allocation37_spill] sm:$0xff] }
 0x3b8   :  { %1511 = vmatpush1.bf16.msra.mxu1 %v5196_v16  ;;  %1552 = vmatpush1.bf16.msra.mxu0 %v5198_v17  ;;  %v7196_v16 = vld [vmem:[#allocation38_spill] sm:$0xff]  ;;  %v7197_v17 = vld [vmem:[#allocation39_spill] sm:$0xff] }
 0x3b9   :  { %1512 = vmatprep.subr.bf16.mxu1 %v5202_v18  ;;  %1553 = vmatprep.subr.bf16.mxu0 %v5204_v19  ;;  %v7198_v18 = vld [vmem:[#allocation40_spill] sm:$0xff]  ;;  %v7199_v19 = vld [vmem:[#allocation41_spill] sm:$0xff] }
 0x3bc   :  { %1513 = vmatpush1.bf16.msra.mxu1 %v5208_v20  ;;  %1554 = vmatpush1.bf16.msra.mxu0 %v5210_v21  ;;  %v7200_v20 = vld [vmem:[#allocation42_spill] sm:$0xff]  ;;  %v7201_v21 = vld [vmem:[#allocation43_spill] sm:$0xff] }
 0x3bd   :  { %1514 = vmatprep.subr.bf16.mxu1 %v5214_v22  ;;  %1555 = vmatprep.subr.bf16.mxu0 %v5216_v23  ;;  %v7202_v22 = vld [vmem:[#allocation44_spill] sm:$0xff]  ;;  %v7203_v23 = vld [vmem:[#allocation45_spill] sm:$0xff] }
 0x3c0   :  { %1515 = vmatpush1.bf16.msra.mxu1 %v5220_v26  ;;  %1556 = vmatpush1.bf16.msra.mxu0 %v5222_v27  ;;  %v7204_v26 = vld [vmem:[#allocation46_spill] sm:$0xff]  ;;  %v7205_v27 = vld [vmem:[#allocation47_spill] sm:$0xff] }
 0x3c1   :  { %1516 = vmatprep.subr.bf16.mxu1 %v5226_v28  ;;  %1557 = vmatprep.subr.bf16.mxu0 %v5228_v29  ;;  %v7206_v28 = vld [vmem:[#allocation48_spill] sm:$0xff]  ;;  %v7207_v29 = vld [vmem:[#allocation49_spill] sm:$0xff] }
 0x3c4   :  { %1517 = vmatpush1.bf16.msra.mxu1 %v5232_v30  ;;  %1558 = vmatpush1.bf16.msra.mxu0 %v5234_v31  ;;  %v7208_v30 = vld [vmem:[#allocation50_spill] sm:$0xff]  ;;  %v7209_v31 = vld [vmem:[#allocation51_spill] sm:$0xff] }
 0x3c5   :  { %1518 = vmatprep.subr.bf16.mxu1 %v5238_v32  ;;  %1559 = vmatprep.subr.bf16.mxu0 %v5240_v33  ;;  %v7210_v32 = vld [vmem:[#allocation52_spill] sm:$0xff]  ;;  %v7211_v33 = vld [vmem:[#allocation53_spill] sm:$0xff] }
 0x3c8   :  { %1519 = vmatpush1.bf16.msra.mxu1 %v5244_v34  ;;  %1560 = vmatpush1.bf16.msra.mxu0 %v5246_v35 }
 0x3c9   :  { %1520 = vmatprep.subr.bf16.mxu1 %v5250_v36  ;;  %1561 = vmatprep.subr.bf16.mxu0 %v5252_v37 }
 0x3cc   :  { %1521 = vmatpush1.bf16.msra.mxu1 %v5256_v38  ;;  %1562 = vmatpush1.bf16.msra.mxu0 %v7188_v6 }
 0x3cd   :  { %1635 = vmatprep.subr.bf16.mxu1 %v7189_v7  ;;  %1676 = vmatprep.subr.bf16.mxu0 %v7190_v9 }
 0x3cf   :  { %1539 = vmatmul.mubr.bf16.vlgmr.msra.gmra.mxu1 %v5404_v41  ;;  %1580 = vmatmul.mubr.bf16.vlgmr.msra.gmra.mxu0 %v5404_v41  ;;  %v7212_v41 = vld [vmem:[#allocation54_spill] sm:$0xff] }
 0x3d0   :  { %1636 = vmatpush1.bf16.msra.mxu1 %v7191_v10  ;;  %1677 = vmatpush1.bf16.msra.mxu0 %v7192_v11 }
 0x3d1   :  { %1637 = vmatprep.subr.bf16.mxu1 %v7193_v12  ;;  %1678 = vmatprep.subr.bf16.mxu0 %v7194_v14 }
 0x3d2   :  { %1667 = vmatprep.mubr.bf16.mxu1 %v7154_v40  ;;  %1708 = vmatprep.mubr.bf16.mxu0 %v7154_v40 }
 0x3d4   :  { %1638 = vmatpush1.bf16.msra.mxu1 %v7195_v15  ;;  %1679 = vmatpush1.bf16.msra.mxu0 %v7196_v16 }
 0x3d5   :  { %1639 = vmatprep.subr.bf16.mxu1 %v7197_v17  ;;  %1680 = vmatprep.subr.bf16.mxu0 %v7198_v18 }
 0x3d8   :  { %1640 = vmatpush1.bf16.msra.mxu1 %v7199_v19  ;;  %1681 = vmatpush1.bf16.msra.mxu0 %v7200_v20 }
 0x3d9   :  { %1641 = vmatprep.subr.bf16.mxu1 %v7201_v21  ;;  %1682 = vmatprep.subr.bf16.mxu0 %v7202_v22 }
 0x3dc   :  { %1642 = vmatpush1.bf16.msra.mxu1 %v7203_v23  ;;  %1683 = vmatpush1.bf16.msra.mxu0 %v7204_v26 }
 0x3dd   :  { %1643 = vmatprep.subr.bf16.mxu1 %v7205_v27  ;;  %1684 = vmatprep.subr.bf16.mxu0 %v7206_v28 }
 0x3e0   :  { %1644 = vmatpush1.bf16.msra.mxu1 %v7207_v29  ;;  %1685 = vmatpush1.bf16.msra.mxu0 %v7208_v30 }
 0x3e1   :  { %1645 = vmatprep.subr.bf16.mxu1 %v7209_v31  ;;  %1686 = vmatprep.subr.bf16.mxu0 %v7210_v32 }
 0x3e4   :  { %1646 = vmatpush1.bf16.msra.mxu1 %v7211_v33  ;;  %1687 = vmatpush1.bf16.msra.mxu0 %v7212_v41 }
 0x3e5   :  { %1647 = vmatprep.subr.bf16.mxu1 %v7213_v42  ;;  %1688 = vmatprep.subr.bf16.mxu0 %v7214_v5 }
 0x3e8   :  { %1648 = vmatpush1.bf16.msra.mxu1 %v7215_v50  ;;  %1689 = vmatpush1.bf16.msra.mxu0 %v7216_v48 }
 0x3e9   :  { %1649 = vmatprep.subr.bf16.mxu1 %v7217_v56  ;;  %1690 = vmatprep.subr.bf16.mxu0 %v7218_v61 }
 0x3ec   :  { %1650 = vmatpush1.bf16.msra.mxu1 %v7219_v49  ;;  %1691 = vmatpush1.bf16.msra.mxu0 %v7220_v54 }
 0x3ed   :  { %1742 = vmatprep.subr.bf16.mxu1 %v5410_v59  ;;  %1783 = vmatprep.subr.bf16.mxu0 %v5412_v57 }
 0x46f   :  { %v5608_v25 = vpop.f32.mrf.mxu1  ;;  %v5610_v39 = vpop.f32.mrf.mxu0 }
 0x471   :  { %v5612_v8 = vpop.f32.mrf.mxu1  ;;  %v5614_v58 = vpop.f32.mrf.mxu0 }
 0x473   :  { %v1462_v13 = vpop.f32.mrf.mxu1  ;;  %v1503_v63 = vpop.f32.mrf.mxu0 }
 0x475   :  { %v1463_v44 = vpop.f32.mrf.mxu1  ;;  %v1504_v24 = vpop.f32.mrf.mxu0 }
 0x48f   :  { %v1540_v61 = vpop.f32.mrf.mxu1  ;;  %v1581_v49 = vpop.f32.mrf.mxu0 }
 0x490   :  { %v1592_v56 = vrot.slane %v1540_v61, 6  ;;  %v1594_v63 = vrot.slane %v1581_v49, 6 }
 0x491   :  { %v1542_v54 = vpop.f32.mrf.mxu1  ;;  %v1583_v48 = vpop.f32.mrf.mxu0 }
 0x492   :  { %v1600_v59 = vadd.f32 %v1592_v56, %v5389_v60  ;;  %v1593_v57 = vrot.slane %v1542_v54, 6  ;;  %v1602_v24 = vadd.f32 %v1594_v63, %v5395_v62  ;;  %v1595_v44 = vrot.slane %v1583_v48, 6 }
 0x493   :  { %v1544_v50 = vpop.f32.mrf.mxu1  ;;  %v1585_v5 = vpop.f32.mrf.mxu0 }
 0x494   :  { %v3950_v42 = vmul.f32 -1.442695, %v1600_v59  ;;  %v1601_v41 = vadd.f32 %v1593_v57, %v5391_v55  ;;  %v3952_v61 = vmul.f32 -1.442695, %v1602_v24  ;;  %v1603_v30 = vadd.f32 %v1595_v44, %v5398_v2  ;;  %v7222_v44 = vld [vmem:[#allocation70_spill] sm:$0xff] }
 0x495   :  { %v1545_v33 = vpop.f32.mrf.mxu1  ;;  %v1586_v32 = vpop.f32.mrf.mxu0 }
 0x496   :  { %4278 = vpow2.f32 %v3950_v42  ;;  %v3951_v13 = vmul.f32 -1.442695, %v1601_v41  ;;  %v1624_v41 = vrot.slane %v5401_v46, 6  ;;  %v7221_v46 = vld [vmem:[#allocation69_spill] sm:$0xff] }
 0x498   :  { %4280 = vpow2.f32 %v3951_v13 }
 0x499   :  { %4282 = vpow2.f32 %v3952_v61  ;;  %v7223_v61 = vld [vmem:[#allocation71_spill] sm:$0xff] }
 0x4a3   :  { %v4279_v31 = vpop.eup %4278 }
 0x4a4   :  { %v1613_v56 = vadd.f32 1.0, %v4279_v31 }
 0x4a5   :  { %v4281_v54 = vpop.eup %4280 }
 0x4a6   :  { %4284 = vrcp.f32 %v1613_v56  ;;  %v1614_v59 = vadd.f32 1.0, %v4281_v54  ;;  %v4283_v57 = vpop.eup %4282  ;;  %v7224_v56 = vld [vmem:[#allocation72_spill] sm:$0xff]  ;;  %v7225_v54 = vld [vmem:[#allocation73_spill] sm:$0xff] }
 0x4a7   :  { %4286 = vtanh.f32 %v1603_v30  ;;  %v1615_v5 = vadd.f32 1.0, %v4283_v57  ;;  %v7227_v57 = vld [vmem:[#allocation75_spill] sm:$0xff] }
 0x4a8   :  { %4288 = vrcp.f32 %v1614_v59  ;;  %v7226_v59 = vld [vmem:[#allocation74_spill] sm:$0xff] }
 0x4a9   :  { %4290 = vrcp.f32 %v1615_v5  ;;  %v7232_v5 = vld [vmem:[#allocation80_spill] sm:$0xff] }
 0x4b3   :  { %v4285_v32 = vpop.eup %4284 }
 0x4b4   :  { %v4287_v33 = vpop.eup %4286 }
 0x4b5   :  { %v4289_v42 = vpop.eup %4288  ;;  %v1627_v48 = vmul.f32 %v4287_v33, %v4285_v32  ;;  %v7228_v32 = vld [vmem:[#allocation76_spill] sm:$0xff]  ;;  %v7229_v33 = vld [vmem:[#allocation77_spill] sm:$0xff] }
 0x4b6   :  { %v1626_v50 = vmul.f32 %v4289_v42, %v1624_v41  ;;  %v4291_v31 = vpop.eup %4290  ;;  %v7230_v41 = vld [vmem:[#allocation78_spill] sm:$0xff]  ;;  %v7231_v42 = vld [vmem:[#allocation79_spill] sm:$0xff] }
 0x4b8   :  { %v5621_v49 = vadd.f32 %v1627_v48, %v1626_v50  ;;  %v7233_v50 = vld [vmem:[#allocation81_spill] sm:$0xff]  ;;  %v7234_v48 = vld [vmem:[#allocation82_spill] sm:$0xff] }
 0x4ba   :  { %4292 = vtanh.f32 %v5621_v49 }
 0x4c7   :  { %v4293_v13 = vpop.eup %4292 }
 0x4c8   :  { %v1630_v63 = vmul.f32 %v4293_v13, %v4291_v31  ;;  %v7235_v31 = vld [vmem:[#allocation83_spill] sm:$0xff]  ;;  %v7236_v13 = vld [vmem:[#allocation84_spill] sm:$0xff] }
 0x4ca   :  { %v1631_v24 = vpack.c.bf16 %v1630_v63, %v1630_v63  ;;  %v7237_v63 = vld [vmem:[#allocation85_spill] sm:$0xff] }
 0x4cc   :  { %v5624_v30 = vrot.slane %v1631_v24, 1  ;;  %v7238_v24 = vld [vmem:[#allocation86_spill] sm:$0xff] }
 0x4ce   :  { %1668 = vmatmul.mubr.bf16.vlgmr.msra.gmra.mxu1 %v5624_v30  ;;  %1709 = vmatmul.mubr.bf16.vlgmr.msra.gmra.mxu0 %v5624_v30 }
 0x4cf   :  { %1743 = vmatpush1.bf16.msra.mxu1 %v5414_v0  ;;  %1784 = vmatpush1.bf16.msra.mxu0 %v5416_v1 }
 0x4d0   :  { %1744 = vmatprep.subr.bf16.mxu1 %v5422_v47  ;;  %1785 = vmatprep.subr.bf16.mxu0 %v5424_v4 }
 0x4d1   :  { %1774 = vmatprep.mubr.bf16.mxu1 %v7154_v40  ;;  %1815 = vmatprep.mubr.bf16.mxu0 %v7154_v40 }
 0x4d3   :  { %1745 = vmatpush1.bf16.msra.mxu1 %v5426_v52  ;;  %1786 = vmatpush1.bf16.msra.mxu0 %v5428_v51 }
 0x4d4   :  { %1746 = vmatprep.subr.bf16.mxu1 %v7221_v46  ;;  %1787 = vmatprep.subr.bf16.mxu0 %v7222_v44 }
 0x4d7   :  { %1747 = vmatpush1.bf16.msra.mxu1 %v7223_v61  ;;  %1788 = vmatpush1.bf16.msra.mxu0 %v7224_v56 }
 0x4d8   :  { %1748 = vmatprep.subr.bf16.mxu1 %v7225_v54  ;;  %1789 = vmatprep.subr.bf16.mxu0 %v7226_v59 }
 0x4db   :  { %1749 = vmatpush1.bf16.msra.mxu1 %v7227_v57  ;;  %1790 = vmatpush1.bf16.msra.mxu0 %v7228_v32  ;;  %v7239_v32 = vld [vmem:[#allocation87_spill] sm:$0xff] }
 0x4dc   :  { %1750 = vmatprep.subr.bf16.mxu1 %v7229_v33  ;;  %1791 = vmatprep.subr.bf16.mxu0 %v7230_v41  ;;  %v7240_v33 = vld [vmem:[#allocation88_spill] sm:$0xff]  ;;  %v7241_v41 = vld [vmem:[#allocation89_spill] sm:$0xff] }
 0x4df   :  { %1751 = vmatpush1.bf16.msra.mxu1 %v7231_v42  ;;  %1792 = vmatpush1.bf16.msra.mxu0 %v7232_v5  ;;  %v7242_v42 = vld [vmem:[#allocation90_spill] sm:$0xff]  ;;  %v7243_v5 = vld [vmem:[#allocation91_spill] sm:$0xff] }
 0x4e0   :  { %1752 = vmatprep.subr.bf16.mxu1 %v7233_v50  ;;  %1793 = vmatprep.subr.bf16.mxu0 %v7234_v48  ;;  %v7244_v50 = vld [vmem:[#allocation92_spill] sm:$0xff]  ;;  %v5660_v48 = vld [vmem:[#allocation11 + $0xe4] ss:$16 sps:$4 sm:$0xff]  }
 0x4e1   :  { %7245 = vst [vmem:[#allocation30_spill] sm:$0xff] %v5660_v48 }
 0x4e3   :  { %1753 = vmatpush1.bf16.msra.mxu1 %v7235_v31  ;;  %1794 = vmatpush1.bf16.msra.mxu0 %v7236_v13  ;;  %v5663_v13 = vld [vmem:[#allocation11 + $0xec] ss:$16 sps:$4 sm:$0xff]  }
 0x4e4   :  { %1754 = vmatprep.subr.bf16.mxu1 %v7237_v63  ;;  %1795 = vmatprep.subr.bf16.mxu0 %v7238_v24  ;;  %7246 = vst [vmem:[#allocation31_spill] sm:$0xff] %v5663_v13  ;;  %v7247_v24 = vld [vmem:[#allocation93_spill] sm:$0xff] }
 0x4e7   :  { %1755 = vmatpush1.bf16.msra.mxu1 %v7239_v32  ;;  %1796 = vmatpush1.bf16.msra.mxu0 %v7240_v33  ;;  %v1459_v32 = vadd.f32 %v5608_v25, %v7247_v24  ;;  %v1500_v25 = vadd.f32 %v5610_v39, %v5523_v45 }
 0x4e8   :  { %1756 = vmatprep.subr.bf16.mxu1 %v7241_v41  ;;  %1797 = vmatprep.subr.bf16.mxu0 %v7242_v42  ;;  %v1461_v42 = vadd.f32 %v5612_v8, %v5517_v43 }
 0x4eb   :  { %1757 = vmatpush1.bf16.msra.mxu1 %v7243_v5  ;;  %1798 = vmatpush1.bf16.msra.mxu0 %v7244_v50 }
 0x4ec   :  { %1824 = vmatprep.subr.bf16.mxu1 %v5660_v48  ;;  %1865 = vmatprep.subr.bf16.mxu0 %v5663_v13  ;;  %v1502_v13 = vadd.f32 %v5614_v58, %v5528_v3 }
 0x58e   :  { %v1669_v33 = vpop.f32.mrf.mxu1  ;;  %v1710_v63 = vpop.f32.mrf.mxu0 }
 0x58f   :  { %v1670_v41 = vadd.f32 %v1669_v33, %v1459_v32  ;;  %v1711_v24 = vadd.f32 %v1710_v63, %v1500_v25  ;;  %v5685_v63 = vld [vmem:[#allocation11 + $0xe8] ss:$16 sps:$4 sm:$0xff]   ;;  %v5696_v25 = vld [vmem:[#allocation11 + $0xc0] ss:$16 sps:$4 sm:$0xff]  }
 0x590   :  { %v1671_v5 = vpop.f32.mrf.mxu1  ;;  %v1712_v31 = vpop.f32.mrf.mxu0 }
 0x591   :  { %v3953_v50 = vmul.f32 -1.442695, %v1670_v41  ;;  %v1672_v57 = vadd.f32 %v1671_v5, %v1461_v42  ;;  %v3955_v8 = vmul.f32 -1.442695, %v1711_v24  ;;  %v1713_v32 = vadd.f32 %v1712_v31, %v1502_v13  ;;  %v5682_v13 = vld [vmem:[#allocation11 + $0xe0] ss:$16 sps:$4 sm:$0xff]  }
 0x592   :  { %v1673_v59 = vpop.f32.mrf.mxu1  ;;  %v1714_v54 = vpop.f32.mrf.mxu0  ;;  %v5691_v24 = vld [vmem:[#allocation11 + $0xcc] ss:$16 sps:$4 sm:$0xff]  }
 0x593   :  { %4294 = vpow2.f32 %v3953_v50  ;;  %v3954_v48 = vmul.f32 -1.442695, %v1672_v57 }
 0x594   :  { %v1674_v56 = vpop.f32.mrf.mxu1  ;;  %v1715_v61 = vpop.f32.mrf.mxu0 }
 0x595   :  { %4296 = vpow2.f32 %v3954_v48 }
 0x596   :  { %4298 = vpow2.f32 %v3955_v8  ;;  %v5699_v8 = vld [vmem:[#allocation11 + $0xc8] ss:$16 sps:$4 sm:$0xff]  }
 0x597   :  { %4300 = vtanh.f32 %v1713_v32  ;;  %v5702_v32 = vld [vmem:[#allocation11 + $0xa4] ss:$16 sps:$4 sm:$0xff]  }
 0x5a0   :  { %v4295_v33 = vpop.eup %4294 }
 0x5a1   :  { %v1726_v43 = vadd.f32 1.0, %v4295_v33  ;;  %v5705_v33 = vld [vmem:[#allocation11 + $0xac] ss:$16 sps:$4 sm:$0xff]  }
 0x5a2   :  { %v4297_v41 = vpop.eup %4296 }
 0x5a3   :  { %4302 = vrcp.f32 %v1726_v43  ;;  %v1727_v54 = vadd.f32 1.0, %v4297_v41  ;;  %v4299_v56 = vpop.eup %4298  ;;  %v5708_v41 = vld [vmem:[#allocation11 + $0xa0] ss:$16 sps:$4 sm:$0xff]  }
 0x5a4   :  { %v4301_v61 = vpop.eup %4300  ;;  %v1728_v39 = vadd.f32 1.0, %v4299_v56  ;;  %v5714_v56 = vld [vmem:[#allocation11 + $0x84] ss:$16 sps:$4 sm:$0xff]  }
 0x5a5   :  { %4304 = vrcp.f32 %v1727_v54  ;;  %v5711_v54 = vld [vmem:[#allocation11 + $0xa8] ss:$16 sps:$4 sm:$0xff]  }
 0x5a6   :  { %4306 = vrcp.f32 %v1728_v39  ;;  %v5729_v39 = vld [vmem:[#allocation11 + $0x6c] ss:$16 sps:$4 sm:$0xff]  }
 0x5a7   :  { %7249 = vst [vmem:[#allocation33_spill] sm:$0xff] %v5729_v39 }
 0x5b0   :  { %v4303_v59 = vpop.eup %4302 }
 0x5b1   :  { %v1737_v57 = vmul.f32 %v4303_v59, %v4301_v61  ;;  %v5717_v61 = vld [vmem:[#allocation11 + $0x8c] ss:$16 sps:$4 sm:$0xff]   ;;  %v5720_v59 = vld [vmem:[#allocation11 + $0x80] ss:$16 sps:$4 sm:$0xff]  }
 0x5b2   :  { %v4305_v42 = vpop.eup %4304 }
 0x5b3   :  { %v1736_v5 = vmul.f32 %v4305_v42, %v5531_v53  ;;  %v4307_v58 = vpop.eup %4306  ;;  %v5688_v53 = vld [vmem:[#allocation11 + $0xc4] ss:$16 sps:$4 sm:$0xff]  }
 0x5b4   :  { %v5726_v42 = vld [vmem:[#allocation11 + $0x64] ss:$16 sps:$4 sm:$0xff]  }
 0x5b5   :  { %v5675_v50 = vadd.f32 %v1737_v57, %v1736_v5  ;;  %v5723_v57 = vld [vmem:[#allocation11 + $0x88] ss:$16 sps:$4 sm:$0xff]   ;;  %7248 = vst [vmem:[#allocation32_spill] sm:$0xff] %v5726_v42  ;;  %v5732_v5 = vld [vmem:[#allocation11 + $0x60] ss:$16 sps:$4 sm:$0xff]  }
 0x5b6   :  { %7250 = vst [vmem:[#allocation34_spill] sm:$0xff] %v5732_v5 }
 0x5b7   :  { %4308 = vtanh.f32 %v5675_v50 }
 0x5c4   :  { %v4309_v48 = vpop.eup %4308 }
 0x5c5   :  { %v5678_v31 = vmul.f32 %v4309_v48, %v4307_v58  ;;  %v5735_v58 = vld [vmem:[#allocation11 + $0x68] ss:$16 sps:$4 sm:$0xff]   ;;  %v5738_v48 = vld [vmem:[#allocation11 + $0x44] ss:$16 sps:$4 sm:$0xff]  }
 0x5c6   :  { %7251 = vst [vmem:[#allocation35_spill] sm:$0xff] %v5735_v58 }
 0x5c7   :  { %v1741_v43 = vpack.c.bf16 %v5678_v31, %v5678_v31 }
 0x5c9   :  { %1775 = vmatmul.mubr.bf16.vlgmr.msra.gmra.mxu1 %v1741_v43  ;;  %1816 = vmatmul.mubr.bf16.vlgmr.msra.gmra.mxu0 %v1741_v43  ;;  %v5741_v43 = vld [vmem:[#allocation11 + $0x4c] ss:$16 sps:$4 sm:$0xff]  }
 0x5ca   :  { %1825 = vmatpush1.bf16.msra.mxu1 %v5682_v13  ;;  %1866 = vmatpush1.bf16.msra.mxu0 %v5685_v63 }
 0x5cb   :  { %1826 = vmatprep.subr.bf16.mxu1 %v5688_v53  ;;  %1867 = vmatprep.subr.bf16.mxu0 %v5691_v24 }
 0x5cc   :  { %1856 = vmatprep.mubr.bf16.mxu1 %v7154_v40  ;;  %1897 = vmatprep.mubr.bf16.mxu0 %v7154_v40 }
 0x5ce   :  { %1827 = vmatpush1.bf16.msra.mxu1 %v5696_v25  ;;  %1868 = vmatpush1.bf16.msra.mxu0 %v5699_v8 }
 0x5cf   :  { %1828 = vmatprep.subr.bf16.mxu1 %v5702_v32  ;;  %1869 = vmatprep.subr.bf16.mxu0 %v5705_v33 }
 0x5d2   :  { %1829 = vmatpush1.bf16.msra.mxu1 %v5708_v41  ;;  %1870 = vmatpush1.bf16.msra.mxu0 %v5711_v54 }
 0x5d3   :  { %1830 = vmatprep.subr.bf16.mxu1 %v5714_v56  ;;  %1871 = vmatprep.subr.bf16.mxu0 %v5717_v61 }
 0x5d6   :  { %1831 = vmatpush1.bf16.msra.mxu1 %v5720_v59  ;;  %1872 = vmatpush1.bf16.msra.mxu0 %v5723_v57 }
 0x5d7   :  { %1832 = vmatprep.subr.bf16.mxu1 %v5726_v42  ;;  %1873 = vmatprep.subr.bf16.mxu0 %v5729_v39  ;;  %v5744_v42 = vld [vmem:[#allocation11 + $0x40] ss:$16 sps:$4 sm:$0xff]   ;;  %v5747_v39 = vld [vmem:[#allocation11 + $0x48] ss:$16 sps:$4 sm:$0xff]  }
 0x5da   :  { %1833 = vmatpush1.bf16.msra.mxu1 %v5732_v5  ;;  %1874 = vmatpush1.bf16.msra.mxu0 %v5735_v58  ;;  %v5750_v5 = vld [vmem:[#allocation11 + $0x24] ss:$16 sps:$4 sm:$0xff]   ;;  %v5753_v58 = vld [vmem:[#allocation11 + $0x2c] ss:$16 sps:$4 sm:$0xff]  }
 0x5db   :  { %1834 = vmatprep.subr.bf16.mxu1 %v5738_v48  ;;  %1875 = vmatprep.subr.bf16.mxu0 %v5741_v43 }
 0x5de   :  { %1835 = vmatpush1.bf16.msra.mxu1 %v5744_v42  ;;  %1876 = vmatpush1.bf16.msra.mxu0 %v5747_v39 }
 0x5df   :  { %1836 = vmatprep.subr.bf16.mxu1 %v5750_v5  ;;  %1877 = vmatprep.subr.bf16.mxu0 %v5753_v58 }
 0x5e2   :  { %1837 = vmatpush1.bf16.msra.mxu1 %v5244_v34  ;;  %1878 = vmatpush1.bf16.msra.mxu0 %v5246_v35  ;;  %v7252_v34 = vld [vmem:[#allocation50_spill] sm:$0xff]  ;;  %v7253_v35 = vld [vmem:[#allocation51_spill] sm:$0xff] }
 0x5e3   :  { %1838 = vmatprep.subr.bf16.mxu1 %v5250_v36  ;;  %1879 = vmatprep.subr.bf16.mxu0 %v5252_v37  ;;  %v7254_v36 = vld [vmem:[#allocation52_spill] sm:$0xff]  ;;  %v7255_v37 = vld [vmem:[#allocation53_spill] sm:$0xff] }
 0x5e6   :  { %1839 = vmatpush1.bf16.msra.mxu1 %v5256_v38  ;;  %1880 = vmatpush1.bf16.msra.mxu0 %v7188_v6  ;;  %v7256_v38 = vld [vmem:[#allocation54_spill] sm:$0xff]  ;;  %v7257_v6 = vld [vmem:[#allocation55_spill] sm:$0xff] }
 0x5e7   :  { %1953 = vmatprep.subr.bf16.mxu1 %v7189_v7  ;;  %1994 = vmatprep.subr.bf16.mxu0 %v7190_v9  ;;  %v7258_v7 = vld [vmem:[#allocation56_spill] sm:$0xff]  ;;  %v7259_v9 = vld [vmem:[#allocation57_spill] sm:$0xff] }
 0x5e9   :  { %1857 = vmatmul.mubr.bf16.vlgmr.msra.gmra.mxu1 %v5624_v30  ;;  %1898 = vmatmul.mubr.bf16.vlgmr.msra.gmra.mxu0 %v5624_v30 }
 0x5ea   :  { %1954 = vmatpush1.bf16.msra.mxu1 %v7191_v10  ;;  %1995 = vmatpush1.bf16.msra.mxu0 %v7192_v11  ;;  %v7260_v10 = vld [vmem:[#allocation58_spill] sm:$0xff]  ;;  %v7261_v11 = vld [vmem:[#allocation59_spill] sm:$0xff] }
 0x5eb   :  { %1955 = vmatprep.subr.bf16.mxu1 %v7193_v12  ;;  %1996 = vmatprep.subr.bf16.mxu0 %v7194_v14  ;;  %v7262_v12 = vld [vmem:[#allocation60_spill] sm:$0xff]  ;;  %v7263_v14 = vld [vmem:[#allocation61_spill] sm:$0xff] }
 0x5ec   :  { %1985 = vmatprep.mubr.bf16.mxu1 %v7154_v40  ;;  %2026 = vmatprep.mubr.bf16.mxu0 %v7154_v40 }
 0x5ee   :  { %1956 = vmatpush1.bf16.msra.mxu1 %v7195_v15  ;;  %1997 = vmatpush1.bf16.msra.mxu0 %v7196_v16  ;;  %v7264_v15 = vld [vmem:[#allocation62_spill] sm:$0xff]  ;;  %v7265_v16 = vld [vmem:[#allocation67_spill] sm:$0xff] }
 0x5ef   :  { %1957 = vmatprep.subr.bf16.mxu1 %v7197_v17  ;;  %1998 = vmatprep.subr.bf16.mxu0 %v7198_v18  ;;  %v7266_v17 = vld [vmem:[#allocation68_spill] sm:$0xff] }
 0x5f2   :  { %1958 = vmatpush1.bf16.msra.mxu1 %v7199_v19  ;;  %1999 = vmatpush1.bf16.msra.mxu0 %v7200_v20 }
 0x5f3   :  { %1959 = vmatprep.subr.bf16.mxu1 %v7201_v21  ;;  %2000 = vmatprep.subr.bf16.mxu0 %v7202_v22 }
 0x5f6   :  { %1960 = vmatpush1.bf16.msra.mxu1 %v7203_v23  ;;  %2001 = vmatpush1.bf16.msra.mxu0 %v7204_v26 }
 0x5f7   :  { %1961 = vmatprep.subr.bf16.mxu1 %v7205_v27  ;;  %2002 = vmatprep.subr.bf16.mxu0 %v7206_v28 }
 0x5fa   :  { %1962 = vmatpush1.bf16.msra.mxu1 %v7207_v29  ;;  %2003 = vmatpush1.bf16.msra.mxu0 %v7252_v34 }
 0x5fb   :  { %1963 = vmatprep.subr.bf16.mxu1 %v7253_v35  ;;  %2004 = vmatprep.subr.bf16.mxu0 %v7254_v36 }
 0x5fe   :  { %1964 = vmatpush1.bf16.msra.mxu1 %v7255_v37  ;;  %2005 = vmatpush1.bf16.msra.mxu0 %v7256_v38 }
 0x5ff   :  { %1965 = vmatprep.subr.bf16.mxu1 %v7257_v6  ;;  %2006 = vmatprep.subr.bf16.mxu0 %v7258_v7 }
 0x602   :  { %1966 = vmatpush1.bf16.msra.mxu1 %v7259_v9  ;;  %2007 = vmatpush1.bf16.msra.mxu0 %v7260_v10 }
 0x603   :  { %1967 = vmatprep.subr.bf16.mxu1 %v7261_v11  ;;  %2008 = vmatprep.subr.bf16.mxu0 %v7262_v12 }
 0x606   :  { %1968 = vmatpush1.bf16.msra.mxu1 %v7263_v14  ;;  %2009 = vmatpush1.bf16.msra.mxu0 %v7264_v15 }
 0x607   :  { %2060 = vmatprep.subr.bf16.mxu1 %v7265_v16  ;;  %2101 = vmatprep.subr.bf16.mxu0 %v7266_v17 }
 0x689   :  { %v5800_v18 = vpop.f32.mrf.mxu1  ;;  %v5802_v19 = vpop.f32.mrf.mxu0 }
 0x68b   :  { %v5804_v20 = vpop.f32.mrf.mxu1  ;;  %v5806_v21 = vpop.f32.mrf.mxu0 }
 0x68d   :  { %v1780_v22 = vpop.f32.mrf.mxu1  ;;  %v1821_v23 = vpop.f32.mrf.mxu0 }
 0x68f   :  { %v1781_v26 = vpop.f32.mrf.mxu1  ;;  %v1822_v27 = vpop.f32.mrf.mxu0 }
 0x6a9   :  { %v1858_v28 = vpop.f32.mrf.mxu1  ;;  %v1899_v29 = vpop.f32.mrf.mxu0 }
 0x6aa   :  { %v1910_v30 = vrot.slane %v1858_v28, 4  ;;  %v1912_v14 = vrot.slane %v1899_v29, 4 }
 0x6ab   :  { %v1860_v34 = vpop.f32.mrf.mxu1  ;;  %v1901_v35 = vpop.f32.mrf.mxu0 }
 0x6ac   :  { %v1918_v36 = vadd.f32 %v1910_v30, %v5389_v60  ;;  %v1911_v37 = vrot.slane %v1860_v34, 4  ;;  %v1920_v15 = vadd.f32 %v1912_v14, %v5395_v62  ;;  %v1913_v16 = vrot.slane %v1901_v35, 4 }
 0x6ad   :  { %v1862_v38 = vpop.f32.mrf.mxu1  ;;  %v1903_v6 = vpop.f32.mrf.mxu0 }
 0x6ae   :  { %v3956_v7 = vmul.f32 -1.442695, %v1918_v36  ;;  %v1919_v9 = vadd.f32 %v1911_v37, %v5391_v55  ;;  %v3958_v17 = vmul.f32 -1.442695, %v1920_v15  ;;  %v1921_v23 = vadd.f32 %v1913_v16, %v5398_v2  ;;  %v7272_v15 = vld [vmem:[#allocation76_spill] sm:$0xff]  ;;  %v7273_v16 = vld [vmem:[#allocation77_spill] sm:$0xff] }
 0x6af   :  { %v1863_v10 = vpop.f32.mrf.mxu1  ;;  %v1904_v11 = vpop.f32.mrf.mxu0  ;;  %v1942_v37 = vrot.slane %v5621_v49, 6  ;;  %v7267_v49 = vld [vmem:[#allocation71_spill] sm:$0xff] }
 0x6b0   :  { %4310 = vpow2.f32 %v3956_v7  ;;  %v3957_v12 = vmul.f32 -1.442695, %v1919_v9 }
 0x6b2   :  { %4312 = vpow2.f32 %v3957_v12 }
 0x6b3   :  { %4314 = vpow2.f32 %v3958_v17  ;;  %v7278_v17 = vld [vmem:[#allocation82_spill] sm:$0xff] }
 0x6bd   :  { %v4311_v22 = vpop.eup %4310 }
 0x6be   :  { %v1931_v26 = vadd.f32 1.0, %v4311_v22  ;;  %v7279_v22 = vld [vmem:[#allocation83_spill] sm:$0xff] }
 0x6bf   :  { %v4313_v27 = vpop.eup %4312 }
 0x6c0   :  { %4316 = vrcp.f32 %v1931_v26  ;;  %v1932_v28 = vadd.f32 1.0, %v4313_v27  ;;  %v4315_v30 = vpop.eup %4314  ;;  %v7281_v26 = vld [vmem:[#allocation85_spill] sm:$0xff]  ;;  %v7282_v27 = vld [vmem:[#allocation86_spill] sm:$0xff] }
 0x6c1   :  { %4318 = vtanh.f32 %v1921_v23  ;;  %v1933_v38 = vadd.f32 1.0, %v4315_v30  ;;  %v7280_v23 = vld [vmem:[#allocation84_spill] sm:$0xff] }
 0x6c2   :  { %4320 = vrcp.f32 %v1932_v28  ;;  %v7283_v28 = vld [vmem:[#allocation87_spill] sm:$0xff]  ;;  %v7284_v30 = vld [vmem:[#allocation88_spill] sm:$0xff] }
 0x6c3   :  { %4322 = vrcp.f32 %v1933_v38  ;;  %v7289_v38 = vld [vmem:[#allocation30_spill] sm:$0xff] }
 0x6cd   :  { %v4317_v34 = vpop.eup %4316 }
 0x6ce   :  { %v4319_v36 = vpop.eup %4318 }
 0x6cf   :  { %v4321_v29 = vpop.eup %4320  ;;  %v1945_v35 = vmul.f32 %v4319_v36, %v4317_v34  ;;  %v7285_v34 = vld [vmem:[#allocation89_spill] sm:$0xff]  ;;  %v7286_v36 = vld [vmem:[#allocation90_spill] sm:$0xff] }
 0x6d0   :  { %v1944_v6 = vmul.f32 %v4321_v29, %v1942_v37  ;;  %v4323_v9 = vpop.eup %4322  ;;  %v7287_v37 = vld [vmem:[#allocation91_spill] sm:$0xff]  ;;  %v7288_v29 = vld [vmem:[#allocation92_spill] sm:$0xff] }
 0x6d2   :  { %v5813_v7 = vadd.f32 %v1945_v35, %v1944_v6  ;;  %v7290_v6 = vld [vmem:[#allocation31_spill] sm:$0xff]  ;;  %v7291_v35 = vld [vmem:[#allocation93_spill] sm:$0xff] }
 0x6d4   :  { %4324 = vtanh.f32 %v5813_v7 }
 0x6e1   :  { %v4325_v10 = vpop.eup %4324 }
 0x6e2   :  { %v1948_v11 = vmul.f32 %v4325_v10, %v4323_v9  ;;  %v1777_v9 = vadd.f32 %v5800_v18, %v7291_v35  ;;  %v1818_v18 = vadd.f32 %v5802_v19, %v5523_v45 }
 0x6e4   :  { %v1949_v12 = vpack.c.bf16 %v1948_v11, %v1948_v11 }
 0x6e6   :  { %v5816_v14 = vrot.slane %v1949_v12, 2  ;;  %v7292_v12 = vld [vmem:[#allocation94_spill] sm:$0xff] }
 0x6e8   :  { %1986 = vmatmul.mubr.bf16.vlgmr.msra.gmra.mxu1 %v5816_v14  ;;  %2027 = vmatmul.mubr.bf16.vlgmr.msra.gmra.mxu0 %v5816_v14 }
 0x6e9   :  { %2061 = vmatpush1.bf16.msra.mxu1 %v5414_v0  ;;  %2102 = vmatpush1.bf16.msra.mxu0 %v5416_v1  ;;  %v7268_v0 = vld [vmem:[#allocation72_spill] sm:$0xff]  ;;  %v7269_v1 = vld [vmem:[#allocation73_spill] sm:$0xff] }
 0x6ea   :  { %2062 = vmatprep.subr.bf16.mxu1 %v5422_v47  ;;  %2103 = vmatprep.subr.bf16.mxu0 %v5424_v4  ;;  %v7270_v47 = vld [vmem:[#allocation74_spill] sm:$0xff]  ;;  %v7271_v4 = vld [vmem:[#allocation75_spill] sm:$0xff] }
 0x6eb   :  { %2092 = vmatprep.mubr.bf16.mxu1 %v7154_v40  ;;  %2133 = vmatprep.mubr.bf16.mxu0 %v7154_v40 }
 0x6ed   :  { %2063 = vmatpush1.bf16.msra.mxu1 %v5426_v52  ;;  %2104 = vmatpush1.bf16.msra.mxu0 %v5428_v51  ;;  %v7274_v52 = vld [vmem:[#allocation78_spill] sm:$0xff]  ;;  %v7275_v51 = vld [vmem:[#allocation79_spill] sm:$0xff] }
 0x6ee   :  { %2064 = vmatprep.subr.bf16.mxu1 %v7221_v46  ;;  %2105 = vmatprep.subr.bf16.mxu0 %v7222_v44  ;;  %v7276_v46 = vld [vmem:[#allocation80_spill] sm:$0xff]  ;;  %v7277_v44 = vld [vmem:[#allocation81_spill] sm:$0xff] }
 0x6f1   :  { %2065 = vmatpush1.bf16.msra.mxu1 %v7267_v49  ;;  %2106 = vmatpush1.bf16.msra.mxu0 %v7268_v0  ;;  %v1779_v49 = vadd.f32 %v5804_v20, %v7292_v12 }
 0x6f2   :  { %2066 = vmatprep.subr.bf16.mxu1 %v7269_v1  ;;  %2107 = vmatprep.subr.bf16.mxu0 %v7270_v47 }
 0x6f5   :  { %2067 = vmatpush1.bf16.msra.mxu1 %v7271_v4  ;;  %2108 = vmatpush1.bf16.msra.mxu0 %v7272_v15 }
 0x6f6   :  { %2068 = vmatprep.subr.bf16.mxu1 %v7273_v16  ;;  %2109 = vmatprep.subr.bf16.mxu0 %v7274_v52 }
 0x6f9   :  { %2069 = vmatpush1.bf16.msra.mxu1 %v7275_v51  ;;  %2110 = vmatpush1.bf16.msra.mxu0 %v7276_v46 }
 0x6fa   :  { %2070 = vmatprep.subr.bf16.mxu1 %v7277_v44  ;;  %2111 = vmatprep.subr.bf16.mxu0 %v7278_v17 }
 0x6fd   :  { %2071 = vmatpush1.bf16.msra.mxu1 %v7279_v22  ;;  %2112 = vmatpush1.bf16.msra.mxu0 %v7280_v23  ;;  %v1820_v22 = vadd.f32 %v5806_v21, %v5528_v3 }
 0x6fe   :  { %2072 = vmatprep.subr.bf16.mxu1 %v7281_v26  ;;  %2113 = vmatprep.subr.bf16.mxu0 %v7282_v27 }
 0x701   :  { %2073 = vmatpush1.bf16.msra.mxu1 %v7283_v28  ;;  %2114 = vmatpush1.bf16.msra.mxu0 %v7284_v30 }
 0x702   :  { %2074 = vmatprep.subr.bf16.mxu1 %v7285_v34  ;;  %2115 = vmatprep.subr.bf16.mxu0 %v7286_v36 }
 0x705   :  { %2075 = vmatpush1.bf16.msra.mxu1 %v7287_v37  ;;  %2116 = vmatpush1.bf16.msra.mxu0 %v7288_v29 }
 0x706   :  { %2142 = vmatprep.subr.bf16.mxu1 %v7289_v38  ;;  %2183 = vmatprep.subr.bf16.mxu0 %v7290_v6 }
 0x7a8   :  { %v1987_v10 = vpop.f32.mrf.mxu1  ;;  %v2028_v11 = vpop.f32.mrf.mxu0 }
 0x7a9   :  { %v1988_v0 = vadd.f32 %v1987_v10, %v1777_v9  ;;  %v2029_v17 = vadd.f32 %v2028_v11, %v1818_v18  ;;  %v5901_v18 = vld [vmem:[#allocation11 + $0x28] ss:$16 sps:$4 sm:$0xff]  }
 0x7aa   :  { %v1989_v1 = vpop.f32.mrf.mxu1  ;;  %v2030_v47 = vpop.f32.mrf.mxu0 }
 0x7ab   :  { %v3959_v4 = vmul.f32 -1.442695, %v1988_v0  ;;  %v1990_v15 = vadd.f32 %v1989_v1, %v1779_v49  ;;  %v3961_v20 = vmul.f32 -1.442695, %v2029_v17  ;;  %v2031_v23 = vadd.f32 %v2030_v47, %v1820_v22  ;;  %v5904_v17 = vld [vmem:[#allocation11 + $0x4] ss:$16 sps:$4 sm:$0xff]  }
 0x7ac   :  { %v1991_v16 = vpop.f32.mrf.mxu1  ;;  %v2032_v52 = vpop.f32.mrf.mxu0  ;;  %v3635_v0 = vrot.slane %v5678_v31, 6  ;;  %v7294_v31 = vld [vmem:[#allocation32_spill] sm:$0xff] }
 0x7ad   :  { %4326 = vpow2.f32 %v3959_v4  ;;  %v3960_v51 = vmul.f32 -1.442695, %v1990_v15  ;;  %v7293_v15 = vld [vmem:[#allocation95_spill] sm:$0xff]  ;;  %v7295_v52 = vld [vmem:[#allocation33_spill] sm:$0xff]  ;;  %v5907_v22 = vld [vmem:[#allocation11 + $0xc] ss:$16 sps:$4 sm:$0xff]  }
 0x7ae   :  { %v1992_v46 = vpop.f32.mrf.mxu1  ;;  %v2033_v44 = vpop.f32.mrf.mxu0  ;;  %v3653_v16 = vsel %vm3652_vm4, %v7293_v15, %v3635_v0  ;;  %7298 = vst [vmem:[#allocation36_spill] sm:$0xff] %v5907_v22  ;;  %v5962_v0 = vld [vmem:[#allocation13 + $0x80] ss:$16 sps:$4 sm:$0xff]  }
 0x7af   :  { %4328 = vpow2.f32 %v3960_v51  ;;  %v7296_v51 = vld [vmem:[#allocation34_spill] sm:$0xff]  ;;  %v7297_v46 = vld [vmem:[#allocation35_spill] sm:$0xff]  ;;  %7315 = vst [vmem:[#allocation51_spill] sm:$0xff] %v5962_v0 }
 0x7b0   :  { %4330 = vpow2.f32 %v3961_v20  ;;  %v5898_v44 = vld [vmem:[#allocation11 + $0x20] ss:$16 sps:$4 sm:$0xff]  }
 0x7b1   :  { %4332 = vtanh.f32 %v2031_v23  ;;  %v5910_v20 = vld [vmem:[#allocation11] ss:$16 sps:$4 sm:$0xff]   ;;  %v5913_v23 = vld [vmem:[#allocation11 + $0x8] ss:$16 sps:$4 sm:$0xff]  }
 0x7b2   :  { %7299 = vst [vmem:[#allocation37_spill] sm:$0xff] %v5910_v20  ;;  %7300 = vst [vmem:[#allocation38_spill] sm:$0xff] %v5913_v23  ;;  %v5974_v15 = vld [vmem:[#allocation13 + $0x60] ss:$16 sps:$4 sm:$0xff]  }
 0x7b3   :  { %7319 = vst [vmem:[#allocation55_spill] sm:$0xff] %v5974_v15 }
 0x7ba   :  { %v4327_v26 = vpop.eup %4326 }
 0x7bb   :  { %v2044_v27 = vadd.f32 1.0, %v4327_v26  ;;  %v5916_v26 = vld [vmem:[#allocation13 + $0xe4] ss:$16 sps:$4 sm:$0xff]  }
 0x7bc   :  { %v4329_v28 = vpop.eup %4328  ;;  %7301 = vst [vmem:[#allocation39_spill] sm:$0xff] %v5916_v26 }
 0x7bd   :  { %4334 = vrcp.f32 %v2044_v27  ;;  %v2045_v30 = vadd.f32 1.0, %v4329_v28  ;;  %v4331_v34 = vpop.eup %4330  ;;  %v5919_v27 = vld [vmem:[#allocation13 + $0xec] ss:$16 sps:$4 sm:$0xff]   ;;  %v5924_v28 = vld [vmem:[#allocation13 + $0xe0] ss:$16 sps:$4 sm:$0xff]  }
 0x7be   :  { %v4333_v36 = vpop.eup %4332  ;;  %v2046_v19 = vadd.f32 1.0, %v4331_v34  ;;  %7302 = vst [vmem:[#allocation40_spill] sm:$0xff] %v5919_v27  ;;  %7303 = vst [vmem:[#allocation41_spill] sm:$0xff] %v5924_v28  ;;  %v5930_v34 = vld [vmem:[#allocation13 + $0xc4] ss:$16 sps:$4 sm:$0xff]  }
 0x7bf   :  { %4336 = vrcp.f32 %v2045_v30  ;;  %v5927_v30 = vld [vmem:[#allocation13 + $0xe8] ss:$16 sps:$4 sm:$0xff]   ;;  %7305 = vst [vmem:[#allocation43_spill] sm:$0xff] %v5930_v34 }
 0x7c0   :  { %4338 = vrcp.f32 %v2046_v19  ;;  %7304 = vst [vmem:[#allocation42_spill] sm:$0xff] %v5927_v30  ;;  %v5950_v19 = vld [vmem:[#allocation13 + $0xa0] ss:$16 sps:$4 sm:$0xff]  }
 0x7c1   :  { %7311 = vst [vmem:[#allocation49_spill] sm:$0xff] %v5950_v19 }
 0x7ca   :  { %v4335_v37 = vpop.eup %4334 }
 0x7cb   :  { %v2055_v29 = vmul.f32 %v4335_v37, %v4333_v36  ;;  %v5933_v36 = vld [vmem:[#allocation13 + $0xcc] ss:$16 sps:$4 sm:$0xff]   ;;  %v5941_v37 = vld [vmem:[#allocation13 + $0xc8] ss:$16 sps:$4 sm:$0xff]  }
 0x7cc   :  { %v4337_v9 = vpop.eup %4336  ;;  %7306 = vst [vmem:[#allocation44_spill] sm:$0xff] %v5933_v36  ;;  %7308 = vst [vmem:[#allocation46_spill] sm:$0xff] %v5941_v37 }
 0x7cd   :  { %v2054_v10 = vmul.f32 %v4337_v9, %v5675_v50  ;;  %v4339_v21 = vpop.eup %4338  ;;  %v5947_v9 = vld [vmem:[#allocation13 + $0xac] ss:$16 sps:$4 sm:$0xff]  }
 0x7ce   :  { %7310 = vst [vmem:[#allocation48_spill] sm:$0xff] %v5947_v9 }
 0x7cf   :  { %v5863_v11 = vadd.f32 %v2055_v29, %v2054_v10  ;;  %v5944_v29 = vld [vmem:[#allocation13 + $0xa4] ss:$16 sps:$4 sm:$0xff]   ;;  %v5953_v10 = vld [vmem:[#allocation13 + $0xa8] ss:$16 sps:$4 sm:$0xff]  }
 0x7d0   :  { %7309 = vst [vmem:[#allocation47_spill] sm:$0xff] %v5944_v29  ;;  %7312 = vst [vmem:[#allocation69_spill] sm:$0xff] %v5953_v10 }
 0x7d1   :  { %4340 = vtanh.f32 %v5863_v11 }
 0x7de   :  { %v4341_v49 = vpop.eup %4340 }
 0x7df   :  { %v2058_v1 = vmul.f32 %v4341_v49, %v4339_v21  ;;  %v5956_v21 = vld [vmem:[#allocation13 + $0x84] ss:$16 sps:$4 sm:$0xff]   ;;  %v5959_v49 = vld [vmem:[#allocation13 + $0x8c] ss:$16 sps:$4 sm:$0xff]  }
 0x7e0   :  { %7313 = vst [vmem:[#allocation70_spill] sm:$0xff] %v5956_v21  ;;  %7314 = vst [vmem:[#allocation50_spill] sm:$0xff] %v5959_v49 }
 0x7e1   :  { %v2059_v47 = vpack.c.bf16 %v2058_v1, %v2058_v1  ;;  %v3638_v4 = vrot.slane %v2058_v1, 4  ;;  %v5965_v1 = vld [vmem:[#allocation13 + $0x88] ss:$16 sps:$4 sm:$0xff]  }
 0x7e2   :  { %7316 = vst [vmem:[#allocation52_spill] sm:$0xff] %v5965_v1 }
 0x7e3   :  { %2093 = vmatmul.mubr.bf16.vlgmr.msra.gmra.mxu1 %v2059_v47  ;;  %2134 = vmatmul.mubr.bf16.vlgmr.msra.gmra.mxu0 %v2059_v47  ;;  %v5870_v50 = vsel %vm3654_vm5, %v3653_v16, %v3638_v4  ;;  %v5968_v47 = vld [vmem:[#allocation13 + $0x64] ss:$16 sps:$4 sm:$0xff]   ;;  %v5971_v4 = vld [vmem:[#allocation13 + $0x6c] ss:$16 sps:$4 sm:$0xff]   ;;  %v5977_v16 = vld [vmem:[#allocation13 + $0x68] ss:$16 sps:$4 sm:$0xff]  }
 0x7e4   :  { %2143 = vmatpush1.bf16.msra.mxu1 %v5682_v13  ;;  %2184 = vmatpush1.bf16.msra.mxu0 %v5685_v63  ;;  %7317 = vst [vmem:[#allocation53_spill] sm:$0xff] %v5968_v47  ;;  %7318 = vst [vmem:[#allocation54_spill] sm:$0xff] %v5971_v4 }
 0x7e5   :  { %2144 = vmatprep.subr.bf16.mxu1 %v5688_v53  ;;  %2185 = vmatprep.subr.bf16.mxu0 %v5691_v24  ;;  %7320 = vst [vmem:[#allocation56_spill] sm:$0xff] %v5977_v16 }
 0x7e6   :  { %2174 = vmatprep.mubr.bf16.mxu1 %v7154_v40  ;;  %2215 = vmatprep.mubr.bf16.mxu0 %v7154_v40 }
 0x7e8   :  { %2145 = vmatpush1.bf16.msra.mxu1 %v5696_v25  ;;  %2186 = vmatpush1.bf16.msra.mxu0 %v5699_v8 }
 0x7e9   :  { %2146 = vmatprep.subr.bf16.mxu1 %v5702_v32  ;;  %2187 = vmatprep.subr.bf16.mxu0 %v5705_v33 }
 0x7ec   :  { %2147 = vmatpush1.bf16.msra.mxu1 %v5708_v41  ;;  %2188 = vmatpush1.bf16.msra.mxu0 %v5711_v54 }
 0x7ed   :  { %2148 = vmatprep.subr.bf16.mxu1 %v5714_v56  ;;  %2189 = vmatprep.subr.bf16.mxu0 %v5717_v61 }
 0x7f0   :  { %2149 = vmatpush1.bf16.msra.mxu1 %v5720_v59  ;;  %2190 = vmatpush1.bf16.msra.mxu0 %v5723_v57 }
 0x7f1   :  { %2150 = vmatprep.subr.bf16.mxu1 %v7294_v31  ;;  %2191 = vmatprep.subr.bf16.mxu0 %v7295_v52 }
 0x7f4   :  { %2151 = vmatpush1.bf16.msra.mxu1 %v7296_v51  ;;  %2192 = vmatpush1.bf16.msra.mxu0 %v7297_v46 }
 0x7f5   :  { %2152 = vmatprep.subr.bf16.mxu1 %v5738_v48  ;;  %2193 = vmatprep.subr.bf16.mxu0 %v5741_v43 }
 0x7f8   :  { %2153 = vmatpush1.bf16.msra.mxu1 %v5744_v42  ;;  %2194 = vmatpush1.bf16.msra.mxu0 %v5747_v39 }
 0x7f9   :  { %2154 = vmatprep.subr.bf16.mxu1 %v5750_v5  ;;  %2195 = vmatprep.subr.bf16.mxu0 %v5753_v58 }
 0x7fc   :  { %2155 = vmatpush1.bf16.msra.mxu1 %v5898_v44  ;;  %2196 = vmatpush1.bf16.msra.mxu0 %v5901_v18 }
 0x7fd   :  { %2156 = vmatprep.subr.bf16.mxu1 %v5904_v17  ;;  %2197 = vmatprep.subr.bf16.mxu0 %v5907_v22 }
 0x800   :  { %2157 = vmatpush1.bf16.msra.mxu1 %v5910_v20  ;;  %2198 = vmatpush1.bf16.msra.mxu0 %v5913_v23 }
 0x801   :  { %2271 = vmatprep.subr.bf16.mxu1 %v5916_v26  ;;  %2312 = vmatprep.subr.bf16.mxu0 %v5919_v27 }
 0x803   :  { %2175 = vmatmul.mubr.bf16.vlgmr.msra.gmra.mxu1 %v5816_v14  ;;  %2216 = vmatmul.mubr.bf16.vlgmr.msra.gmra.mxu0 %v5816_v14  ;;  %v5938_v14 = vld [vmem:[#allocation13 + $0xc0] ss:$16 sps:$4 sm:$0xff]  }
 0x804   :  { %2272 = vmatpush1.bf16.msra.mxu1 %v5924_v28  ;;  %2313 = vmatpush1.bf16.msra.mxu0 %v5927_v30  ;;  %7307 = vst [vmem:[#allocation45_spill] sm:$0xff] %v5938_v14 }
 0x805   :  { %2273 = vmatprep.subr.bf16.mxu1 %v5930_v34  ;;  %2314 = vmatprep.subr.bf16.mxu0 %v5933_v36 }
 0x806   :  { %2303 = vmatprep.mubr.bf16.mxu1 %v7154_v40  ;;  %2344 = vmatprep.mubr.bf16.mxu0 %v7154_v40 }
 0x808   :  { %2274 = vmatpush1.bf16.msra.mxu1 %v5938_v14  ;;  %2315 = vmatpush1.bf16.msra.mxu0 %v5941_v37 }
 0x809   :  { %2275 = vmatprep.subr.bf16.mxu1 %v5944_v29  ;;  %2316 = vmatprep.subr.bf16.mxu0 %v5947_v9 }
 0x80c   :  { %2276 = vmatpush1.bf16.msra.mxu1 %v5950_v19  ;;  %2317 = vmatpush1.bf16.msra.mxu0 %v5953_v10 }
 0x80d   :  { %2277 = vmatprep.subr.bf16.mxu1 %v5956_v21  ;;  %2318 = vmatprep.subr.bf16.mxu0 %v5959_v49 }
 0x810   :  { %2278 = vmatpush1.bf16.msra.mxu1 %v5962_v0  ;;  %2319 = vmatpush1.bf16.msra.mxu0 %v5965_v1  ;;  %v5980_v0 = vld [vmem:[#allocation13 + $0x44] ss:$16 sps:$4 sm:$0xff]   ;;  %v5983_v1 = vld [vmem:[#allocation13 + $0x4c] ss:$16 sps:$4 sm:$0xff]  }
 0x811   :  { %2279 = vmatprep.subr.bf16.mxu1 %v5968_v47  ;;  %2320 = vmatprep.subr.bf16.mxu0 %v5971_v4  ;;  %7321 = vst [vmem:[#allocation57_spill] sm:$0xff] %v5980_v0  ;;  %7322 = vst [vmem:[#allocation58_spill] sm:$0xff] %v5983_v1  ;;  %v5986_v47 = vld [vmem:[#allocation13 + $0x40] ss:$16 sps:$4 sm:$0xff]   ;;  %v5989_v4 = vld [vmem:[#allocation13 + $0x48] ss:$16 sps:$4 sm:$0xff]  }
 0x812   :  { %7323 = vst [vmem:[#allocation59_spill] sm:$0xff] %v5986_v47  ;;  %7324 = vst [vmem:[#allocation60_spill] sm:$0xff] %v5989_v4 }
 0x814   :  { %2280 = vmatpush1.bf16.msra.mxu1 %v5974_v15  ;;  %2321 = vmatpush1.bf16.msra.mxu0 %v5977_v16  ;;  %v5992_v15 = vld [vmem:[#allocation13 + $0x24] ss:$16 sps:$4 sm:$0xff]   ;;  %v5995_v16 = vld [vmem:[#allocation13 + $0x2c] ss:$16 sps:$4 sm:$0xff]  }
 0x815   :  { %2281 = vmatprep.subr.bf16.mxu1 %v5980_v0  ;;  %2322 = vmatprep.subr.bf16.mxu0 %v5983_v1  ;;  %7325 = vst [vmem:[#allocation61_spill] sm:$0xff] %v5992_v15  ;;  %7326 = vst [vmem:[#allocation62_spill] sm:$0xff] %v5995_v16  ;;  %v5998_v0 = vld [vmem:[#allocation13 + $0x20] ss:$16 sps:$4 sm:$0xff]   ;;  %v6001_v1 = vld [vmem:[#allocation13 + $0x28] ss:$16 sps:$4 sm:$0xff]  }
 0x816   :  { %7327 = vst [vmem:[#allocation67_spill] sm:$0xff] %v5998_v0  ;;  %7328 = vst [vmem:[#allocation68_spill] sm:$0xff] %v6001_v1 }
 0x818   :  { %2282 = vmatpush1.bf16.msra.mxu1 %v5986_v47  ;;  %2323 = vmatpush1.bf16.msra.mxu0 %v5989_v4  ;;  %v6004_v47 = vld [vmem:[#allocation13 + $0x4] ss:$16 sps:$4 sm:$0xff]   ;;  %v6007_v4 = vld [vmem:[#allocation13 + $0xc] ss:$16 sps:$4 sm:$0xff]  }
 0x819   :  { %2283 = vmatprep.subr.bf16.mxu1 %v5992_v15  ;;  %2324 = vmatprep.subr.bf16.mxu0 %v5995_v16  ;;  %7329 = vst [vmem:[#allocation71_spill] sm:$0xff] %v6004_v47  ;;  %7330 = vst [vmem:[#allocation72_spill] sm:$0xff] %v6007_v4  ;;  %v6010_v15 = vld [vmem:[#allocation13] ss:$16 sps:$4 sm:$0xff]   ;;  %v6013_v16 = vld [vmem:[#allocation13 + $0x8] ss:$16 sps:$4 sm:$0xff]  }
 0x81a   :  { %7331 = vst [vmem:[#allocation73_spill] sm:$0xff] %v6010_v15  ;;  %7332 = vst [vmem:[#allocation74_spill] sm:$0xff] %v6013_v16 }
 0x81c   :  { %2284 = vmatpush1.bf16.msra.mxu1 %v5998_v0  ;;  %2325 = vmatpush1.bf16.msra.mxu0 %v6001_v1  ;;  %v6016_v0 = vld [vmem:[#allocation14 + $0xe4] ss:$16 sps:$4 sm:$0xff]   ;;  %v6019_v1 = vld [vmem:[#allocation14 + $0xec] ss:$16 sps:$4 sm:$0xff]  }
 0x81d   :  { %2285 = vmatprep.subr.bf16.mxu1 %v6004_v47  ;;  %2326 = vmatprep.subr.bf16.mxu0 %v6007_v4  ;;  %7333 = vst [vmem:[#allocation75_spill] sm:$0xff] %v6016_v0  ;;  %7334 = vst [vmem:[#allocation76_spill] sm:$0xff] %v6019_v1 }
 0x820   :  { %2286 = vmatpush1.bf16.msra.mxu1 %v6010_v15  ;;  %2327 = vmatpush1.bf16.msra.mxu0 %v6013_v16 }
 0x821   :  { %2378 = vmatprep.subr.bf16.mxu1 %v6016_v0  ;;  %2419 = vmatprep.subr.bf16.mxu0 %v6019_v1 }
 0x8a3   :  { %v6022_v47 = vpop.f32.mrf.mxu1  ;;  %v6024_v49 = vpop.f32.mrf.mxu0 }
 0x8a5   :  { %v6026_v4 = vpop.f32.mrf.mxu1  ;;  %v6028_v21 = vpop.f32.mrf.mxu0 }
 0x8a7   :  { %v2098_v15 = vpop.f32.mrf.mxu1  ;;  %v2139_v10 = vpop.f32.mrf.mxu0 }
 0x8a9   :  { %v2099_v19 = vpop.f32.mrf.mxu1  ;;  %v2140_v16 = vpop.f32.mrf.mxu0 }
 0x8c3   :  { %v2176_v9 = vpop.f32.mrf.mxu1  ;;  %v2217_v29 = vpop.f32.mrf.mxu0 }
 0x8c4   :  { %v2228_v37 = vrot.slane %v2176_v9, 2  ;;  %v2230_v19 = vrot.slane %v2217_v29, 2 }
 0x8c5   :  { %v2178_v0 = vpop.f32.mrf.mxu1  ;;  %v2219_v14 = vpop.f32.mrf.mxu0 }
 0x8c6   :  { %v2236_v36 = vadd.f32 %v2228_v37, %v5389_v60  ;;  %v2229_v1 = vrot.slane %v2178_v0, 2  ;;  %v2238_v10 = vadd.f32 %v2230_v19, %v5395_v62  ;;  %v2231_v16 = vrot.slane %v2219_v14, 2  ;;  %v6051_v19 = vld [vmem:[#allocation14 + $0xcc] ss:$16 sps:$4 sm:$0xff]  }
 0x8c7   :  { %v2180_v34 = vpop.f32.mrf.mxu1  ;;  %v2221_v30 = vpop.f32.mrf.mxu0 }
 0x8c8   :  { %v3962_v28 = vmul.f32 -1.442695, %v2236_v36  ;;  %v2237_v27 = vadd.f32 %v2229_v1, %v5391_v55  ;;  %v3964_v9 = vmul.f32 -1.442695, %v2238_v10  ;;  %v2239_v22 = vadd.f32 %v2231_v16, %v5398_v2  ;;  %v6045_v1 = vld [vmem:[#allocation14 + $0xe8] ss:$16 sps:$4 sm:$0xff]  }
 0x8c9   :  { %v2181_v26 = vpop.f32.mrf.mxu1  ;;  %v2222_v23 = vpop.f32.mrf.mxu0  ;;  %v6056_v10 = vld [vmem:[#allocation14 + $0xc0] ss:$16 sps:$4 sm:$0xff]   ;;  %v6059_v16 = vld [vmem:[#allocation14 + $0xc8] ss:$16 sps:$4 sm:$0xff]  }
 0x8ca   :  { %4342 = vpow2.f32 %v3962_v28  ;;  %v3963_v15 = vmul.f32 -1.442695, %v2237_v27  ;;  %v2260_v27 = vrot.slane %v5813_v7, 6  ;;  %v6042_v7 = vld [vmem:[#allocation14 + $0xe0] ss:$16 sps:$4 sm:$0xff]  }
 0x8cc   :  { %4344 = vpow2.f32 %v3963_v15  ;;  %v6048_v15 = vld [vmem:[#allocation14 + $0xc4] ss:$16 sps:$4 sm:$0xff]  }
 0x8cd   :  { %4346 = vpow2.f32 %v3964_v9  ;;  %v6062_v9 = vld [vmem:[#allocation14 + $0xa4] ss:$16 sps:$4 sm:$0xff]  }
 0x8d7   :  { %v4343_v20 = vpop.eup %4342 }
 0x8d8   :  { %v2249_v60 = vadd.f32 1.0, %v4343_v20 }
 0x8d9   :  { %v4345_v37 = vpop.eup %4344 }
 0x8da   :  { %4348 = vrcp.f32 %v2249_v60  ;;  %v2250_v30 = vadd.f32 1.0, %v4345_v37  ;;  %v4347_v55 = vpop.eup %4346  ;;  %v6065_v60 = vld [vmem:[#allocation14 + $0xac] ss:$16 sps:$4 sm:$0xff]   ;;  %v6068_v37 = vld [vmem:[#allocation14 + $0xa0] ss:$16 sps:$4 sm:$0xff]  }
 0x8db   :  { %4350 = vtanh.f32 %v2239_v22  ;;  %v2251_v34 = vadd.f32 1.0, %v4347_v55  ;;  %7335 = vst [vmem:[#allocation77_spill] sm:$0xff] %v6068_v37  ;;  %v6074_v55 = vld [vmem:[#allocation14 + $0x84] ss:$16 sps:$4 sm:$0xff]  }
 0x8dc   :  { %4352 = vrcp.f32 %v2250_v30  ;;  %v6071_v30 = vld [vmem:[#allocation14 + $0xa8] ss:$16 sps:$4 sm:$0xff]   ;;  %7337 = vst [vmem:[#allocation79_spill] sm:$0xff] %v6074_v55 }
 0x8dd   :  { %4354 = vrcp.f32 %v2251_v34  ;;  %7336 = vst [vmem:[#allocation78_spill] sm:$0xff] %v6071_v30  ;;  %v6089_v34 = vld [vmem:[#allocation14 + $0x6c] ss:$16 sps:$4 sm:$0xff]  }
 0x8de   :  { %7342 = vst [vmem:[#allocation84_spill] sm:$0xff] %v6089_v34 }
 0x8e7   :  { %v4349_v23 = vpop.eup %4348 }
 0x8e8   :  { %v4351_v26 = vpop.eup %4350 }
 0x8e9   :  { %v4353_v28 = vpop.eup %4352  ;;  %v2263_v36 = vmul.f32 %v4351_v26, %v4349_v23  ;;  %v6077_v23 = vld [vmem:[#allocation14 + $0x8c] ss:$16 sps:$4 sm:$0xff]   ;;  %v6080_v26 = vld [vmem:[#allocation14 + $0x80] ss:$16 sps:$4 sm:$0xff]  }
 0x8ea   :  { %v2262_v62 = vmul.f32 %v4353_v28, %v2260_v27  ;;  %v4355_v2 = vpop.eup %4354  ;;  %7338 = vst [vmem:[#allocation80_spill] sm:$0xff] %v6077_v23  ;;  %7339 = vst [vmem:[#allocation81_spill] sm:$0xff] %v6080_v26  ;;  %v6083_v27 = vld [vmem:[#allocation14 + $0x88] ss:$16 sps:$4 sm:$0xff]   ;;  %v6086_v28 = vld [vmem:[#allocation14 + $0x64] ss:$16 sps:$4 sm:$0xff]  }
 0x8eb   :  { %7340 = vst [vmem:[#allocation82_spill] sm:$0xff] %v6083_v27  ;;  %7341 = vst [vmem:[#allocation83_spill] sm:$0xff] %v6086_v28 }
 0x8ec   :  { %v6035_v14 = vadd.f32 %v2263_v36, %v2262_v62  ;;  %v6092_v62 = vld [vmem:[#allocation14 + $0x60] ss:$16 sps:$4 sm:$0xff]   ;;  %v6095_v36 = vld [vmem:[#allocation14 + $0x68] ss:$16 sps:$4 sm:$0xff]  }
 0x8ed   :  { %7343 = vst [vmem:[#allocation85_spill] sm:$0xff] %v6092_v62  ;;  %7344 = vst [vmem:[#allocation86_spill] sm:$0xff] %v6095_v36 }
 0x8ee   :  { %4356 = vtanh.f32 %v6035_v14 }
 0x8fb   :  { %v4357_v20 = vpop.eup %4356 }
 0x8fc   :  { %v2266_v29 = vmul.f32 %v4357_v20, %v4355_v2  ;;  %v6098_v2 = vld [vmem:[#allocation14 + $0x44] ss:$16 sps:$4 sm:$0xff]   ;;  %v6101_v20 = vld [vmem:[#allocation14 + $0x4c] ss:$16 sps:$4 sm:$0xff]  }
 0x8fd   :  { %7345 = vst [vmem:[#allocation87_spill] sm:$0xff] %v6098_v2  ;;  %7346 = vst [vmem:[#allocation88_spill] sm:$0xff] %v6101_v20 }
 0x8fe   :  { %v2267_v0 = vpack.c.bf16 %v2266_v29, %v2266_v29  ;;  %v6104_v29 = vld [vmem:[#allocation14 + $0x40] ss:$16 sps:$4 sm:$0xff]  }
 0x8ff   :  { %7347 = vst [vmem:[#allocation89_spill] sm:$0xff] %v6104_v29 }
 0x900   :  { %v6038_v22 = vrot.slane %v2267_v0, 3  ;;  %v6107_v0 = vld [vmem:[#allocation14 + $0x48] ss:$16 sps:$4 sm:$0xff]  }
 0x901   :  { %7348 = vst [vmem:[#allocation90_spill] sm:$0xff] %v6107_v0 }
 0x902   :  { %2304 = vmatmul.mubr.bf16.vlgmr.msra.gmra.mxu1 %v6038_v22  ;;  %2345 = vmatmul.mubr.bf16.vlgmr.msra.gmra.mxu0 %v6038_v22 }
 0x903   :  { %2379 = vmatpush1.bf16.msra.mxu1 %v6042_v7  ;;  %2420 = vmatpush1.bf16.msra.mxu0 %v6045_v1 }
 0x904   :  { %2380 = vmatprep.subr.bf16.mxu1 %v6048_v15  ;;  %2421 = vmatprep.subr.bf16.mxu0 %v6051_v19 }
 0x905   :  { %2410 = vmatprep.mubr.bf16.mxu1 %v7154_v40  ;;  %2451 = vmatprep.mubr.bf16.mxu0 %v7154_v40 }
 0x907   :  { %2381 = vmatpush1.bf16.msra.mxu1 %v6056_v10  ;;  %2422 = vmatpush1.bf16.msra.mxu0 %v6059_v16 }
 0x908   :  { %2382 = vmatprep.subr.bf16.mxu1 %v6062_v9  ;;  %2423 = vmatprep.subr.bf16.mxu0 %v6065_v60 }
 0x90b   :  { %2383 = vmatpush1.bf16.msra.mxu1 %v6068_v37  ;;  %2424 = vmatpush1.bf16.msra.mxu0 %v6071_v30 }
 0x90c   :  { %2384 = vmatprep.subr.bf16.mxu1 %v6074_v55  ;;  %2425 = vmatprep.subr.bf16.mxu0 %v6077_v23 }
 0x90f   :  { %2385 = vmatpush1.bf16.msra.mxu1 %v6080_v26  ;;  %2426 = vmatpush1.bf16.msra.mxu0 %v6083_v27 }
 0x910   :  { %2386 = vmatprep.subr.bf16.mxu1 %v6086_v28  ;;  %2427 = vmatprep.subr.bf16.mxu0 %v6089_v34 }
 0x913   :  { %2387 = vmatpush1.bf16.msra.mxu1 %v6092_v62  ;;  %2428 = vmatpush1.bf16.msra.mxu0 %v6095_v36  ;;  %v6110_v62 = vld [vmem:[#allocation14 + $0x24] ss:$16 sps:$4 sm:$0xff]   ;;  %v6113_v36 = vld [vmem:[#allocation14 + $0x2c] ss:$16 sps:$4 sm:$0xff]  }
 0x914   :  { %2388 = vmatprep.subr.bf16.mxu1 %v6098_v2  ;;  %2429 = vmatprep.subr.bf16.mxu0 %v6101_v20  ;;  %7349 = vst [vmem:[#allocation91_spill] sm:$0xff] %v6110_v62  ;;  %7350 = vst [vmem:[#allocation92_spill] sm:$0xff] %v6113_v36  ;;  %v6116_v2 = vld [vmem:[#allocation14 + $0x20] ss:$16 sps:$4 sm:$0xff]   ;;  %v6119_v20 = vld [vmem:[#allocation14 + $0x28] ss:$16 sps:$4 sm:$0xff]  }
 0x915   :  { %7351 = vst [vmem:[#allocation30_spill] sm:$0xff] %v6116_v2  ;;  %7352 = vst [vmem:[#allocation31_spill] sm:$0xff] %v6119_v20 }
 0x917   :  { %2389 = vmatpush1.bf16.msra.mxu1 %v6104_v29  ;;  %2430 = vmatpush1.bf16.msra.mxu0 %v6107_v0  ;;  %v6122_v29 = vld [vmem:[#allocation14 + $0x4] ss:$16 sps:$4 sm:$0xff]   ;;  %v6125_v0 = vld [vmem:[#allocation14 + $0xc] ss:$16 sps:$4 sm:$0xff]  }
 0x918   :  { %2390 = vmatprep.subr.bf16.mxu1 %v6110_v62  ;;  %2431 = vmatprep.subr.bf16.mxu0 %v6113_v36  ;;  %7353 = vst [vmem:[#allocation95_spill] sm:$0xff] %v6122_v29  ;;  %7354 = vst [vmem:[#allocation32_spill] sm:$0xff] %v6125_v0  ;;  %v6128_v62 = vld [vmem:[#allocation14] ss:$16 sps:$4 sm:$0xff]   ;;  %v6131_v36 = vld [vmem:[#allocation14 + $0x8] ss:$16 sps:$4 sm:$0xff]  }
 0x919   :  { %7355 = vst [vmem:[#allocation33_spill] sm:$0xff] %v6128_v62  ;;  %7356 = vst [vmem:[#allocation34_spill] sm:$0xff] %v6131_v36 }
 0x91b   :  { %2391 = vmatpush1.bf16.msra.mxu1 %v6116_v2  ;;  %2432 = vmatpush1.bf16.msra.mxu0 %v6119_v20  ;;  %v2095_v20 = vadd.f32 %v6022_v47, %v7291_v35  ;;  %v2138_v35 = vadd.f32 %v6028_v21, %v5528_v3 }
 0x91c   :  { %2392 = vmatprep.subr.bf16.mxu1 %v6122_v29  ;;  %2433 = vmatprep.subr.bf16.mxu0 %v6125_v0  ;;  %v2097_v0 = vadd.f32 %v6026_v4, %v7292_v12 }
 0x91f   :  { %2393 = vmatpush1.bf16.msra.mxu1 %v6128_v62  ;;  %2434 = vmatpush1.bf16.msra.mxu0 %v6131_v36 }
 0x920   :  { %2460 = vmatprep.subr.bf16.mxu1 %v7289_v38  ;;  %2501 = vmatprep.subr.bf16.mxu0 %v7290_v6  ;;  %v2136_v6 = vadd.f32 %v6024_v49, %v5523_v45 }
 0x9c2   :  { %v2305_v29 = vpop.f32.mrf.mxu1  ;;  %v2346_v2 = vpop.f32.mrf.mxu0 }
 0x9c3   :  { %v2306_v34 = vadd.f32 %v2305_v29, %v2095_v20  ;;  %v2347_v47 = vadd.f32 %v2346_v2, %v2136_v6  ;;  %v7385_v6 = vld [vmem:[#allocation61_spill] sm:$0xff] }
 0x9c4   :  { %v2307_v28 = vpop.f32.mrf.mxu1  ;;  %v2348_v27 = vpop.f32.mrf.mxu0 }
 0x9c5   :  { %v3965_v62 = vmul.f32 -1.442695, %v2306_v34  ;;  %v2308_v26 = vadd.f32 %v2307_v28, %v2097_v0  ;;  %v3967_v4 = vmul.f32 -1.442695, %v2347_v47  ;;  %v2349_v20 = vadd.f32 %v2348_v27, %v2138_v35  ;;  %v7386_v47 = vld [vmem:[#allocation62_spill] sm:$0xff] }
 0x9c6   :  { %v2309_v23 = vpop.f32.mrf.mxu1  ;;  %v2350_v55 = vpop.f32.mrf.mxu0 }
 0x9c7   :  { %4358 = vpow2.f32 %v3965_v62  ;;  %v3966_v36 = vmul.f32 -1.442695, %v2308_v26 }
 0x9c8   :  { %v2310_v38 = vpop.f32.mrf.mxu1  ;;  %v2351_v30 = vpop.f32.mrf.mxu0 }
 0x9c9   :  { %4360 = vpow2.f32 %v3966_v36 }
 0x9ca   :  { %4362 = vpow2.f32 %v3967_v4  ;;  %v7387_v4 = vld [vmem:[#allocation67_spill] sm:$0xff] }
 0x9cb   :  { %4364 = vtanh.f32 %v2349_v20  ;;  %v7388_v20 = vld [vmem:[#allocation68_spill] sm:$0xff] }
 0x9d4   :  { %v4359_v29 = vpop.eup %4358 }
 0x9d5   :  { %v2362_v12 = vadd.f32 1.0, %v4359_v29  ;;  %v7389_v29 = vld [vmem:[#allocation71_spill] sm:$0xff] }
 0x9d6   :  { %v4361_v28 = vpop.eup %4360 }
 0x9d7   :  { %4366 = vrcp.f32 %v2362_v12  ;;  %v2363_v55 = vadd.f32 1.0, %v4361_v28  ;;  %v4363_v23 = vpop.eup %4362  ;;  %v7390_v28 = vld [vmem:[#allocation72_spill] sm:$0xff] }
 0x9d8   :  { %v4365_v30 = vpop.eup %4364  ;;  %v2364_v49 = vadd.f32 1.0, %v4363_v23  ;;  %v7392_v23 = vld [vmem:[#allocation74_spill] sm:$0xff] }
 0x9d9   :  { %4368 = vrcp.f32 %v2363_v55  ;;  %v7391_v55 = vld [vmem:[#allocation73_spill] sm:$0xff] }
 0x9da   :  { %4370 = vrcp.f32 %v2364_v49 }
 0x9e4   :  { %v4367_v26 = vpop.eup %4366 }
 0x9e5   :  { %v2373_v34 = vmul.f32 %v4367_v26, %v4365_v30  ;;  %v7393_v30 = vld [vmem:[#allocation75_spill] sm:$0xff]  ;;  %v7394_v26 = vld [vmem:[#allocation76_spill] sm:$0xff] }
 0x9e6   :  { %v4369_v62 = vpop.eup %4368 }
 0x9e7   :  { %v2372_v36 = vmul.f32 %v4369_v62, %v5863_v11  ;;  %v4371_v35 = vpop.eup %4370  ;;  %v7378_v11 = vld [vmem:[#allocation54_spill] sm:$0xff] }
 0x9e9   :  { %v6145_v2 = vadd.f32 %v2373_v34, %v2372_v36 }
 0x9eb   :  { %4372 = vtanh.f32 %v6145_v2 }
 0x9f8   :  { %v4373_v21 = vpop.eup %4372 }
 0x9f9   :  { %v2376_v27 = vmul.f32 %v4373_v21, %v4371_v35 }
 0x9fb   :  { %v2377_v12 = vpack.c.bf16 %v2376_v27, %v2376_v27  ;;  %v3641_v0 = vrot.slane %v2376_v27, 2 }
 0x9fd   :  { %2411 = vmatmul.mubr.bf16.vlgmr.msra.gmra.mxu1 %v2377_v12  ;;  %2452 = vmatmul.mubr.bf16.vlgmr.msra.gmra.mxu0 %v2377_v12  ;;  %v6150_v38 = vsel %vm3656_vm6, %v5870_v50, %v3641_v0  ;;  %v7379_v50 = vld [vmem:[#allocation55_spill] sm:$0xff] }
 0x9fe   :  { %7357 = vst [vmem:[#allocation35_spill] sm:$0xff] %v6150_v38  ;;  %2461 = vmatpush1.bf16.msra.mxu1 %v5682_v13  ;;  %2502 = vmatpush1.bf16.msra.mxu0 %v5685_v63  ;;  %v7358_v13 = vld [vmem:[#allocation36_spill] sm:$0xff]  ;;  %v7359_v63 = vld [vmem:[#allocation37_spill] sm:$0xff] }
 0x9ff   :  { %2462 = vmatprep.subr.bf16.mxu1 %v5688_v53  ;;  %2503 = vmatprep.subr.bf16.mxu0 %v5691_v24  ;;  %v7360_v53 = vld [vmem:[#allocation38_spill] sm:$0xff]  ;;  %v7361_v24 = vld [vmem:[#allocation39_spill] sm:$0xff] }
 0xa00   :  { %2492 = vmatprep.mubr.bf16.mxu1 %v7154_v40  ;;  %2533 = vmatprep.mubr.bf16.mxu0 %v7154_v40 }
 0xa02   :  { %2463 = vmatpush1.bf16.msra.mxu1 %v5696_v25  ;;  %2504 = vmatpush1.bf16.msra.mxu0 %v5699_v8  ;;  %v7362_v25 = vld [vmem:[#allocation40_spill] sm:$0xff]  ;;  %v7363_v8 = vld [vmem:[#allocation41_spill] sm:$0xff] }
 0xa03   :  { %2464 = vmatprep.subr.bf16.mxu1 %v5702_v32  ;;  %2505 = vmatprep.subr.bf16.mxu0 %v5705_v33  ;;  %v7364_v32 = vld [vmem:[#allocation42_spill] sm:$0xff]  ;;  %v7365_v33 = vld [vmem:[#allocation43_spill] sm:$0xff] }
 0xa06   :  { %2465 = vmatpush1.bf16.msra.mxu1 %v5708_v41  ;;  %2506 = vmatpush1.bf16.msra.mxu0 %v5711_v54  ;;  %v7366_v41 = vld [vmem:[#allocation44_spill] sm:$0xff]  ;;  %v7367_v54 = vld [vmem:[#allocation45_spill] sm:$0xff] }
 0xa07   :  { %2466 = vmatprep.subr.bf16.mxu1 %v5714_v56  ;;  %2507 = vmatprep.subr.bf16.mxu0 %v5717_v61  ;;  %v7368_v56 = vld [vmem:[#allocation46_spill] sm:$0xff]  ;;  %v7369_v61 = vld [vmem:[#allocation47_spill] sm:$0xff] }
 0xa0a   :  { %2467 = vmatpush1.bf16.msra.mxu1 %v5720_v59  ;;  %2508 = vmatpush1.bf16.msra.mxu0 %v5723_v57  ;;  %v7370_v59 = vld [vmem:[#allocation48_spill] sm:$0xff]  ;;  %v7371_v57 = vld [vmem:[#allocation49_spill] sm:$0xff] }
 0xa0b   :  { %2468 = vmatprep.subr.bf16.mxu1 %v7294_v31  ;;  %2509 = vmatprep.subr.bf16.mxu0 %v7295_v52  ;;  %v7380_v31 = vld [vmem:[#allocation56_spill] sm:$0xff]  ;;  %v7381_v52 = vld [vmem:[#allocation57_spill] sm:$0xff] }
 0xa0e   :  { %2469 = vmatpush1.bf16.msra.mxu1 %v7296_v51  ;;  %2510 = vmatpush1.bf16.msra.mxu0 %v7297_v46  ;;  %v7382_v51 = vld [vmem:[#allocation58_spill] sm:$0xff]  ;;  %v7383_v46 = vld [vmem:[#allocation59_spill] sm:$0xff] }
 0xa0f   :  { %2470 = vmatprep.subr.bf16.mxu1 %v5738_v48  ;;  %2511 = vmatprep.subr.bf16.mxu0 %v5741_v43  ;;  %v7376_v48 = vld [vmem:[#allocation52_spill] sm:$0xff]  ;;  %v7377_v43 = vld [vmem:[#allocation53_spill] sm:$0xff] }
 0xa12   :  { %2471 = vmatpush1.bf16.msra.mxu1 %v5744_v42  ;;  %2512 = vmatpush1.bf16.msra.mxu0 %v5747_v39  ;;  %v7372_v42 = vld [vmem:[#allocation69_spill] sm:$0xff]  ;;  %v7373_v39 = vld [vmem:[#allocation70_spill] sm:$0xff] }
 0xa13   :  { %2472 = vmatprep.subr.bf16.mxu1 %v5750_v5  ;;  %2513 = vmatprep.subr.bf16.mxu0 %v5753_v58  ;;  %v7374_v5 = vld [vmem:[#allocation50_spill] sm:$0xff]  ;;  %v7375_v58 = vld [vmem:[#allocation51_spill] sm:$0xff] }
 0xa16   :  { %2473 = vmatpush1.bf16.msra.mxu1 %v5898_v44  ;;  %2514 = vmatpush1.bf16.msra.mxu0 %v5901_v18 }
 0xa17   :  { %2474 = vmatprep.subr.bf16.mxu1 %v5904_v17  ;;  %2515 = vmatprep.subr.bf16.mxu0 %v7358_v13 }
 0xa1a   :  { %2475 = vmatpush1.bf16.msra.mxu1 %v7359_v63  ;;  %2516 = vmatpush1.bf16.msra.mxu0 %v7360_v53 }
 0xa1b   :  { %2574 = vmatprep.subr.bf16.mxu1 %v7361_v24  ;;  %2615 = vmatprep.subr.bf16.mxu0 %v7362_v25 }
 0xa1d   :  { %2493 = vmatmul.mubr.bf16.vlgmr.msra.gmra.mxu1 %v6038_v22  ;;  %2534 = vmatmul.mubr.bf16.vlgmr.msra.gmra.mxu0 %v6038_v22  ;;  %v7384_v22 = vld [vmem:[#allocation60_spill] sm:$0xff] }
 0xa1e   :  { %2575 = vmatpush1.bf16.msra.mxu1 %v7363_v8  ;;  %2616 = vmatpush1.bf16.msra.mxu0 %v7364_v32 }
 0xa1f   :  { %2576 = vmatprep.subr.bf16.mxu1 %v7365_v33  ;;  %2617 = vmatprep.subr.bf16.mxu0 %v7366_v41 }
 0xa20   :  { %2606 = vmatprep.mubr.bf16.mxu1 %v7154_v40  ;;  %2647 = vmatprep.mubr.bf16.mxu0 %v7154_v40 }
 0xa22   :  { %2577 = vmatpush1.bf16.msra.mxu1 %v7367_v54  ;;  %2618 = vmatpush1.bf16.msra.mxu0 %v7368_v56 }
 0xa23   :  { %2578 = vmatprep.subr.bf16.mxu1 %v7369_v61  ;;  %2619 = vmatprep.subr.bf16.mxu0 %v7370_v59 }
 0xa26   :  { %2579 = vmatpush1.bf16.msra.mxu1 %v7371_v57  ;;  %2620 = vmatpush1.bf16.msra.mxu0 %v7372_v42 }
 0xa27   :  { %2580 = vmatprep.subr.bf16.mxu1 %v7373_v39  ;;  %2621 = vmatprep.subr.bf16.mxu0 %v7374_v5 }
 0xa2a   :  { %2581 = vmatpush1.bf16.msra.mxu1 %v7375_v58  ;;  %2622 = vmatpush1.bf16.msra.mxu0 %v7376_v48 }
 0xa2b   :  { %2582 = vmatprep.subr.bf16.mxu1 %v7377_v43  ;;  %2623 = vmatprep.subr.bf16.mxu0 %v7378_v11 }
 0xa2e   :  { %2583 = vmatpush1.bf16.msra.mxu1 %v7379_v50  ;;  %2624 = vmatpush1.bf16.msra.mxu0 %v7380_v31 }
 0xa2f   :  { %2584 = vmatprep.subr.bf16.mxu1 %v7381_v52  ;;  %2625 = vmatprep.subr.bf16.mxu0 %v7382_v51  ;;  %v7398_v51 = vld [vmem:[#allocation66_spill] sm:$0xff] }
 0xa32   :  { %2585 = vmatpush1.bf16.msra.mxu1 %v7383_v46  ;;  %2626 = vmatpush1.bf16.msra.mxu0 %v7384_v22 }
 0xa33   :  { %2586 = vmatprep.subr.bf16.mxu1 %v7385_v6  ;;  %2627 = vmatprep.subr.bf16.mxu0 %v7386_v47 }
 0xa36   :  { %2587 = vmatpush1.bf16.msra.mxu1 %v7387_v4  ;;  %2628 = vmatpush1.bf16.msra.mxu0 %v7388_v20 }
 0xa37   :  { %2588 = vmatprep.subr.bf16.mxu1 %v7389_v29  ;;  %2629 = vmatprep.subr.bf16.mxu0 %v7390_v28 }
 0xa3a   :  { %2589 = vmatpush1.bf16.msra.mxu1 %v7391_v55  ;;  %2630 = vmatpush1.bf16.msra.mxu0 %v7392_v23  ;;  %v7395_v55 = vld [vmem:[#allocation63_spill] sm:$0xff] }
 0xa3b   :  { %2681 = vmatprep.subr.bf16.mxu1 %v7393_v30  ;;  %2722 = vmatprep.subr.bf16.mxu0 %v7394_v26  ;;  %v7396_v26 = vld [vmem:[#allocation65_spill] sm:$0xff] }
 0xabd   :  { %v6222_v34 = vpop.f32.mrf.mxu1  ;;  %v6224_v62 = vpop.f32.mrf.mxu0 }
 0xabf   :  { %v6226_v49 = vpop.f32.mrf.mxu1  ;;  %v6228_v36 = vpop.f32.mrf.mxu0 }
 0xac1   :  { %v2416_v35 = vpop.f32.mrf.mxu1  ;;  %v2457_v21 = vpop.f32.mrf.mxu0 }
 0xac2   :  { %v7397_v35 = vld [vmem:[#allocation64_spill] sm:$0xff] }
 0xac3   :  { %v2417_v27 = vpop.f32.mrf.mxu1  ;;  %v2458_v12 = vpop.f32.mrf.mxu0 }
 0xadd   :  { %v2494_v0 = vpop.f32.mrf.mxu1  ;;  %v2535_v38 = vpop.f32.mrf.mxu0 }
 0xade   :  { %v2542_v23 = vadd.f32 %v2494_v0, %v7395_v55  ;;  %v2544_v21 = vadd.f32 %v2535_v38, %v7397_v35 }
 0xadf   :  { %v2496_v28 = vpop.f32.mrf.mxu1  ;;  %v2537_v30 = vpop.f32.mrf.mxu0 }
 0xae0   :  { %v3968_v29 = vmul.f32 -1.442695, %v2542_v23  ;;  %v2543_v20 = vadd.f32 %v2496_v28, %v7396_v26  ;;  %v3970_v27 = vmul.f32 -1.442695, %v2544_v21  ;;  %v2545_v52 = vadd.f32 %v2537_v30, %v7398_v51 }
 0xae1   :  { %v2498_v4 = vpop.f32.mrf.mxu1  ;;  %v2539_v47 = vpop.f32.mrf.mxu0 }
 0xae2   :  { %4374 = vpow2.f32 %v3968_v29  ;;  %v3969_v6 = vmul.f32 -1.442695, %v2543_v20 }
 0xae3   :  { %v2499_v22 = vpop.f32.mrf.mxu1  ;;  %v2540_v46 = vpop.f32.mrf.mxu0 }
 0xae4   :  { %4376 = vpow2.f32 %v3969_v6  ;;  %v2566_v22 = vrot.slane %v6035_v14, 6  ;;  %v7399_v14 = vld [vmem:[#allocation78_spill] sm:$0xff] }
 0xae5   :  { %4378 = vpow2.f32 %v3970_v27 }
 0xaef   :  { %v4375_v12 = vpop.eup %4374 }
 0xaf0   :  { %v2555_v31 = vadd.f32 1.0, %v4375_v12  ;;  %v7401_v12 = vld [vmem:[#allocation80_spill] sm:$0xff] }
 0xaf1   :  { %v4377_v0 = vpop.eup %4376 }
 0xaf2   :  { %4380 = vrcp.f32 %v2555_v31  ;;  %v2556_v23 = vadd.f32 1.0, %v4377_v0  ;;  %v4379_v4 = vpop.eup %4378  ;;  %v7402_v0 = vld [vmem:[#allocation81_spill] sm:$0xff] }
 0xaf3   :  { %4382 = vtanh.f32 %v2545_v52  ;;  %v2557_v6 = vadd.f32 1.0, %v4379_v4  ;;  %v7400_v52 = vld [vmem:[#allocation79_spill] sm:$0xff] }
 0xaf4   :  { %4384 = vrcp.f32 %v2556_v23  ;;  %v7403_v23 = vld [vmem:[#allocation82_spill] sm:$0xff]  ;;  %v7404_v4 = vld [vmem:[#allocation83_spill] sm:$0xff] }
 0xaf5   :  { %4386 = vrcp.f32 %v2557_v6  ;;  %v7409_v6 = vld [vmem:[#allocation88_spill] sm:$0xff] }
 0xaff   :  { %v4381_v47 = vpop.eup %4380 }
 0xb00   :  { %v4383_v29 = vpop.eup %4382 }
 0xb01   :  { %v4385_v46 = vpop.eup %4384  ;;  %v2569_v38 = vmul.f32 %v4383_v29, %v4381_v47  ;;  %v7405_v47 = vld [vmem:[#allocation84_spill] sm:$0xff]  ;;  %v7406_v29 = vld [vmem:[#allocation85_spill] sm:$0xff] }
 0xb02   :  { %v2568_v20 = vmul.f32 %v4385_v46, %v2566_v22  ;;  %v4387_v30 = vpop.eup %4386  ;;  %v7407_v22 = vld [vmem:[#allocation86_spill] sm:$0xff]  ;;  %v7408_v46 = vld [vmem:[#allocation87_spill] sm:$0xff] }
 0xb04   :  { %v6235_v28 = vadd.f32 %v2569_v38, %v2568_v20  ;;  %v7410_v20 = vld [vmem:[#allocation89_spill] sm:$0xff]  ;;  %v7411_v38 = vld [vmem:[#allocation90_spill] sm:$0xff] }
 0xb06   :  { %4388 = vtanh.f32 %v6235_v28 }
 0xb13   :  { %v4389_v21 = vpop.eup %4388 }
 0xb14   :  { %v2572_v31 = vmul.f32 %v4389_v21, %v4387_v30  ;;  %v7412_v30 = vld [vmem:[#allocation91_spill] sm:$0xff]  ;;  %v7413_v21 = vld [vmem:[#allocation92_spill] sm:$0xff] }
 0xb16   :  { %v6238_v27 = vpack.c.bf16 %v2572_v31, %v2572_v31  ;;  %v7414_v31 = vld [vmem:[#allocation30_spill] sm:$0xff] }
 0xb18   :  { %2607 = vmatmul.mubr.bf16.vlgmr.msra.gmra.mxu1 %v6238_v27  ;;  %2648 = vmatmul.mubr.bf16.vlgmr.msra.gmra.mxu0 %v6238_v27 }
 0xb19   :  { %2682 = vmatpush1.bf16.msra.mxu1 %v6042_v7  ;;  %2723 = vmatpush1.bf16.msra.mxu0 %v6045_v1 }
 0xb1a   :  { %2683 = vmatprep.subr.bf16.mxu1 %v6048_v15  ;;  %2724 = vmatprep.subr.bf16.mxu0 %v6051_v19 }
 0xb1b   :  { %2713 = vmatprep.mubr.bf16.mxu1 %v7154_v40  ;;  %2754 = vmatprep.mubr.bf16.mxu0 %v7154_v40 }
 0xb1d   :  { %2684 = vmatpush1.bf16.msra.mxu1 %v6056_v10  ;;  %2725 = vmatpush1.bf16.msra.mxu0 %v6059_v16 }
 0xb1e   :  { %2685 = vmatprep.subr.bf16.mxu1 %v6062_v9  ;;  %2726 = vmatprep.subr.bf16.mxu0 %v6065_v60 }
 0xb21   :  { %2686 = vmatpush1.bf16.msra.mxu1 %v6068_v37  ;;  %2727 = vmatpush1.bf16.msra.mxu0 %v7399_v14 }
 0xb22   :  { %2687 = vmatprep.subr.bf16.mxu1 %v7400_v52  ;;  %2728 = vmatprep.subr.bf16.mxu0 %v7401_v12 }
 0xb25   :  { %2688 = vmatpush1.bf16.msra.mxu1 %v7402_v0  ;;  %2729 = vmatpush1.bf16.msra.mxu0 %v7403_v23 }
 0xb26   :  { %2689 = vmatprep.subr.bf16.mxu1 %v7404_v4  ;;  %2730 = vmatprep.subr.bf16.mxu0 %v7405_v47  ;;  %v7415_v4 = vld [vmem:[#allocation31_spill] sm:$0xff] }
 0xb27   :  { %v7416_v47 = vld [vmem:[#allocation95_spill] sm:$0xff] }
 0xb29   :  { %2690 = vmatpush1.bf16.msra.mxu1 %v7406_v29  ;;  %2731 = vmatpush1.bf16.msra.mxu0 %v7407_v22  ;;  %v7417_v29 = vld [vmem:[#allocation32_spill] sm:$0xff]  ;;  %v7418_v22 = vld [vmem:[#allocation33_spill] sm:$0xff] }
 0xb2a   :  { %2691 = vmatprep.subr.bf16.mxu1 %v7408_v46  ;;  %2732 = vmatprep.subr.bf16.mxu0 %v7409_v6  ;;  %v7419_v46 = vld [vmem:[#allocation34_spill] sm:$0xff]  ;;  %v6274_v6 = vld [vmem:[#allocation11 + $0xe4] ss:$16 sps:$4 sm:$0xff]  }
 0xb2b   :  { %7420 = vst [vmem:[#allocation36_spill] sm:$0xff] %v6274_v6 }
 0xb2d   :  { %2692 = vmatpush1.bf16.msra.mxu1 %v7410_v20  ;;  %2733 = vmatpush1.bf16.msra.mxu0 %v7411_v38  ;;  %v6277_v38 = vld [vmem:[#allocation11 + $0xec] ss:$16 sps:$4 sm:$0xff]  }
 0xb2e   :  { %2693 = vmatprep.subr.bf16.mxu1 %v7412_v30  ;;  %2734 = vmatprep.subr.bf16.mxu0 %v7413_v21  ;;  %7421 = vst [vmem:[#allocation37_spill] sm:$0xff] %v6277_v38  ;;  %v7422_v21 = vld [vmem:[#allocation93_spill] sm:$0xff] }
 0xb31   :  { %2694 = vmatpush1.bf16.msra.mxu1 %v7414_v31  ;;  %2735 = vmatpush1.bf16.msra.mxu0 %v7415_v4  ;;  %v2413_v31 = vadd.f32 %v6222_v34, %v7422_v21  ;;  %v2454_v34 = vadd.f32 %v6224_v62, %v5523_v45 }
 0xb32   :  { %2695 = vmatprep.subr.bf16.mxu1 %v7416_v47  ;;  %2736 = vmatprep.subr.bf16.mxu0 %v7417_v29  ;;  %v7423_v47 = vld [vmem:[#allocation94_spill] sm:$0xff] }
 0xb33   :  { %v2415_v29 = vadd.f32 %v6226_v49, %v7423_v47 }
 0xb35   :  { %2696 = vmatpush1.bf16.msra.mxu1 %v7418_v22  ;;  %2737 = vmatpush1.bf16.msra.mxu0 %v7419_v46 }
 0xb36   :  { %2763 = vmatprep.subr.bf16.mxu1 %v6274_v6  ;;  %2804 = vmatprep.subr.bf16.mxu0 %v6277_v38  ;;  %v2456_v38 = vadd.f32 %v6228_v36, %v5528_v3 }
 0xbd8   :  { %v2608_v4 = vpop.f32.mrf.mxu1  ;;  %v2649_v30 = vpop.f32.mrf.mxu0 }
 0xbd9   :  { %v2609_v20 = vadd.f32 %v2608_v4, %v2413_v31  ;;  %v2650_v21 = vadd.f32 %v2649_v30, %v2454_v34  ;;  %v6299_v30 = vld [vmem:[#allocation11 + $0xe8] ss:$16 sps:$4 sm:$0xff]   ;;  %v6310_v34 = vld [vmem:[#allocation11 + $0xc0] ss:$16 sps:$4 sm:$0xff]  }
 0xbda   :  { %v2610_v22 = vpop.f32.mrf.mxu1  ;;  %v2651_v23 = vpop.f32.mrf.mxu0 }
 0xbdb   :  { %v3971_v46 = vmul.f32 -1.442695, %v2609_v20  ;;  %v2611_v0 = vadd.f32 %v2610_v22, %v2415_v29  ;;  %v3973_v49 = vmul.f32 -1.442695, %v2650_v21  ;;  %v2652_v4 = vadd.f32 %v2651_v23, %v2456_v38  ;;  %v6296_v38 = vld [vmem:[#allocation11 + $0xe0] ss:$16 sps:$4 sm:$0xff]  }
 0xbdc   :  { %v2612_v12 = vpop.f32.mrf.mxu1  ;;  %v2653_v52 = vpop.f32.mrf.mxu0  ;;  %v6305_v21 = vld [vmem:[#allocation11 + $0xcc] ss:$16 sps:$4 sm:$0xff]  }
 0xbdd   :  { %4390 = vpow2.f32 %v3971_v46  ;;  %v3972_v6 = vmul.f32 -1.442695, %v2611_v0 }
 0xbde   :  { %v2613_v14 = vpop.f32.mrf.mxu1  ;;  %v2654_v37 = vpop.f32.mrf.mxu0 }
 0xbdf   :  { %4392 = vpow2.f32 %v3972_v6 }
 0xbe0   :  { %4394 = vpow2.f32 %v3973_v49  ;;  %v6313_v49 = vld [vmem:[#allocation11 + $0xc8] ss:$16 sps:$4 sm:$0xff]  }
 0xbe1   :  { %4396 = vtanh.f32 %v2652_v4  ;;  %v6316_v4 = vld [vmem:[#allocation11 + $0xa4] ss:$16 sps:$4 sm:$0xff]  }
 0xbea   :  { %v4391_v31 = vpop.eup %4390 }
 0xbeb   :  { %v2665_v47 = vadd.f32 1.0, %v4391_v31  ;;  %v6319_v31 = vld [vmem:[#allocation11 + $0xac] ss:$16 sps:$4 sm:$0xff]  }
 0xbec   :  { %v4393_v29 = vpop.eup %4392 }
 0xbed   :  { %4398 = vrcp.f32 %v2665_v47  ;;  %v2666_v52 = vadd.f32 1.0, %v4393_v29  ;;  %v4395_v14 = vpop.eup %4394  ;;  %v6322_v29 = vld [vmem:[#allocation11 + $0xa0] ss:$16 sps:$4 sm:$0xff]  }
 0xbee   :  { %v4397_v37 = vpop.eup %4396  ;;  %v2667_v62 = vadd.f32 1.0, %v4395_v14  ;;  %v6328_v14 = vld [vmem:[#allocation11 + $0x84] ss:$16 sps:$4 sm:$0xff]  }
 0xbef   :  { %4400 = vrcp.f32 %v2666_v52  ;;  %v6325_v52 = vld [vmem:[#allocation11 + $0xa8] ss:$16 sps:$4 sm:$0xff]  }
 0xbf0   :  { %4402 = vrcp.f32 %v2667_v62  ;;  %v6343_v62 = vld [vmem:[#allocation11 + $0x6c] ss:$16 sps:$4 sm:$0xff]  }
 0xbf1   :  { %7425 = vst [vmem:[#allocation39_spill] sm:$0xff] %v6343_v62 }
 0xbfa   :  { %v4399_v12 = vpop.eup %4398 }
 0xbfb   :  { %v2676_v0 = vmul.f32 %v4399_v12, %v4397_v37  ;;  %v6331_v37 = vld [vmem:[#allocation11 + $0x8c] ss:$16 sps:$4 sm:$0xff]   ;;  %v6334_v12 = vld [vmem:[#allocation11 + $0x80] ss:$16 sps:$4 sm:$0xff]  }
 0xbfc   :  { %v4401_v22 = vpop.eup %4400 }
 0xbfd   :  { %v2675_v46 = vmul.f32 %v4401_v22, %v6145_v2  ;;  %v4403_v36 = vpop.eup %4402  ;;  %v6302_v2 = vld [vmem:[#allocation11 + $0xc4] ss:$16 sps:$4 sm:$0xff]  }
 0xbfe   :  { %v6340_v22 = vld [vmem:[#allocation11 + $0x64] ss:$16 sps:$4 sm:$0xff]  }
 0xbff   :  { %v6289_v6 = vadd.f32 %v2676_v0, %v2675_v46  ;;  %v6337_v0 = vld [vmem:[#allocation11 + $0x88] ss:$16 sps:$4 sm:$0xff]   ;;  %v6346_v46 = vld [vmem:[#allocation11 + $0x60] ss:$16 sps:$4 sm:$0xff]  }
 0xc00   :  { %7426 = vst [vmem:[#allocation40_spill] sm:$0xff] %v6346_v46 }
 0xc01   :  { %4404 = vtanh.f32 %v6289_v6 }
 0xc0e   :  { %v4405_v23 = vpop.eup %4404 }
 0xc0f   :  { %v6292_v20 = vmul.f32 %v4405_v23, %v4403_v36  ;;  %v6349_v36 = vld [vmem:[#allocation11 + $0x68] ss:$16 sps:$4 sm:$0xff]   ;;  %v6352_v23 = vld [vmem:[#allocation11 + $0x44] ss:$16 sps:$4 sm:$0xff]  }
 0xc10   :  { %7427 = vst [vmem:[#allocation41_spill] sm:$0xff] %v6349_v36 }
 0xc11   :  { %7424 = vst [vmem:[#allocation38_spill] sm:$0xff] %v6292_v20  ;;  %v2680_v47 = vpack.c.bf16 %v6292_v20, %v6292_v20  ;;  %v6358_v20 = vld [vmem:[#allocation11 + $0x40] ss:$16 sps:$4 sm:$0xff]  }
 0xc13   :  { %2714 = vmatmul.mubr.bf16.vlgmr.msra.gmra.mxu1 %v2680_v47  ;;  %2755 = vmatmul.mubr.bf16.vlgmr.msra.gmra.mxu0 %v2680_v47  ;;  %v6355_v47 = vld [vmem:[#allocation11 + $0x4c] ss:$16 sps:$4 sm:$0xff]  }
 0xc14   :  { %2764 = vmatpush1.bf16.msra.mxu1 %v6296_v38  ;;  %2805 = vmatpush1.bf16.msra.mxu0 %v6299_v30 }
 0xc15   :  { %2765 = vmatprep.subr.bf16.mxu1 %v6302_v2  ;;  %2806 = vmatprep.subr.bf16.mxu0 %v6305_v21 }
 0xc16   :  { %2795 = vmatprep.mubr.bf16.mxu1 %v7154_v40  ;;  %2836 = vmatprep.mubr.bf16.mxu0 %v7154_v40 }
 0xc18   :  { %2766 = vmatpush1.bf16.msra.mxu1 %v6310_v34  ;;  %2807 = vmatpush1.bf16.msra.mxu0 %v6313_v49 }
 0xc19   :  { %2767 = vmatprep.subr.bf16.mxu1 %v6316_v4  ;;  %2808 = vmatprep.subr.bf16.mxu0 %v6319_v31 }
 0xc1c   :  { %2768 = vmatpush1.bf16.msra.mxu1 %v6322_v29  ;;  %2809 = vmatpush1.bf16.msra.mxu0 %v6325_v52 }
 0xc1d   :  { %2769 = vmatprep.subr.bf16.mxu1 %v6328_v14  ;;  %2810 = vmatprep.subr.bf16.mxu0 %v6331_v37 }
 0xc20   :  { %2770 = vmatpush1.bf16.msra.mxu1 %v6334_v12  ;;  %2811 = vmatpush1.bf16.msra.mxu0 %v6337_v0 }
 0xc21   :  { %2771 = vmatprep.subr.bf16.mxu1 %v6340_v22  ;;  %2812 = vmatprep.subr.bf16.mxu0 %v6343_v62  ;;  %v6361_v62 = vld [vmem:[#allocation11 + $0x48] ss:$16 sps:$4 sm:$0xff]  }
 0xc24   :  { %2772 = vmatpush1.bf16.msra.mxu1 %v6346_v46  ;;  %2813 = vmatpush1.bf16.msra.mxu0 %v6349_v36  ;;  %v6364_v46 = vld [vmem:[#allocation11 + $0x24] ss:$16 sps:$4 sm:$0xff]   ;;  %v6367_v36 = vld [vmem:[#allocation11 + $0x2c] ss:$16 sps:$4 sm:$0xff]  }
 0xc25   :  { %2773 = vmatprep.subr.bf16.mxu1 %v6352_v23  ;;  %2814 = vmatprep.subr.bf16.mxu0 %v6355_v47 }
 0xc28   :  { %2774 = vmatpush1.bf16.msra.mxu1 %v6358_v20  ;;  %2815 = vmatpush1.bf16.msra.mxu0 %v6361_v62 }
 0xc29   :  { %2775 = vmatprep.subr.bf16.mxu1 %v6364_v46  ;;  %2816 = vmatprep.subr.bf16.mxu0 %v6367_v36 }
 0xc2c   :  { %2776 = vmatpush1.bf16.msra.mxu1 %v5898_v44  ;;  %2817 = vmatpush1.bf16.msra.mxu0 %v5901_v18  ;;  %v7428_v44 = vld [vmem:[#allocation56_spill] sm:$0xff]  ;;  %v7429_v18 = vld [vmem:[#allocation57_spill] sm:$0xff] }
 0xc2d   :  { %2777 = vmatprep.subr.bf16.mxu1 %v5904_v17  ;;  %2818 = vmatprep.subr.bf16.mxu0 %v7358_v13  ;;  %v7430_v17 = vld [vmem:[#allocation58_spill] sm:$0xff]  ;;  %v7431_v13 = vld [vmem:[#allocation59_spill] sm:$0xff] }
 0xc30   :  { %2778 = vmatpush1.bf16.msra.mxu1 %v7359_v63  ;;  %2819 = vmatpush1.bf16.msra.mxu0 %v7360_v53  ;;  %v7432_v63 = vld [vmem:[#allocation60_spill] sm:$0xff]  ;;  %v7433_v53 = vld [vmem:[#allocation61_spill] sm:$0xff] }
 0xc31   :  { %2892 = vmatprep.subr.bf16.mxu1 %v7361_v24  ;;  %2933 = vmatprep.subr.bf16.mxu0 %v7362_v25  ;;  %v7434_v24 = vld [vmem:[#allocation62_spill] sm:$0xff]  ;;  %v7435_v25 = vld [vmem:[#allocation67_spill] sm:$0xff] }
 0xc33   :  { %2796 = vmatmul.mubr.bf16.vlgmr.msra.gmra.mxu1 %v6238_v27  ;;  %2837 = vmatmul.mubr.bf16.vlgmr.msra.gmra.mxu0 %v6238_v27 }
 0xc34   :  { %2893 = vmatpush1.bf16.msra.mxu1 %v7363_v8  ;;  %2934 = vmatpush1.bf16.msra.mxu0 %v7364_v32  ;;  %v7436_v8 = vld [vmem:[#allocation68_spill] sm:$0xff]  ;;  %v7437_v32 = vld [vmem:[#allocation71_spill] sm:$0xff] }
 0xc35   :  { %2894 = vmatprep.subr.bf16.mxu1 %v7365_v33  ;;  %2935 = vmatprep.subr.bf16.mxu0 %v7366_v41  ;;  %v7438_v33 = vld [vmem:[#allocation72_spill] sm:$0xff]  ;;  %v7439_v41 = vld [vmem:[#allocation73_spill] sm:$0xff] }
 0xc36   :  { %2924 = vmatprep.mubr.bf16.mxu1 %v7154_v40  ;;  %2965 = vmatprep.mubr.bf16.mxu0 %v7154_v40 }
 0xc38   :  { %2895 = vmatpush1.bf16.msra.mxu1 %v7367_v54  ;;  %2936 = vmatpush1.bf16.msra.mxu0 %v7368_v56  ;;  %v7440_v54 = vld [vmem:[#allocation74_spill] sm:$0xff]  ;;  %v7441_v56 = vld [vmem:[#allocation75_spill] sm:$0xff] }
 0xc39   :  { %2896 = vmatprep.subr.bf16.mxu1 %v7369_v61  ;;  %2937 = vmatprep.subr.bf16.mxu0 %v7370_v59  ;;  %v7442_v61 = vld [vmem:[#allocation76_spill] sm:$0xff] }
 0xc3c   :  { %2897 = vmatpush1.bf16.msra.mxu1 %v7371_v57  ;;  %2938 = vmatpush1.bf16.msra.mxu0 %v7372_v42 }
 0xc3d   :  { %2898 = vmatprep.subr.bf16.mxu1 %v7373_v39  ;;  %2939 = vmatprep.subr.bf16.mxu0 %v7374_v5 }
 0xc40   :  { %2899 = vmatpush1.bf16.msra.mxu1 %v7375_v58  ;;  %2940 = vmatpush1.bf16.msra.mxu0 %v7376_v48 }
 0xc41   :  { %2900 = vmatprep.subr.bf16.mxu1 %v7377_v43  ;;  %2941 = vmatprep.subr.bf16.mxu0 %v7378_v11 }
 0xc44   :  { %2901 = vmatpush1.bf16.msra.mxu1 %v7379_v50  ;;  %2942 = vmatpush1.bf16.msra.mxu0 %v7428_v44 }
 0xc45   :  { %2902 = vmatprep.subr.bf16.mxu1 %v7429_v18  ;;  %2943 = vmatprep.subr.bf16.mxu0 %v7430_v17 }
 0xc48   :  { %2903 = vmatpush1.bf16.msra.mxu1 %v7431_v13  ;;  %2944 = vmatpush1.bf16.msra.mxu0 %v7432_v63 }
 0xc49   :  { %2904 = vmatprep.subr.bf16.mxu1 %v7433_v53  ;;  %2945 = vmatprep.subr.bf16.mxu0 %v7434_v24 }
 0xc4c   :  { %2905 = vmatpush1.bf16.msra.mxu1 %v7435_v25  ;;  %2946 = vmatpush1.bf16.msra.mxu0 %v7436_v8 }
 0xc4d   :  { %2906 = vmatprep.subr.bf16.mxu1 %v7437_v32  ;;  %2947 = vmatprep.subr.bf16.mxu0 %v7438_v33 }
 0xc50   :  { %2907 = vmatpush1.bf16.msra.mxu1 %v7439_v41  ;;  %2948 = vmatpush1.bf16.msra.mxu0 %v7440_v54 }
 0xc51   :  { %2999 = vmatprep.subr.bf16.mxu1 %v7441_v56  ;;  %3040 = vmatprep.subr.bf16.mxu0 %v7442_v61 }
 0xcd3   :  { %v6414_v59 = vpop.f32.mrf.mxu1  ;;  %v6416_v57 = vpop.f32.mrf.mxu0 }
 0xcd5   :  { %v6418_v42 = vpop.f32.mrf.mxu1  ;;  %v6420_v39 = vpop.f32.mrf.mxu0 }
 0xcd7   :  { %v2719_v5 = vpop.f32.mrf.mxu1  ;;  %v2760_v58 = vpop.f32.mrf.mxu0 }
 0xcd9   :  { %v2720_v48 = vpop.f32.mrf.mxu1  ;;  %v2761_v43 = vpop.f32.mrf.mxu0 }
 0xcf3   :  { %v2797_v11 = vpop.f32.mrf.mxu1  ;;  %v2838_v50 = vpop.f32.mrf.mxu0 }
 0xcf4   :  { %v2849_v27 = vrot.slane %v2797_v11, 6  ;;  %v2851_v41 = vrot.slane %v2838_v50, 6 }
 0xcf5   :  { %v2799_v44 = vpop.f32.mrf.mxu1  ;;  %v2840_v18 = vpop.f32.mrf.mxu0 }
 0xcf6   :  { %v2857_v17 = vadd.f32 %v2849_v27, %v7395_v55  ;;  %v2850_v13 = vrot.slane %v2799_v44, 6  ;;  %v2859_v54 = vadd.f32 %v2851_v41, %v7397_v35  ;;  %v2852_v56 = vrot.slane %v2840_v18, 6 }
 0xcf7   :  { %v2801_v63 = vpop.f32.mrf.mxu1  ;;  %v2842_v53 = vpop.f32.mrf.mxu0 }
 0xcf8   :  { %v3974_v24 = vmul.f32 -1.442695, %v2857_v17  ;;  %v2858_v25 = vadd.f32 %v2850_v13, %v7396_v26  ;;  %v3976_v61 = vmul.f32 -1.442695, %v2859_v54  ;;  %v2860_v58 = vadd.f32 %v2852_v56, %v7398_v51  ;;  %v7448_v54 = vld [vmem:[#allocation82_spill] sm:$0xff]  ;;  %v7449_v56 = vld [vmem:[#allocation83_spill] sm:$0xff] }
 0xcf9   :  { %v2802_v8 = vpop.f32.mrf.mxu1  ;;  %v2843_v32 = vpop.f32.mrf.mxu0  ;;  %v2881_v13 = vrot.slane %v6235_v28, 6  ;;  %v7443_v28 = vld [vmem:[#allocation77_spill] sm:$0xff] }
 0xcfa   :  { %4406 = vpow2.f32 %v3974_v24  ;;  %v3975_v33 = vmul.f32 -1.442695, %v2858_v25 }
 0xcfc   :  { %4408 = vpow2.f32 %v3975_v33 }
 0xcfd   :  { %4410 = vpow2.f32 %v3976_v61  ;;  %v7454_v61 = vld [vmem:[#allocation88_spill] sm:$0xff] }
 0xd07   :  { %v4407_v5 = vpop.eup %4406 }
 0xd08   :  { %v2870_v48 = vadd.f32 1.0, %v4407_v5  ;;  %v7455_v5 = vld [vmem:[#allocation89_spill] sm:$0xff] }
 0xd09   :  { %v4409_v43 = vpop.eup %4408 }
 0xd0a   :  { %4412 = vrcp.f32 %v2870_v48  ;;  %v2871_v11 = vadd.f32 1.0, %v4409_v43  ;;  %v4411_v27 = vpop.eup %4410  ;;  %v7457_v48 = vld [vmem:[#allocation91_spill] sm:$0xff]  ;;  %v7458_v43 = vld [vmem:[#allocation92_spill] sm:$0xff] }
 0xd0b   :  { %4414 = vtanh.f32 %v2860_v58  ;;  %v2872_v63 = vadd.f32 1.0, %v4411_v27  ;;  %v7456_v58 = vld [vmem:[#allocation90_spill] sm:$0xff]  ;;  %v7460_v27 = vld [vmem:[#allocation31_spill] sm:$0xff] }
 0xd0c   :  { %4416 = vrcp.f32 %v2871_v11  ;;  %v7459_v11 = vld [vmem:[#allocation30_spill] sm:$0xff] }
 0xd0d   :  { %4418 = vrcp.f32 %v2872_v63  ;;  %v7465_v63 = vld [vmem:[#allocation36_spill] sm:$0xff] }
 0xd17   :  { %v4413_v44 = vpop.eup %4412 }
 0xd18   :  { %v4415_v17 = vpop.eup %4414 }
 0xd19   :  { %v4417_v50 = vpop.eup %4416  ;;  %v2884_v18 = vmul.f32 %v4415_v17, %v4413_v44  ;;  %v7461_v44 = vld [vmem:[#allocation95_spill] sm:$0xff]  ;;  %v7462_v17 = vld [vmem:[#allocation32_spill] sm:$0xff] }
 0xd1a   :  { %v2883_v53 = vmul.f32 %v4417_v50, %v2881_v13  ;;  %v4419_v25 = vpop.eup %4418  ;;  %v7463_v13 = vld [vmem:[#allocation33_spill] sm:$0xff]  ;;  %v7464_v50 = vld [vmem:[#allocation34_spill] sm:$0xff] }
 0xd1c   :  { %v6427_v24 = vadd.f32 %v2884_v18, %v2883_v53  ;;  %v7466_v53 = vld [vmem:[#allocation37_spill] sm:$0xff] }
 0xd1d   :  { %v7467_v18 = vld [vmem:[#allocation93_spill] sm:$0xff] }
 0xd1e   :  { %4420 = vtanh.f32 %v6427_v24 }
 0xd2b   :  { %v4421_v8 = vpop.eup %4420 }
 0xd2c   :  { %v2887_v32 = vmul.f32 %v4421_v8, %v4419_v25  ;;  %v2716_v25 = vadd.f32 %v6414_v59, %v7467_v18  ;;  %v2757_v59 = vadd.f32 %v6416_v57, %v5523_v45 }
 0xd2e   :  { %v2888_v33 = vpack.c.bf16 %v2887_v32, %v2887_v32 }
 0xd30   :  { %v6430_v41 = vrot.slane %v2888_v33, 1  ;;  %v7468_v33 = vld [vmem:[#allocation94_spill] sm:$0xff] }
 0xd32   :  { %2925 = vmatmul.mubr.bf16.vlgmr.msra.gmra.mxu1 %v6430_v41  ;;  %2966 = vmatmul.mubr.bf16.vlgmr.msra.gmra.mxu0 %v6430_v41 }
 0xd33   :  { %3000 = vmatpush1.bf16.msra.mxu1 %v6042_v7  ;;  %3041 = vmatpush1.bf16.msra.mxu0 %v6045_v1  ;;  %v7444_v7 = vld [vmem:[#allocation78_spill] sm:$0xff]  ;;  %v7445_v1 = vld [vmem:[#allocation79_spill] sm:$0xff] }
 0xd34   :  { %3001 = vmatprep.subr.bf16.mxu1 %v6048_v15  ;;  %3042 = vmatprep.subr.bf16.mxu0 %v6051_v19  ;;  %v7446_v15 = vld [vmem:[#allocation80_spill] sm:$0xff]  ;;  %v7447_v19 = vld [vmem:[#allocation81_spill] sm:$0xff] }
 0xd35   :  { %3031 = vmatprep.mubr.bf16.mxu1 %v7154_v40  ;;  %3072 = vmatprep.mubr.bf16.mxu0 %v7154_v40 }
 0xd37   :  { %3002 = vmatpush1.bf16.msra.mxu1 %v6056_v10  ;;  %3043 = vmatpush1.bf16.msra.mxu0 %v6059_v16  ;;  %v7450_v10 = vld [vmem:[#allocation84_spill] sm:$0xff]  ;;  %v7451_v16 = vld [vmem:[#allocation85_spill] sm:$0xff] }
 0xd38   :  { %3003 = vmatprep.subr.bf16.mxu1 %v6062_v9  ;;  %3044 = vmatprep.subr.bf16.mxu0 %v6065_v60  ;;  %v7452_v9 = vld [vmem:[#allocation86_spill] sm:$0xff]  ;;  %v7453_v60 = vld [vmem:[#allocation87_spill] sm:$0xff] }
 0xd3b   :  { %3004 = vmatpush1.bf16.msra.mxu1 %v7443_v28  ;;  %3045 = vmatpush1.bf16.msra.mxu0 %v7444_v7  ;;  %v2718_v28 = vadd.f32 %v6418_v42, %v7468_v33 }
 0xd3c   :  { %3005 = vmatprep.subr.bf16.mxu1 %v7445_v1  ;;  %3046 = vmatprep.subr.bf16.mxu0 %v7446_v15 }
 0xd3f   :  { %3006 = vmatpush1.bf16.msra.mxu1 %v7447_v19  ;;  %3047 = vmatpush1.bf16.msra.mxu0 %v7448_v54 }
 0xd40   :  { %3007 = vmatprep.subr.bf16.mxu1 %v7449_v56  ;;  %3048 = vmatprep.subr.bf16.mxu0 %v7450_v10 }
 0xd43   :  { %3008 = vmatpush1.bf16.msra.mxu1 %v7451_v16  ;;  %3049 = vmatpush1.bf16.msra.mxu0 %v7452_v9 }
 0xd44   :  { %3009 = vmatprep.subr.bf16.mxu1 %v7453_v60  ;;  %3050 = vmatprep.subr.bf16.mxu0 %v7454_v61 }
 0xd47   :  { %3010 = vmatpush1.bf16.msra.mxu1 %v7455_v5  ;;  %3051 = vmatpush1.bf16.msra.mxu0 %v7456_v58  ;;  %v2759_v5 = vadd.f32 %v6420_v39, %v5528_v3 }
 0xd48   :  { %3011 = vmatprep.subr.bf16.mxu1 %v7457_v48  ;;  %3052 = vmatprep.subr.bf16.mxu0 %v7458_v43 }
 0xd4b   :  { %3012 = vmatpush1.bf16.msra.mxu1 %v7459_v11  ;;  %3053 = vmatpush1.bf16.msra.mxu0 %v7460_v27 }
 0xd4c   :  { %3013 = vmatprep.subr.bf16.mxu1 %v7461_v44  ;;  %3054 = vmatprep.subr.bf16.mxu0 %v7462_v17 }
 0xd4f   :  { %3014 = vmatpush1.bf16.msra.mxu1 %v7463_v13  ;;  %3055 = vmatpush1.bf16.msra.mxu0 %v7464_v50 }
 0xd50   :  { %3081 = vmatprep.subr.bf16.mxu1 %v7465_v63  ;;  %3122 = vmatprep.subr.bf16.mxu0 %v7466_v53 }
 0xdf2   :  { %v2926_v8 = vpop.f32.mrf.mxu1  ;;  %v2967_v32 = vpop.f32.mrf.mxu0 }
 0xdf3   :  { %v2927_v7 = vadd.f32 %v2926_v8, %v2716_v25  ;;  %v2968_v61 = vadd.f32 %v2967_v32, %v2757_v59  ;;  %v6528_v59 = vld [vmem:[#allocation13 + $0xe4] ss:$16 sps:$4 sm:$0xff]  }
 0xdf4   :  { %v2928_v1 = vpop.f32.mrf.mxu1  ;;  %v2969_v15 = vpop.f32.mrf.mxu0  ;;  %7475 = vst [vmem:[#allocation45_spill] sm:$0xff] %v6528_v59 }
 0xdf5   :  { %v3977_v19 = vmul.f32 -1.442695, %v2927_v7  ;;  %v2929_v54 = vadd.f32 %v2928_v1, %v2718_v28  ;;  %v3979_v42 = vmul.f32 -1.442695, %v2968_v61  ;;  %v2970_v58 = vadd.f32 %v2969_v15, %v2759_v5  ;;  %v7470_v15 = vld [vmem:[#allocation40_spill] sm:$0xff] }
 0xdf6   :  { %v2930_v56 = vpop.f32.mrf.mxu1  ;;  %v2971_v10 = vpop.f32.mrf.mxu0  ;;  %v6531_v61 = vld [vmem:[#allocation13 + $0xec] ss:$16 sps:$4 sm:$0xff]   ;;  %v6536_v5 = vld [vmem:[#allocation13 + $0xe0] ss:$16 sps:$4 sm:$0xff]  }
 0xdf7   :  { %4422 = vpow2.f32 %v3977_v19  ;;  %v3978_v16 = vmul.f32 -1.442695, %v2929_v54  ;;  %v7471_v19 = vld [vmem:[#allocation41_spill] sm:$0xff]  ;;  %7476 = vst [vmem:[#allocation46_spill] sm:$0xff] %v6531_v61  ;;  %7477 = vst [vmem:[#allocation47_spill] sm:$0xff] %v6536_v5 }
 0xdf8   :  { %v2931_v9 = vpop.f32.mrf.mxu1  ;;  %v2972_v60 = vpop.f32.mrf.mxu0  ;;  %v6510_v54 = vld [vmem:[#allocation11 + $0x20] ss:$16 sps:$4 sm:$0xff]   ;;  %v6513_v56 = vld [vmem:[#allocation11 + $0x28] ss:$16 sps:$4 sm:$0xff]   ;;  %v6516_v10 = vld [vmem:[#allocation11 + $0x4] ss:$16 sps:$4 sm:$0xff]  }
 0xdf9   :  { %4424 = vpow2.f32 %v3978_v16  ;;  %v6519_v16 = vld [vmem:[#allocation11 + $0xc] ss:$16 sps:$4 sm:$0xff]   ;;  %v6522_v9 = vld [vmem:[#allocation11] ss:$16 sps:$4 sm:$0xff]   ;;  %v6525_v60 = vld [vmem:[#allocation11 + $0x8] ss:$16 sps:$4 sm:$0xff]  }
 0xdfa   :  { %4426 = vpow2.f32 %v3979_v42  ;;  %7472 = vst [vmem:[#allocation42_spill] sm:$0xff] %v6519_v16  ;;  %7473 = vst [vmem:[#allocation43_spill] sm:$0xff] %v6522_v9  ;;  %v6539_v42 = vld [vmem:[#allocation13 + $0xe8] ss:$16 sps:$4 sm:$0xff]  }
 0xdfb   :  { %4428 = vtanh.f32 %v2970_v58  ;;  %7474 = vst [vmem:[#allocation44_spill] sm:$0xff] %v6525_v60  ;;  %7478 = vst [vmem:[#allocation48_spill] sm:$0xff] %v6539_v42  ;;  %v6542_v58 = vld [vmem:[#allocation13 + $0xc4] ss:$16 sps:$4 sm:$0xff]  }
 0xdfc   :  { %7479 = vst [vmem:[#allocation49_spill] sm:$0xff] %v6542_v58 }
 0xe04   :  { %v4423_v48 = vpop.eup %4422 }
 0xe05   :  { %v2983_v43 = vadd.f32 1.0, %v4423_v48  ;;  %v6545_v48 = vld [vmem:[#allocation13 + $0xcc] ss:$16 sps:$4 sm:$0xff]  }
 0xe06   :  { %v4425_v11 = vpop.eup %4424  ;;  %7480 = vst [vmem:[#allocation69_spill] sm:$0xff] %v6545_v48 }
 0xe07   :  { %4430 = vrcp.f32 %v2983_v43  ;;  %v2984_v27 = vadd.f32 1.0, %v4425_v11  ;;  %v4427_v44 = vpop.eup %4426  ;;  %v6553_v43 = vld [vmem:[#allocation13 + $0xc8] ss:$16 sps:$4 sm:$0xff]   ;;  %v6556_v11 = vld [vmem:[#allocation13 + $0xa4] ss:$16 sps:$4 sm:$0xff]  }
 0xe08   :  { %v4429_v17 = vpop.eup %4428  ;;  %v2985_v57 = vadd.f32 1.0, %v4427_v44  ;;  %7482 = vst [vmem:[#allocation50_spill] sm:$0xff] %v6553_v43  ;;  %7483 = vst [vmem:[#allocation51_spill] sm:$0xff] %v6556_v11  ;;  %v6562_v44 = vld [vmem:[#allocation13 + $0xa0] ss:$16 sps:$4 sm:$0xff]  }
 0xe09   :  { %4432 = vrcp.f32 %v2984_v27  ;;  %v6559_v27 = vld [vmem:[#allocation13 + $0xac] ss:$16 sps:$4 sm:$0xff]   ;;  %7485 = vst [vmem:[#allocation53_spill] sm:$0xff] %v6562_v44 }
 0xe0a   :  { %4434 = vrcp.f32 %v2985_v57  ;;  %7484 = vst [vmem:[#allocation52_spill] sm:$0xff] %v6559_v27  ;;  %v6577_v57 = vld [vmem:[#allocation13 + $0x88] ss:$16 sps:$4 sm:$0xff]  }
 0xe0b   :  { %7490 = vst [vmem:[#allocation64_spill] sm:$0xff] %v6577_v57 }
 0xe14   :  { %v4431_v13 = vpop.eup %4430 }
 0xe15   :  { %v2994_v50 = vmul.f32 %v4431_v13, %v4429_v17  ;;  %v6565_v17 = vld [vmem:[#allocation13 + $0xa8] ss:$16 sps:$4 sm:$0xff]   ;;  %v6568_v13 = vld [vmem:[#allocation13 + $0x84] ss:$16 sps:$4 sm:$0xff]  }
 0xe16   :  { %v4433_v25 = vpop.eup %4432  ;;  %7486 = vst [vmem:[#allocation54_spill] sm:$0xff] %v6565_v17  ;;  %7487 = vst [vmem:[#allocation55_spill] sm:$0xff] %v6568_v13 }
 0xe17   :  { %v2993_v8 = vmul.f32 %v4433_v25, %v6289_v6  ;;  %v4435_v39 = vpop.eup %4434  ;;  %v7469_v6 = vld [vmem:[#allocation39_spill] sm:$0xff] }
 0xe18   :  { %v6574_v25 = vld [vmem:[#allocation13 + $0x80] ss:$16 sps:$4 sm:$0xff]  }
 0xe19   :  { %v6477_v32 = vadd.f32 %v2994_v50, %v2993_v8  ;;  %v6571_v50 = vld [vmem:[#allocation13 + $0x8c] ss:$16 sps:$4 sm:$0xff]   ;;  %7489 = vst [vmem:[#allocation65_spill] sm:$0xff] %v6574_v25  ;;  %v6580_v8 = vld [vmem:[#allocation13 + $0x64] ss:$16 sps:$4 sm:$0xff]  }
 0xe1a   :  { %7488 = vst [vmem:[#allocation63_spill] sm:$0xff] %v6571_v50  ;;  %7491 = vst [vmem:[#allocation66_spill] sm:$0xff] %v6580_v8 }
 0xe1b   :  { %4436 = vtanh.f32 %v6477_v32 }
 0xe28   :  { %v4437_v28 = vpop.eup %4436 }
 0xe29   :  { %v6480_v7 = vmul.f32 %v4437_v28, %v4435_v39  ;;  %v6583_v39 = vld [vmem:[#allocation13 + $0x6c] ss:$16 sps:$4 sm:$0xff]   ;;  %v6586_v28 = vld [vmem:[#allocation13 + $0x60] ss:$16 sps:$4 sm:$0xff]  }
 0xe2a   :  { %7492 = vst [vmem:[#allocation56_spill] sm:$0xff] %v6583_v39  ;;  %7493 = vst [vmem:[#allocation57_spill] sm:$0xff] %v6586_v28 }
 0xe2b   :  { %v2998_v1 = vpack.c.bf16 %v6480_v7, %v6480_v7 }
 0xe2d   :  { %3032 = vmatmul.mubr.bf16.vlgmr.msra.gmra.mxu1 %v2998_v1  ;;  %3073 = vmatmul.mubr.bf16.vlgmr.msra.gmra.mxu0 %v2998_v1  ;;  %v6589_v1 = vld [vmem:[#allocation13 + $0x68] ss:$16 sps:$4 sm:$0xff]  }
 0xe2e   :  { %3082 = vmatpush1.bf16.msra.mxu1 %v6296_v38  ;;  %3123 = vmatpush1.bf16.msra.mxu0 %v6299_v30  ;;  %7494 = vst [vmem:[#allocation58_spill] sm:$0xff] %v6589_v1 }
 0xe2f   :  { %3083 = vmatprep.subr.bf16.mxu1 %v6302_v2  ;;  %3124 = vmatprep.subr.bf16.mxu0 %v6305_v21 }
 0xe30   :  { %3113 = vmatprep.mubr.bf16.mxu1 %v7154_v40  ;;  %3154 = vmatprep.mubr.bf16.mxu0 %v7154_v40 }
 0xe32   :  { %3084 = vmatpush1.bf16.msra.mxu1 %v6310_v34  ;;  %3125 = vmatpush1.bf16.msra.mxu0 %v6313_v49 }
 0xe33   :  { %3085 = vmatprep.subr.bf16.mxu1 %v6316_v4  ;;  %3126 = vmatprep.subr.bf16.mxu0 %v6319_v31 }
 0xe36   :  { %3086 = vmatpush1.bf16.msra.mxu1 %v6322_v29  ;;  %3127 = vmatpush1.bf16.msra.mxu0 %v6325_v52 }
 0xe37   :  { %3087 = vmatprep.subr.bf16.mxu1 %v6328_v14  ;;  %3128 = vmatprep.subr.bf16.mxu0 %v6331_v37 }
 0xe3a   :  { %3088 = vmatpush1.bf16.msra.mxu1 %v6334_v12  ;;  %3129 = vmatpush1.bf16.msra.mxu0 %v6337_v0 }
 0xe3b   :  { %3089 = vmatprep.subr.bf16.mxu1 %v6340_v22  ;;  %3130 = vmatprep.subr.bf16.mxu0 %v7469_v6 }
 0xe3e   :  { %3090 = vmatpush1.bf16.msra.mxu1 %v7470_v15  ;;  %3131 = vmatpush1.bf16.msra.mxu0 %v7471_v19 }
 0xe3f   :  { %3091 = vmatprep.subr.bf16.mxu1 %v6352_v23  ;;  %3132 = vmatprep.subr.bf16.mxu0 %v6355_v47 }
 0xe42   :  { %3092 = vmatpush1.bf16.msra.mxu1 %v6358_v20  ;;  %3133 = vmatpush1.bf16.msra.mxu0 %v6361_v62 }
 0xe43   :  { %3093 = vmatprep.subr.bf16.mxu1 %v6364_v46  ;;  %3134 = vmatprep.subr.bf16.mxu0 %v6367_v36 }
 0xe46   :  { %3094 = vmatpush1.bf16.msra.mxu1 %v6510_v54  ;;  %3135 = vmatpush1.bf16.msra.mxu0 %v6513_v56 }
 0xe47   :  { %3095 = vmatprep.subr.bf16.mxu1 %v6516_v10  ;;  %3136 = vmatprep.subr.bf16.mxu0 %v6519_v16 }
 0xe4a   :  { %3096 = vmatpush1.bf16.msra.mxu1 %v6522_v9  ;;  %3137 = vmatpush1.bf16.msra.mxu0 %v6525_v60 }
 0xe4b   :  { %3210 = vmatprep.subr.bf16.mxu1 %v6528_v59  ;;  %3251 = vmatprep.subr.bf16.mxu0 %v6531_v61 }
 0xe4d   :  { %3114 = vmatmul.mubr.bf16.vlgmr.msra.gmra.mxu1 %v6430_v41  ;;  %3155 = vmatmul.mubr.bf16.vlgmr.msra.gmra.mxu0 %v6430_v41  ;;  %v6550_v41 = vld [vmem:[#allocation13 + $0xc0] ss:$16 sps:$4 sm:$0xff]  }
 0xe4e   :  { %3211 = vmatpush1.bf16.msra.mxu1 %v6536_v5  ;;  %3252 = vmatpush1.bf16.msra.mxu0 %v6539_v42  ;;  %7481 = vst [vmem:[#allocation70_spill] sm:$0xff] %v6550_v41 }
 0xe4f   :  { %3212 = vmatprep.subr.bf16.mxu1 %v6542_v58  ;;  %3253 = vmatprep.subr.bf16.mxu0 %v6545_v48 }
 0xe50   :  { %3242 = vmatprep.mubr.bf16.mxu1 %v7154_v40  ;;  %3283 = vmatprep.mubr.bf16.mxu0 %v7154_v40 }
 0xe52   :  { %3213 = vmatpush1.bf16.msra.mxu1 %v6550_v41  ;;  %3254 = vmatpush1.bf16.msra.mxu0 %v6553_v43 }
 0xe53   :  { %3214 = vmatprep.subr.bf16.mxu1 %v6556_v11  ;;  %3255 = vmatprep.subr.bf16.mxu0 %v6559_v27 }
 0xe56   :  { %3215 = vmatpush1.bf16.msra.mxu1 %v6562_v44  ;;  %3256 = vmatpush1.bf16.msra.mxu0 %v6565_v17 }
 0xe57   :  { %3216 = vmatprep.subr.bf16.mxu1 %v6568_v13  ;;  %3257 = vmatprep.subr.bf16.mxu0 %v6571_v50  ;;  %v4663_v50 = vld [vmem:[#allocation14 + $0xec] ss:$16 sps:$4 sm:$0xff]  }
 0xe5a   :  { %3217 = vmatpush1.bf16.msra.mxu1 %v6574_v25  ;;  %3258 = vmatpush1.bf16.msra.mxu0 %v6577_v57  ;;  %v6592_v25 = vld [vmem:[#allocation13 + $0x44] ss:$16 sps:$4 sm:$0xff]   ;;  %v6595_v57 = vld [vmem:[#allocation13 + $0x4c] ss:$16 sps:$4 sm:$0xff]  }
 0xe5b   :  { %3218 = vmatprep.subr.bf16.mxu1 %v6580_v8  ;;  %3259 = vmatprep.subr.bf16.mxu0 %v6583_v39  ;;  %7495 = vst [vmem:[#allocation59_spill] sm:$0xff] %v6592_v25  ;;  %7496 = vst [vmem:[#allocation60_spill] sm:$0xff] %v6595_v57  ;;  %v6598_v8 = vld [vmem:[#allocation13 + $0x40] ss:$16 sps:$4 sm:$0xff]   ;;  %v6601_v39 = vld [vmem:[#allocation13 + $0x48] ss:$16 sps:$4 sm:$0xff]  }
 0xe5c   :  { %7497 = vst [vmem:[#allocation61_spill] sm:$0xff] %v6598_v8  ;;  %7498 = vst [vmem:[#allocation62_spill] sm:$0xff] %v6601_v39 }
 0xe5e   :  { %3219 = vmatpush1.bf16.msra.mxu1 %v6586_v28  ;;  %3260 = vmatpush1.bf16.msra.mxu0 %v6589_v1  ;;  %v6604_v28 = vld [vmem:[#allocation13 + $0x24] ss:$16 sps:$4 sm:$0xff]   ;;  %v6607_v1 = vld [vmem:[#allocation13 + $0x2c] ss:$16 sps:$4 sm:$0xff]  }
 0xe5f   :  { %3220 = vmatprep.subr.bf16.mxu1 %v6592_v25  ;;  %3261 = vmatprep.subr.bf16.mxu0 %v6595_v57  ;;  %7499 = vst [vmem:[#allocation67_spill] sm:$0xff] %v6604_v28  ;;  %7500 = vst [vmem:[#allocation68_spill] sm:$0xff] %v6607_v1  ;;  %v6610_v25 = vld [vmem:[#allocation13 + $0x20] ss:$16 sps:$4 sm:$0xff]   ;;  %v6613_v57 = vld [vmem:[#allocation13 + $0x28] ss:$16 sps:$4 sm:$0xff]  }
 0xe60   :  { %7501 = vst [vmem:[#allocation71_spill] sm:$0xff] %v6610_v25  ;;  %7502 = vst [vmem:[#allocation72_spill] sm:$0xff] %v6613_v57 }
 0xe62   :  { %3221 = vmatpush1.bf16.msra.mxu1 %v6598_v8  ;;  %3262 = vmatpush1.bf16.msra.mxu0 %v6601_v39  ;;  %v6616_v8 = vld [vmem:[#allocation13 + $0x4] ss:$16 sps:$4 sm:$0xff]   ;;  %v6619_v39 = vld [vmem:[#allocation13 + $0xc] ss:$16 sps:$4 sm:$0xff]  }
 0xe63   :  { %3222 = vmatprep.subr.bf16.mxu1 %v6604_v28  ;;  %3263 = vmatprep.subr.bf16.mxu0 %v6607_v1  ;;  %7503 = vst [vmem:[#allocation73_spill] sm:$0xff] %v6616_v8  ;;  %7504 = vst [vmem:[#allocation74_spill] sm:$0xff] %v6619_v39  ;;  %v6622_v28 = vld [vmem:[#allocation13] ss:$16 sps:$4 sm:$0xff]   ;;  %v6625_v1 = vld [vmem:[#allocation13 + $0x8] ss:$16 sps:$4 sm:$0xff]  }
 0xe64   :  { %7505 = vst [vmem:[#allocation75_spill] sm:$0xff] %v6622_v28  ;;  %7506 = vst [vmem:[#allocation76_spill] sm:$0xff] %v6625_v1 }
 0xe66   :  { %3223 = vmatpush1.bf16.msra.mxu1 %v6610_v25  ;;  %3264 = vmatpush1.bf16.msra.mxu0 %v6613_v57  ;;  %v4662_v25 = vld [vmem:[#allocation14 + $0xe4] ss:$16 sps:$4 sm:$0xff]  }
 0xe67   :  { %3224 = vmatprep.subr.bf16.mxu1 %v6616_v8  ;;  %3265 = vmatprep.subr.bf16.mxu0 %v6619_v39 }
 0xe6a   :  { %3225 = vmatpush1.bf16.msra.mxu1 %v6622_v28  ;;  %3266 = vmatpush1.bf16.msra.mxu0 %v6625_v1 }
 0xe6b   :  { %3317 = vmatprep.subr.bf16.mxu1 %v4662_v25  ;;  %3358 = vmatprep.subr.bf16.mxu0 %v4663_v50 }
 0xeed   :  { %v6628_v57 = vpop.f32.mrf.mxu1  ;;  %v6630_v13 = vpop.f32.mrf.mxu0 }
 0xeef   :  { %v6632_v8 = vpop.f32.mrf.mxu1  ;;  %v6634_v17 = vpop.f32.mrf.mxu0 }
 0xef1   :  { %v3037_v39 = vpop.f32.mrf.mxu1  ;;  %v3078_v44 = vpop.f32.mrf.mxu0 }
 0xef3   :  { %v3038_v27 = vpop.f32.mrf.mxu1  ;;  %v3079_v28 = vpop.f32.mrf.mxu0 }
 0xf0d   :  { %v3115_v11 = vpop.f32.mrf.mxu1  ;;  %v3156_v43 = vpop.f32.mrf.mxu0 }
 0xf0e   :  { %v3167_v41 = vrot.slane %v3115_v11, 4  ;;  %v3169_v27 = vrot.slane %v3156_v43, 4 }
 0xf0f   :  { %v3117_v1 = vpop.f32.mrf.mxu1  ;;  %v3158_v48 = vpop.f32.mrf.mxu0 }
 0xf10   :  { %v3175_v25 = vadd.f32 %v3167_v41, %v7395_v55  ;;  %v3168_v50 = vrot.slane %v3117_v1, 4  ;;  %v3177_v44 = vadd.f32 %v3169_v27, %v7397_v35  ;;  %v3170_v28 = vrot.slane %v3158_v48, 4 }
 0xf11   :  { %v3119_v58 = vpop.f32.mrf.mxu1  ;;  %v3160_v42 = vpop.f32.mrf.mxu0 }
 0xf12   :  { %v3980_v5 = vmul.f32 -1.442695, %v3175_v25  ;;  %v3176_v61 = vadd.f32 %v3168_v50, %v7396_v26  ;;  %v3982_v11 = vmul.f32 -1.442695, %v3177_v44  ;;  %v3178_v16 = vadd.f32 %v3170_v28, %v7398_v51  ;;  %v4665_v28 = vld [vmem:[#allocation14 + $0xe8] ss:$16 sps:$4 sm:$0xff]  }
 0xf13   :  { %v3120_v59 = vpop.f32.mrf.mxu1  ;;  %v3161_v60 = vpop.f32.mrf.mxu0 }
 0xf14   :  { %4438 = vpow2.f32 %v3980_v5  ;;  %v3981_v39 = vmul.f32 -1.442695, %v3176_v61  ;;  %v3199_v61 = vrot.slane %v6427_v24, 6  ;;  %v4664_v24 = vld [vmem:[#allocation14 + $0xe0] ss:$16 sps:$4 sm:$0xff]  }
 0xf16   :  { %4440 = vpow2.f32 %v3981_v39 }
 0xf17   :  { %4442 = vpow2.f32 %v3982_v11  ;;  %v4666_v11 = vld [vmem:[#allocation14 + $0xc4] ss:$16 sps:$4 sm:$0xff]  }
 0xf21   :  { %v4439_v9 = vpop.eup %4438 }
 0xf22   :  { %v3188_v41 = vadd.f32 1.0, %v4439_v9 }
 0xf23   :  { %v4441_v1 = vpop.eup %4440 }
 0xf24   :  { %4444 = vrcp.f32 %v3188_v41  ;;  %v3189_v42 = vadd.f32 1.0, %v4441_v1  ;;  %v4443_v59 = vpop.eup %4442  ;;  %v4667_v41 = vld [vmem:[#allocation14 + $0xcc] ss:$16 sps:$4 sm:$0xff]   ;;  %v4668_v1 = vld [vmem:[#allocation14 + $0xc0] ss:$16 sps:$4 sm:$0xff]  }
 0xf25   :  { %4446 = vtanh.f32 %v3178_v16  ;;  %v3190_v43 = vadd.f32 1.0, %v4443_v59  ;;  %v4670_v59 = vld [vmem:[#allocation14 + $0xa4] ss:$16 sps:$4 sm:$0xff]  }
 0xf26   :  { %4448 = vrcp.f32 %v3189_v42  ;;  %v4669_v42 = vld [vmem:[#allocation14 + $0xc8] ss:$16 sps:$4 sm:$0xff]  }
 0xf27   :  { %4450 = vrcp.f32 %v3190_v43  ;;  %v4675_v43 = vld [vmem:[#allocation14 + $0x8c] ss:$16 sps:$4 sm:$0xff]  }
 0xf31   :  { %v4445_v60 = vpop.eup %4444 }
 0xf32   :  { %v4447_v5 = vpop.eup %4446 }
 0xf33   :  { %v4449_v58 = vpop.eup %4448  ;;  %v3202_v48 = vmul.f32 %v4447_v5, %v4445_v60  ;;  %v4671_v60 = vld [vmem:[#allocation14 + $0xac] ss:$16 sps:$4 sm:$0xff]   ;;  %v4672_v5 = vld [vmem:[#allocation14 + $0xa0] ss:$16 sps:$4 sm:$0xff]  }
 0xf34   :  { %v3201_v25 = vmul.f32 %v4449_v58, %v3199_v61  ;;  %v4451_v9 = vpop.eup %4450  ;;  %v4673_v61 = vld [vmem:[#allocation14 + $0xa8] ss:$16 sps:$4 sm:$0xff]   ;;  %v4674_v58 = vld [vmem:[#allocation14 + $0x84] ss:$16 sps:$4 sm:$0xff]  }
 0xf36   :  { %v6641_v50 = vadd.f32 %v3202_v48, %v3201_v25  ;;  %v4676_v25 = vld [vmem:[#allocation14 + $0x80] ss:$16 sps:$4 sm:$0xff]   ;;  %v4677_v48 = vld [vmem:[#allocation14 + $0x88] ss:$16 sps:$4 sm:$0xff]  }
 0xf38   :  { %4452 = vtanh.f32 %v6641_v50 }
 0xf45   :  { %v4453_v39 = vpop.eup %4452 }
 0xf46   :  { %v3205_v27 = vmul.f32 %v4453_v39, %v4451_v9  ;;  %v4678_v9 = vld [vmem:[#allocation14 + $0x64] ss:$16 sps:$4 sm:$0xff]   ;;  %v4679_v39 = vld [vmem:[#allocation14 + $0x6c] ss:$16 sps:$4 sm:$0xff]  }
 0xf48   :  { %v3206_v44 = vpack.c.bf16 %v3205_v27, %v3205_v27  ;;  %v4680_v27 = vld [vmem:[#allocation14 + $0x60] ss:$16 sps:$4 sm:$0xff]  }
 0xf4a   :  { %v6644_v16 = vrot.slane %v3206_v44, 2  ;;  %v4681_v44 = vld [vmem:[#allocation14 + $0x68] ss:$16 sps:$4 sm:$0xff]  }
 0xf4c   :  { %3243 = vmatmul.mubr.bf16.vlgmr.msra.gmra.mxu1 %v6644_v16  ;;  %3284 = vmatmul.mubr.bf16.vlgmr.msra.gmra.mxu0 %v6644_v16 }
 0xf4d   :  { %3318 = vmatpush1.bf16.msra.mxu1 %v4664_v24  ;;  %3359 = vmatpush1.bf16.msra.mxu0 %v4665_v28  ;;  %v4682_v24 = vld [vmem:[#allocation14 + $0x44] ss:$16 sps:$4 sm:$0xff]   ;;  %v4683_v28 = vld [vmem:[#allocation14 + $0x4c] ss:$16 sps:$4 sm:$0xff]  }
 0xf4e   :  { %3319 = vmatprep.subr.bf16.mxu1 %v4666_v11  ;;  %3360 = vmatprep.subr.bf16.mxu0 %v4667_v41  ;;  %v4684_v11 = vld [vmem:[#allocation14 + $0x40] ss:$16 sps:$4 sm:$0xff]   ;;  %v4685_v41 = vld [vmem:[#allocation14 + $0x48] ss:$16 sps:$4 sm:$0xff]  }
 0xf4f   :  { %3349 = vmatprep.mubr.bf16.mxu1 %v7154_v40  ;;  %3390 = vmatprep.mubr.bf16.mxu0 %v7154_v40 }
 0xf51   :  { %3320 = vmatpush1.bf16.msra.mxu1 %v4668_v1  ;;  %3361 = vmatpush1.bf16.msra.mxu0 %v4669_v42  ;;  %v4686_v1 = vld [vmem:[#allocation14 + $0x24] ss:$16 sps:$4 sm:$0xff]   ;;  %v4687_v42 = vld [vmem:[#allocation14 + $0x2c] ss:$16 sps:$4 sm:$0xff]  }
 0xf52   :  { %3321 = vmatprep.subr.bf16.mxu1 %v4670_v59  ;;  %3362 = vmatprep.subr.bf16.mxu0 %v4671_v60  ;;  %v4688_v59 = vld [vmem:[#allocation14 + $0x20] ss:$16 sps:$4 sm:$0xff]   ;;  %v4689_v60 = vld [vmem:[#allocation14 + $0x28] ss:$16 sps:$4 sm:$0xff]  }
 0xf55   :  { %3322 = vmatpush1.bf16.msra.mxu1 %v4672_v5  ;;  %3363 = vmatpush1.bf16.msra.mxu0 %v4673_v61  ;;  %v4690_v5 = vld [vmem:[#allocation14 + $0x4] ss:$16 sps:$4 sm:$0xff]   ;;  %v4691_v61 = vld [vmem:[#allocation14 + $0xc] ss:$16 sps:$4 sm:$0xff]  }
 0xf56   :  { %3323 = vmatprep.subr.bf16.mxu1 %v4674_v58  ;;  %3364 = vmatprep.subr.bf16.mxu0 %v4675_v43  ;;  %v4692_v58 = vld [vmem:[#allocation14] ss:$16 sps:$4 sm:$0xff]   ;;  %v4693_v43 = vld [vmem:[#allocation14 + $0x8] ss:$16 sps:$4 sm:$0xff]  }
 0xf59   :  { %3324 = vmatpush1.bf16.msra.mxu1 %v4676_v25  ;;  %3365 = vmatpush1.bf16.msra.mxu0 %v4677_v48  ;;  %v3034_v25 = vadd.f32 %v6628_v57, %v7467_v18 }
 0xf5a   :  { %3325 = vmatprep.subr.bf16.mxu1 %v4678_v9  ;;  %3366 = vmatprep.subr.bf16.mxu0 %v4679_v39  ;;  %v3036_v39 = vadd.f32 %v6632_v8, %v7468_v33 }
 0xf5d   :  { %3326 = vmatpush1.bf16.msra.mxu1 %v4680_v27  ;;  %3367 = vmatpush1.bf16.msra.mxu0 %v4681_v44 }
 0xf5e   :  { %3327 = vmatprep.subr.bf16.mxu1 %v4682_v24  ;;  %3368 = vmatprep.subr.bf16.mxu0 %v4683_v28 }
 0xf61   :  { %3328 = vmatpush1.bf16.msra.mxu1 %v4684_v11  ;;  %3369 = vmatpush1.bf16.msra.mxu0 %v4685_v41 }
 0xf62   :  { %3329 = vmatprep.subr.bf16.mxu1 %v4686_v1  ;;  %3370 = vmatprep.subr.bf16.mxu0 %v4687_v42 }
 0xf65   :  { %3330 = vmatpush1.bf16.msra.mxu1 %v4688_v59  ;;  %3371 = vmatpush1.bf16.msra.mxu0 %v4689_v60  ;;  %v3077_v60 = vadd.f32 %v6634_v17, %v5528_v3 }
 0xf66   :  { %3331 = vmatprep.subr.bf16.mxu1 %v4690_v5  ;;  %3372 = vmatprep.subr.bf16.mxu0 %v4691_v61 }
 0xf69   :  { %3332 = vmatpush1.bf16.msra.mxu1 %v4692_v58  ;;  %3373 = vmatpush1.bf16.msra.mxu0 %v4693_v43 }
 0xf6a   :  { %3399 = vmatprep.subr.bf16.mxu1 %v7465_v63  ;;  %3440 = vmatprep.subr.bf16.mxu0 %v7466_v53  ;;  %v3075_v53 = vadd.f32 %v6630_v13, %v5523_v45 }
0x100c   :  { %v3244_v48 = vpop.f32.mrf.mxu1  ;;  %v3285_v9 = vpop.f32.mrf.mxu0 }
0x100d   :  { %v3245_v27 = vadd.f32 %v3244_v48, %v3034_v25  ;;  %v3286_v57 = vadd.f32 %v3285_v9, %v3075_v53 }
0x100e   :  { %v3246_v44 = vpop.f32.mrf.mxu1  ;;  %v3287_v24 = vpop.f32.mrf.mxu0 }
0x100f   :  { %v3983_v28 = vmul.f32 -1.442695, %v3245_v27  ;;  %v3247_v11 = vadd.f32 %v3246_v44, %v3036_v39  ;;  %v3985_v8 = vmul.f32 -1.442695, %v3286_v57  ;;  %v3288_v5 = vadd.f32 %v3287_v24, %v3077_v60  ;;  %v7539_v60 = vld [vmem:[#allocation73_spill] sm:$0xff] }
0x1010   :  { %v3248_v41 = vpop.f32.mrf.mxu1  ;;  %v3289_v1 = vpop.f32.mrf.mxu0 }
0x1011   :  { %4454 = vpow2.f32 %v3983_v28  ;;  %v3984_v42 = vmul.f32 -1.442695, %v3247_v11  ;;  %v3644_v41 = vrot.slane %v6480_v7, 6  ;;  %v7531_v7 = vld [vmem:[#allocation59_spill] sm:$0xff] }
0x1012   :  { %v3249_v63 = vpop.f32.mrf.mxu1  ;;  %v3290_v59 = vpop.f32.mrf.mxu0 }
0x1013   :  { %4456 = vpow2.f32 %v3984_v42  ;;  %v7507_v59 = vld [vmem:[#allocation38_spill] sm:$0xff] }
0x1014   :  { %4458 = vpow2.f32 %v3985_v8  ;;  %v3658_v53 = vsel %vm3652_vm4, %v7507_v59, %v3644_v41  ;;  %v7540_v8 = vld [vmem:[#allocation74_spill] sm:$0xff] }
0x1015   :  { %4460 = vtanh.f32 %v3288_v5  ;;  %v7541_v5 = vld [vmem:[#allocation75_spill] sm:$0xff] }
0x101e   :  { %v4455_v61 = vpop.eup %4454 }
0x101f   :  { %v3301_v58 = vadd.f32 1.0, %v4455_v61  ;;  %v7542_v61 = vld [vmem:[#allocation76_spill] sm:$0xff] }
0x1020   :  { %v4457_v43 = vpop.eup %4456 }
0x1021   :  { %4462 = vrcp.f32 %v3301_v58  ;;  %v3302_v25 = vadd.f32 1.0, %v4457_v43  ;;  %v4459_v48 = vpop.eup %4458  ;;  %v7543_v58 = vmov 0.0  }
0x1022   :  { %v4461_v39 = vpop.eup %4460  ;;  %v3303_v13 = vadd.f32 1.0, %v4459_v48 }
0x1023   :  { %4464 = vrcp.f32 %v3302_v25 }
0x1024   :  { %4466 = vrcp.f32 %v3303_v13 }
0x102e   :  { %v4463_v27 = vpop.eup %4462 }
0x102f   :  { %v3312_v44 = vmul.f32 %v4463_v27, %v4461_v39 }
0x1030   :  { %v4465_v28 = vpop.eup %4464 }
0x1031   :  { %v3311_v9 = vmul.f32 %v4465_v28, %v6477_v32  ;;  %v4467_v17 = vpop.eup %4466  ;;  %v7530_v32 = vld [vmem:[#allocation58_spill] sm:$0xff] }
0x1033   :  { %v6661_v11 = vadd.f32 %v3312_v44, %v3311_v9 }
0x1035   :  { %4468 = vtanh.f32 %v6661_v11 }
0x1042   :  { %v4469_v24 = vpop.eup %4468 }
0x1043   :  { %v3315_v1 = vmul.f32 %v4469_v24, %v4467_v17 }
0x1045   :  { %v3316_v42 = vpack.c.bf16 %v3315_v1, %v3315_v1  ;;  %v3647_v63 = vrot.slane %v3315_v1, 4 }
0x1047   :  { %3350 = vmatmul.mubr.bf16.vlgmr.msra.gmra.mxu1 %v3316_v42  ;;  %3391 = vmatmul.mubr.bf16.vlgmr.msra.gmra.mxu0 %v3316_v42  ;;  %v6668_v57 = vsel %vm3654_vm5, %v3658_v53, %v3647_v63 }
0x1048   :  { %3400 = vmatpush1.bf16.msra.mxu1 %v6296_v38  ;;  %3441 = vmatpush1.bf16.msra.mxu0 %v6299_v30  ;;  %v7508_v38 = vld [vmem:[#allocation42_spill] sm:$0xff]  ;;  %v7509_v30 = vld [vmem:[#allocation43_spill] sm:$0xff] }
0x1049   :  { %3401 = vmatprep.subr.bf16.mxu1 %v6302_v2  ;;  %3442 = vmatprep.subr.bf16.mxu0 %v6305_v21  ;;  %v7510_v2 = vld [vmem:[#allocation44_spill] sm:$0xff]  ;;  %v7511_v21 = vld [vmem:[#allocation45_spill] sm:$0xff] }
0x104a   :  { %3431 = vmatprep.mubr.bf16.mxu1 %v7154_v40  ;;  %3472 = vmatprep.mubr.bf16.mxu0 %v7154_v40 }
0x104c   :  { %3402 = vmatpush1.bf16.msra.mxu1 %v6310_v34  ;;  %3443 = vmatpush1.bf16.msra.mxu0 %v6313_v49  ;;  %v7513_v34 = vld [vmem:[#allocation47_spill] sm:$0xff]  ;;  %v7514_v49 = vld [vmem:[#allocation48_spill] sm:$0xff] }
0x104d   :  { %3403 = vmatprep.subr.bf16.mxu1 %v6316_v4  ;;  %3444 = vmatprep.subr.bf16.mxu0 %v6319_v31  ;;  %v7515_v4 = vld [vmem:[#allocation49_spill] sm:$0xff] }
0x104e   :  { %v7516_v31 = vld [vmem:[#allocation69_spill] sm:$0xff] }
0x1050   :  { %3404 = vmatpush1.bf16.msra.mxu1 %v6322_v29  ;;  %3445 = vmatpush1.bf16.msra.mxu0 %v6325_v52  ;;  %v7517_v29 = vld [vmem:[#allocation70_spill] sm:$0xff] }
0x1051   :  { %3405 = vmatprep.subr.bf16.mxu1 %v6328_v14  ;;  %3446 = vmatprep.subr.bf16.mxu0 %v6331_v37  ;;  %v7518_v52 = vld [vmem:[#allocation50_spill] sm:$0xff]  ;;  %v7519_v14 = vld [vmem:[#allocation51_spill] sm:$0xff]  ;;  %v7520_v37 = vld [vmem:[#allocation52_spill] sm:$0xff] }
0x1054   :  { %3406 = vmatpush1.bf16.msra.mxu1 %v6334_v12  ;;  %3447 = vmatpush1.bf16.msra.mxu0 %v6337_v0  ;;  %v7521_v12 = vld [vmem:[#allocation53_spill] sm:$0xff]  ;;  %v7522_v0 = vld [vmem:[#allocation54_spill] sm:$0xff] }
0x1055   :  { %3407 = vmatprep.subr.bf16.mxu1 %v6340_v22  ;;  %3448 = vmatprep.subr.bf16.mxu0 %v7469_v6  ;;  %v7523_v22 = vld [vmem:[#allocation55_spill] sm:$0xff]  ;;  %v7532_v6 = vld [vmem:[#allocation60_spill] sm:$0xff] }
0x1058   :  { %3408 = vmatpush1.bf16.msra.mxu1 %v7470_v15  ;;  %3449 = vmatpush1.bf16.msra.mxu0 %v7471_v19  ;;  %v7533_v15 = vld [vmem:[#allocation61_spill] sm:$0xff]  ;;  %v7534_v19 = vld [vmem:[#allocation62_spill] sm:$0xff] }
0x1059   :  { %3409 = vmatprep.subr.bf16.mxu1 %v6352_v23  ;;  %3450 = vmatprep.subr.bf16.mxu0 %v6355_v47  ;;  %v7528_v23 = vld [vmem:[#allocation56_spill] sm:$0xff]  ;;  %v7529_v47 = vld [vmem:[#allocation57_spill] sm:$0xff] }
0x105c   :  { %3410 = vmatpush1.bf16.msra.mxu1 %v6358_v20  ;;  %3451 = vmatpush1.bf16.msra.mxu0 %v6361_v62  ;;  %v7512_v20 = vld [vmem:[#allocation46_spill] sm:$0xff]  ;;  %v7524_v62 = vld [vmem:[#allocation63_spill] sm:$0xff] }
0x105d   :  { %3411 = vmatprep.subr.bf16.mxu1 %v6364_v46  ;;  %3452 = vmatprep.subr.bf16.mxu0 %v6367_v36  ;;  %v7525_v46 = vld [vmem:[#allocation65_spill] sm:$0xff]  ;;  %v7526_v36 = vld [vmem:[#allocation64_spill] sm:$0xff] }
0x1060   :  { %3412 = vmatpush1.bf16.msra.mxu1 %v6510_v54  ;;  %3453 = vmatpush1.bf16.msra.mxu0 %v6513_v56  ;;  %v7535_v54 = vld [vmem:[#allocation67_spill] sm:$0xff]  ;;  %v7536_v56 = vld [vmem:[#allocation68_spill] sm:$0xff] }
0x1061   :  { %3413 = vmatprep.subr.bf16.mxu1 %v6516_v10  ;;  %3454 = vmatprep.subr.bf16.mxu0 %v7508_v38  ;;  %v7537_v10 = vld [vmem:[#allocation71_spill] sm:$0xff] }
0x1064   :  { %3414 = vmatpush1.bf16.msra.mxu1 %v7509_v30  ;;  %3455 = vmatpush1.bf16.msra.mxu0 %v7510_v2 }
0x1065   :  { %3528 = vmatprep.subr.bf16.mxu1 %v7511_v21  ;;  %3569 = vmatprep.subr.bf16.mxu0 %v7512_v20 }
0x1067   :  { %3432 = vmatmul.mubr.bf16.vlgmr.msra.gmra.mxu1 %v6644_v16  ;;  %3473 = vmatmul.mubr.bf16.vlgmr.msra.gmra.mxu0 %v6644_v16  ;;  %v7538_v16 = vld [vmem:[#allocation72_spill] sm:$0xff] }
0x1068   :  { %3529 = vmatpush1.bf16.msra.mxu1 %v7513_v34  ;;  %3570 = vmatpush1.bf16.msra.mxu0 %v7514_v49 }
0x1069   :  { %3530 = vmatprep.subr.bf16.mxu1 %v7515_v4  ;;  %3571 = vmatprep.subr.bf16.mxu0 %v7516_v31 }
0x106a   :  { %3560 = vmatprep.mubr.bf16.mxu1 %v7154_v40  ;;  %3601 = vmatprep.mubr.bf16.mxu0 %v7154_v40  ;;  %v7527_v40 = vld [vmem:[#allocation66_spill] sm:$0xff] }
0x106c   :  { %3531 = vmatpush1.bf16.msra.mxu1 %v7517_v29  ;;  %3572 = vmatpush1.bf16.msra.mxu0 %v7518_v52 }
0x106d   :  { %3532 = vmatprep.subr.bf16.mxu1 %v7519_v14  ;;  %3573 = vmatprep.subr.bf16.mxu0 %v7520_v37 }
0x1070   :  { %3533 = vmatpush1.bf16.msra.mxu1 %v7521_v12  ;;  %3574 = vmatpush1.bf16.msra.mxu0 %v7522_v0 }
0x1071   :  { %3534 = vmatprep.subr.bf16.mxu1 %v7523_v22  ;;  %3575 = vmatprep.subr.bf16.mxu0 %v7524_v62  ;;  %v3517_v22 = vrot.slane %v6641_v50, 6  ;;  %v4236_v50 = vld [vmem:[#allocation16 + $0x38] sm:$0xff]  }
0x1074   :  { %3535 = vmatpush1.bf16.msra.mxu1 %v7525_v46  ;;  %3576 = vmatpush1.bf16.msra.mxu0 %v7526_v36 }
0x1075   :  { %3536 = vmatprep.subr.bf16.mxu1 %v7527_v40  ;;  %3577 = vmatprep.subr.bf16.mxu0 %v7528_v23 }
0x1078   :  { %3537 = vmatpush1.bf16.msra.mxu1 %v7529_v47  ;;  %3578 = vmatpush1.bf16.msra.mxu0 %v7530_v32 }
0x1079   :  { %3538 = vmatprep.subr.bf16.mxu1 %v7531_v7  ;;  %3579 = vmatprep.subr.bf16.mxu0 %v7532_v6  ;;  %v4237_v6 = vld [vmem:[#allocation16 + $0x30] sm:$0xff]  }
0x107c   :  { %3539 = vmatpush1.bf16.msra.mxu1 %v7533_v15  ;;  %3580 = vmatpush1.bf16.msra.mxu0 %v7534_v19  ;;  %v4238_v15 = vld [vmem:[#allocation16 + $0x28] sm:$0xff]   ;;  %v4239_v19 = vld [vmem:[#allocation16 + $0x20] sm:$0xff]  }
0x107d   :  { %3540 = vmatprep.subr.bf16.mxu1 %v7535_v54  ;;  %3581 = vmatprep.subr.bf16.mxu0 %v7536_v56  ;;  %v4240_v54 = vld [vmem:[#allocation16 + $0x18] sm:$0xff]   ;;  %v4241_v56 = vld [vmem:[#allocation16 + $0x10] sm:$0xff]  }
0x1080   :  { %3541 = vmatpush1.bf16.msra.mxu1 %v7537_v10  ;;  %3582 = vmatpush1.bf16.msra.mxu0 %v7538_v16  ;;  %v4242_v10 = vld [vmem:[#allocation16 + $0x8] sm:$0xff]   ;;  %v4243_v16 = vld [vmem:[#allocation16] sm:$0xff]  }
0x1081   :  { %3542 = vmatprep.subr.bf16.mxu1 %v7539_v60  ;;  %3583 = vmatprep.subr.bf16.mxu0 %v7540_v8 }
0x1084   :  { %3543 = vmatpush1.bf16.msra.mxu1 %v7541_v5  ;;  %3584 = vmatpush1.bf16.msra.mxu0 %v7542_v61 }
0x1085   :  { %4027 = vmatprep.subr.bf16.mxu1 %v7543_v58 }
0x1107   :  { %v6739_v43 = vpop.f32.mrf.mxu1  ;;  %v6741_v25 = vpop.f32.mrf.mxu0 }
0x1108   :  { %v3352_v60 = vadd.f32 %v6739_v43, %v7467_v18  ;;  %v3393_v18 = vadd.f32 %v6741_v25, %v5523_v45 }
0x1109   :  { %v6743_v48 = vpop.f32.mrf.mxu1  ;;  %v6745_v39 = vpop.f32.mrf.mxu0 }
0x110a   :  { %v3354_v61 = vadd.f32 %v6743_v48, %v7468_v33 }
0x110b   :  { %v3355_v27 = vpop.f32.mrf.mxu1  ;;  %v3396_v44 = vpop.f32.mrf.mxu0 }
0x110d   :  { %v3356_v28 = vpop.f32.mrf.mxu1  ;;  %v3397_v13 = vpop.f32.mrf.mxu0 }
0x1127   :  { %v3433_v9 = vpop.f32.mrf.mxu1  ;;  %v3474_v17 = vpop.f32.mrf.mxu0 }
0x1128   :  { %v3485_v24 = vrot.slane %v3433_v9, 2  ;;  %v3487_v34 = vrot.slane %v3474_v17, 2 }
0x1129   :  { %v3435_v41 = vpop.f32.mrf.mxu1  ;;  %v3476_v1 = vpop.f32.mrf.mxu0 }
0x112a   :  { %v3493_v42 = vadd.f32 %v3485_v24, %v7395_v55  ;;  %v3486_v63 = vrot.slane %v3435_v41, 2  ;;  %v3495_v49 = vadd.f32 %v3487_v34, %v7397_v35  ;;  %v3488_v4 = vrot.slane %v3476_v1, 2 }
0x112b   :  { %v3437_v59 = vpop.f32.mrf.mxu1  ;;  %v3478_v53 = vpop.f32.mrf.mxu0 }
0x112c   :  { %v3986_v38 = vmul.f32 -1.442695, %v3493_v42  ;;  %v3494_v30 = vadd.f32 %v3486_v63, %v7396_v26  ;;  %v3988_v31 = vmul.f32 -1.442695, %v3495_v49  ;;  %v3496_v52 = vadd.f32 %v3488_v4, %v7398_v51 }
0x112d   :  { %v3438_v2 = vpop.f32.mrf.mxu1  ;;  %v3479_v21 = vpop.f32.mrf.mxu0  ;;  %v3395_v42 = vadd.f32 %v6745_v39, %v5528_v3 }
0x112e   :  { %4470 = vpow2.f32 %v3986_v38  ;;  %v3987_v20 = vmul.f32 -1.442695, %v3494_v30 }
0x1130   :  { %4472 = vpow2.f32 %v3987_v20 }
0x1131   :  { %4474 = vpow2.f32 %v3988_v31 }
0x113b   :  { %v4471_v29 = vpop.eup %4470 }
0x113c   :  { %v3506_v55 = vadd.f32 1.0, %v4471_v29 }
0x113d   :  { %v4473_v14 = vpop.eup %4472 }
0x113e   :  { %4476 = vrcp.f32 %v3506_v55  ;;  %v3507_v37 = vadd.f32 1.0, %v4473_v14  ;;  %v4475_v26 = vpop.eup %4474 }
0x113f   :  { %4478 = vtanh.f32 %v3496_v52  ;;  %v3508_v46 = vadd.f32 1.0, %v4475_v26  ;;  %v7544_v52 = vld [vmem:[#allocation35_spill] sm:$0xff] }
0x1140   :  { %4480 = vrcp.f32 %v3507_v37 }
0x1141   :  { %4482 = vrcp.f32 %v3508_v46 }
0x114b   :  { %v4477_v12 = vpop.eup %4476 }
0x114c   :  { %v4479_v0 = vpop.eup %4478 }
0x114d   :  { %v4481_v62 = vpop.eup %4480  ;;  %v3520_v36 = vmul.f32 %v4479_v0, %v4477_v12 }
0x114e   :  { %v3519_v35 = vmul.f32 %v4481_v62, %v3517_v22  ;;  %v4483_v51 = vpop.eup %4482 }
0x1150   :  { %v3521_v40 = vadd.f32 %v3520_v36, %v3519_v35 }
0x1152   :  { %4484 = vtanh.f32 %v3521_v40  ;;  %3779 = vst [vmem:[#allocation20 - $0x6] sm:$0xc0] %v3521_v40 }
0x115f   :  { %v4485_v23 = vpop.eup %4484 }
0x1160   :  { %v3523_v47 = vmul.f32 %v4485_v23, %v4483_v51 }
0x1162   :  { %v3524_v32 = vpack.c.bf16 %v3523_v47, %v3523_v47  ;;  %3776 = vst [vmem:[#allocation19 - $0x6] sm:$0xc0] %v3523_v47 }
0x1164   :  { %v3526_v7 = vrot.slane %v3524_v32, 3 }
0x1166   :  { %3561 = vmatmul.mubr.bf16.vlgmr.msra.gmra.mxu1 %v3526_v7  ;;  %3602 = vmatmul.mubr.bf16.vlgmr.msra.gmra.mxu0 %v3526_v7 }
0x1167   :  { %4043 = vmatprep.mubr.msk.bf16.mxu1 %vm4967_vm0, %v7543_v58  ;;  %4028 = vmatpush3.bf16.msra.mxu1 %v4236_v50 }
0x1168   :  { %4029 = vmatprep.subr.bf16.mxu1 %v7543_v58 }
0x116b   :  { %4030 = vmatpush3.bf16.msra.mxu1 %v4237_v6 }
0x116c   :  { %4031 = vmatprep.subr.bf16.mxu1 %v7543_v58 }
0x116f   :  { %4032 = vmatpush3.bf16.msra.mxu1 %v4238_v15 }
0x1170   :  { %4033 = vmatprep.subr.bf16.mxu1 %v7543_v58 }
0x1173   :  { %4034 = vmatpush3.bf16.msra.mxu1 %v4239_v19 }
0x1174   :  { %4035 = vmatprep.subr.bf16.mxu1 %v7543_v58 }
0x1177   :  { %4036 = vmatpush3.bf16.msra.mxu1 %v4240_v54 }
0x1178   :  { %4037 = vmatprep.subr.bf16.mxu1 %v7543_v58 }
0x117b   :  { %4038 = vmatpush3.bf16.msra.mxu1 %v4241_v56 }
0x117c   :  { %4039 = vmatprep.subr.bf16.mxu1 %v7543_v58 }
0x117f   :  { %4040 = vmatpush3.bf16.msra.mxu1 %v4242_v10 }
0x1180   :  { %4041 = vmatprep.subr.bf16.mxu1 %v7543_v58 }
0x1183   :  { %4042 = vmatpush3.bf16.msra.mxu1 %v4243_v16 }
0x1226   :  { %v3562_v8 = vpop.f32.mrf.mxu1  ;;  %v3603_v5 = vpop.f32.mrf.mxu0 }
0x1227   :  { %v3563_v27 = vadd.f32 %v3562_v8, %v3352_v60  ;;  %v3604_v43 = vadd.f32 %v3603_v5, %v3393_v18 }
0x1228   :  { %v3564_v44 = vpop.f32.mrf.mxu1  ;;  %v3605_v28 = vpop.f32.mrf.mxu0 }
0x1229   :  { %v3989_v13 = vmul.f32 -1.442695, %v3563_v27  ;;  %v3565_v9 = vadd.f32 %v3564_v44, %v3354_v61  ;;  %v3991_v33 = vmul.f32 -1.442695, %v3604_v43  ;;  %v3606_v48 = vadd.f32 %v3605_v28, %v3395_v42 }
0x122a   :  { %v3566_v17 = vpop.f32.mrf.mxu1  ;;  %v3607_v24 = vpop.f32.mrf.mxu0 }
0x122b   :  { %4486 = vpow2.f32 %v3989_v13  ;;  %v3990_v41 = vmul.f32 -1.442695, %v3565_v9 }
0x122c   :  { %v3567_v1 = vpop.f32.mrf.mxu1  ;;  %v3608_v58 = vpop.f32.mrf.mxu0 }
0x122d   :  { %4488 = vpow2.f32 %v3990_v41 }
0x122e   :  { %4490 = vpow2.f32 %v3991_v33 }
0x122f   :  { %4492 = vtanh.f32 %v3606_v48 }
0x1238   :  { %v4487_v63 = vpop.eup %4486 }
0x1239   :  { %v3619_v59 = vadd.f32 1.0, %v4487_v63 }
0x123a   :  { %v4489_v53 = vpop.eup %4488 }
0x123b   :  { %4494 = vrcp.f32 %v3619_v59  ;;  %v3620_v38 = vadd.f32 1.0, %v4489_v53  ;;  %v4491_v30 = vpop.eup %4490 }
0x123c   :  { %v4493_v2 = vpop.eup %4492  ;;  %v3621_v45 = vadd.f32 1.0, %v4491_v30 }
0x123d   :  { %4496 = vrcp.f32 %v3620_v38 }
0x123e   :  { %4498 = vrcp.f32 %v3621_v45 }
0x1248   :  { %v4495_v21 = vpop.eup %4494 }
0x1249   :  { %v3630_v20 = vmul.f32 %v4495_v21, %v4493_v2 }
0x124a   :  { %v4497_v34 = vpop.eup %4496 }
0x124b   :  { %v3629_v25 = vmul.f32 %v4497_v34, %v6661_v11  ;;  %v4499_v3 = vpop.eup %4498 }
0x124d   :  { %v3631_v49 = vadd.f32 %v3630_v20, %v3629_v25 }
0x124f   :  { %4500 = vtanh.f32 %v3631_v49  ;;  %3781 = vst [vmem:[#allocation20 + $0x2] sm:$0x3] %v3631_v49 }
0x125c   :  { %v4501_v39 = vpop.eup %4500 }
0x125d   :  { %v3633_v4 = vmul.f32 %v4501_v39, %v4499_v3 }
0x125f   :  { %v3650_v31 = vrot.slane %v3633_v4, 2  ;;  %3778 = vst [vmem:[#allocation19 + $0x2] sm:$0x3] %v3633_v4 }
0x1261   :  { %v3660_v29 = vsel %vm3656_vm6, %v6668_v57, %v3650_v31 }
0x1262   :  { %v3661_v55 = vpack.c.bf16 %v3660_v29, %v7544_v52 }
0x1264   :  { %4044 = vmatmul.mubr.bf16.vlgmr.msra.gmra.mxu1 %v3661_v55 }
0x1265   :  { %4905 = shalt.err (!%p4902_p12)
}
0x1266   :  { %s4970_s29 = smov 32   ;;  %s4971_s0 = smov 2  }
0x1267   :  { %3795 = dma.vmem_to_hbm [thread:$0]  %s3790_s23, 64, %s6801_s16, [#allocation4], %s4970_s29, %s4970_s29, %s4971_s0  }
0x1268   :  { %s4972_s22 = smov [#allocation20]  }
0x1269   :  { %s3801_s26 = sshll.u32 %s4972_s22, 4  ;;  %s3802_s26 = int_to_ptr.vmem [resolvable:$true] %s3801_s26 }
0x126a   :  { %s4914_s24 = scalar_lea.vmem %s3802_s26, 64  ;;  %p4919_p0 = scmp.lt.s32.totalorder %s3802_s26, %s3802_s26 }
0x126b   :  { %p4915_p13 = scmp.ne.s32.totalorder %s3802_s26, %s4914_s24  ;;  %p4920_p1 = scmp.lt.s32.totalorder %s4914_s24, %s4914_s24 }
0x126d   :  { %p4921_p2 = por %p4920_p1, %p4919_p0 }
0x126f   :  { %p4922_p3 = pnand %p4921_p2, %p4915_p13 }
0x1271   :  { %4925 = shalt.err (!%p4922_p3)
}
0x1272   :  { %3807 = dma.vmem_to_hbm [thread:$0]  %s3802_s26, 64, %s6802_s17, [#allocation21], %s4970_s29, %s4970_s29, %s4971_s0   ;;  %v3992_v11 = vld [vmem:[#allocation17] ss:$0 sm:$0xff] }
0x1324   :  { %v3767_v57 = vpop.f32.mrf.mxu1 }
0x1325   :  { %v3768_v14 = vadd.f32 %v3992_v11, %v3767_v57 }
0x1326   :  { %v4045_v37 = vpop.f32.mrf.mxu1 }
0x1327   :  { %3774 = vst [vmem:[%s6800_s15] sm:$0xff] %v3768_v14 }
0x1328   :  { %v3770_v26 = vpop.f32.mrf.mxu1 }
0x1329   :  { %v3771_v12 = vadd.f32 %v3992_v11, %v3770_v26 }
0x132a   :  { %v4046_v0 = vpop.f32.mrf.mxu1 }
0x132b   :  { %3775 = vst [vmem:[%s6800_s15 + $0x8] sm:$0xff] %v3771_v12 }
0x132c   :  { %4946 = dma.done.wait [#allocation4], 64  }
0x132d   :  { %4947 = vsyncadd [#allocation4], 4294967232 }
0x132e   :  { %4948 = dma.done.wait [#allocation21], 64  }
0x132f   :  { %4949 = vsyncadd [#allocation21], 4294967232 }
0x1330   :  { %3816 = vsyncpa [#allocation3], 1 }
0x1331   :  { %3817 = vsyncpa [#allocation6], 1 }
0x1332   :  { %3818 = vsyncpa [#allocation9], 1 }
0x1333   :  { %3819 = vsyncpa [#allocation12], 1 }
0x1334   :  { %3820 = vsyncpa [#allocation15], 1 }
0x1335   :  { %3821 = vsyncpa [#allocation18], 1 }
0x1336   :  { %3822 = vsyncpa [#allocation4], 1 }
0x1337   :  { %3823 = vsyncpa [#allocation21], 1 }

</bundles_post_ra>
